<compile_context>
chip_gen: v7x
topology: tpu7x:2x2x1
jax: 0.10.0
libtpu: 0.0.40
codegen_flags: <defaults>
</compile_context>

<pallas_src>
import functools

import jax
import jax.numpy as jnp
import numpy as np
from jax.experimental import pallas as pl
from jax.experimental.pallas import tpu as pltpu


# ------------------------------ Pallas kernels ----------------------------- #
def _tap_accumulate(lhs_ref, rhs_ref, base, tm, row_step, aligned):
    """acc = sum_dy lhs[base + dy*row_step : +tm] @ rhs[dy]  (f32 accumulate)."""
    acc = None
    for dy in range(3):
        start = base + dy * row_step
        if aligned:
            start = pl.multiple_of(start, 8)
        a = lhs_ref[pl.ds(start, tm), :]
        d = jnp.dot(a, rhs_ref[dy], preferred_element_type=jnp.float32)
        acc = d if acc is None else acc + d
    return acc


def _deconv_kernel(lhs_ref, rhs_ref, shift_ref, out_ref, *, row_step, aligned):
    """Deconv (phase GEMM) + folded-BN shift + ReLU for one row tile."""
    tm = out_ref.shape[0]
    base = pl.program_id(0) * tm
    acc = _tap_accumulate(lhs_ref, rhs_ref, base, tm, row_step, aligned)
    y = jnp.maximum(acc + shift_ref[...], 0.0)
    out_ref[...] = y.astype(out_ref.dtype)


def _deconv_final_kernel(lhs_ref, rhs_ref, shift_ref, w2_ref, b2_ref, out_ref,
                         *, row_step, aligned):
    """Last deconv + BN + ReLU + fused final 1x1 conv (+bias)."""
    tm = out_ref.shape[0]
    base = pl.program_id(0) * tm
    acc = _tap_accumulate(lhs_ref, rhs_ref, base, tm, row_step, aligned)
    y = jnp.maximum(acc + shift_ref[...], 0.0)
    z = jnp.dot(y.astype(w2_ref.dtype), w2_ref[...],
                preferred_element_type=jnp.float32)
    out_ref[...] = (z + b2_ref[...]).astype(out_ref.dtype)


def _matmul_bias_kernel(x_ref, w_ref, b_ref, out_ref):
    """Plain 1x1 conv (+bias) GEMM tile (only for num_deconv_layers == 0)."""
    acc = jnp.dot(x_ref[...], w_ref[...], preferred_element_type=jnp.float32)
    out_ref[...] = (acc + b_ref[...]).astype(out_ref.dtype)


# ------------------------------- GEMM wrappers ------------------------------ #
def _round_up(x, m):
    return (x + m - 1) // m * m


def _pick_tm(rows):
    """Row-tile size: >=2 grid steps when there is enough work (v7x megacore),
    multiples of 8, capped at 1024 rows/tile (VMEM headroom incl. v7x)."""
    r8 = _round_up(max(rows, 8), 8)
    tm = _round_up((r8 + 1) // 2, 8)
    return max(8, min(tm, 1024))


_MOSAIC_PARAMS = pltpu.CompilerParams(
    dimension_semantics=("parallel",),
    vmem_limit_bytes=32 * 1024 * 1024,
)


def _deconv_gemm(lhs, rhs3, shift, w2, b2, *, rows_out, row_step, out_dtype):
    """relu(sum_dy lhs[r + dy*row_step] @ rhs3[dy] + shift) [ @ w2 + b2 ]."""
    K = lhs.shape[1]
    C4 = rhs3.shape[-1]
    out_cols = C4 if w2 is None else w2.shape[-1]

    tm = _pick_tm(rows_out)
    ntiles = (rows_out + tm - 1) // tm
    rows_pad = ntiles * tm
    need = rows_pad + 2 * row_step                    # last tile's furthest tap
    if lhs.shape[0] < need:
        lhs = jnp.pad(lhs, ((0, need - lhs.shape[0]), (0, 0)))
    rows_lhs = lhs.shape[0]
    aligned = (tm % 8 == 0) and (row_step % 8 == 0)

    args = [lhs, rhs3, shift]
    in_specs = [
        pl.BlockSpec((rows_lhs, K), lambda i: (0, 0)),        # VMEM-resident lhs
        pl.BlockSpec((3, K, C4), lambda i: (0, 0, 0)),
        pl.BlockSpec((1, C4), lambda i: (0, 0)),
    ]
    if w2 is None:
        kernel = functools.partial(_deconv_kernel, row_step=row_step,
                                   aligned=aligned)
    else:
        kernel = functools.partial(_deconv_final_kernel, row_step=row_step,
                                   aligned=aligned)
        args += [w2, b2]
        in_specs += [
            pl.BlockSpec((C4, out_cols), lambda i: (0, 0)),
            pl.BlockSpec((1, out_cols), lambda i: (0, 0)),
        ]

    return pl.pallas_call(
        kernel,
        out_shape=jax.ShapeDtypeStruct((rows_pad, out_cols), out_dtype),
        grid_spec=pltpu.PrefetchScalarGridSpec(
            num_scalar_prefetch=0,
            grid=(ntiles,),
            in_specs=in_specs,
            out_specs=pl.BlockSpec((tm, out_cols), lambda i: (i, 0)),
        ),
        compiler_params=_MOSAIC_PARAMS,
    )(*args)


# ------------------- Deconv lowering (phase decomposition) ----------------- #
# ConvTranspose2d(k=4, s=2, p=1), one spatial dim:
#   out[2m]   = w[3]*x[m-1] + w[1]*x[m]
#   out[2m+1] = w[2]*x[m]   + w[0]*x[m+1]
# expressed over the 3-tap neighbourhood d in {0,1,2} ~ x[m-1+d]:
_PHASE_TAPS = {0: ((0, 3), (1, 1)), 1: ((1, 2), (2, 0))}


def _pack_deconv_rhs(w, scale):
    """(Cin, Cout, 4, 4) ConvTranspose2d weight + eval-BN scale ->
    (3, 3*Cin, 4*Cout) bf16 GEMM rhs (vertical tap major, scale folded)."""
    w = np.asarray(w, np.float32)
    scale = np.asarray(scale, np.float32)
    cin, cout = w.shape[:2]
    rhs = np.zeros((3, 3, cin, 4, cout), np.float32)
    for py in (0, 1):
        for px in (0, 1):
            p = 2 * py + px
            for dy, ky in _PHASE_TAPS[py]:
                for dx, kx in _PHASE_TAPS[px]:
                    rhs[dy, dx, :, p, :] = w[:, :, ky, kx]
    rhs = rhs * scale[None, None, None, None, :]          # fold eval-BN scale
    return jnp.asarray(rhs.reshape(3, 3 * cin, 4 * cout), jnp.bfloat16)


def _pack_final(w_final, b_final):
    """1x1 conv weight -> block-diagonal (4*Cin, 4*OutC) for per-phase fusion."""
    w_final = np.asarray(w_final, np.float32)
    b_final = np.asarray(b_final, np.float32)
    outc, cin = w_final.shape[:2]
    wm = w_final.reshape(outc, cin).T                     # (Cin, OutC)
    w2 = np.zeros((4, cin, 4, outc), np.float32)
    for p in range(4):
        w2[p, :, p, :] = wm
    w2 = jnp.asarray(w2.reshape(4 * cin, 4 * outc), jnp.bfloat16)
    b2 = jnp.asarray(np.tile(b_final, 4).reshape(1, 4 * outc), jnp.float32)
    return w2, b2


def prepare_params(params):
    """Pack weights once (hoisted out of the jitted forward path)."""
    packed = {"deconv": []}
    deconvs = params["deconv"]
    n_layers = len(deconvs)
    for li, (w, scale, shift) in enumerate(deconvs):
        rhs3 = _pack_deconv_rhs(w, scale)
        shift4 = jnp.asarray(np.tile(np.asarray(shift, np.float32), 4)
                             .reshape(1, -1), jnp.float32)
        if li == n_layers - 1:
            w2, b2 = _pack_final(params["final_w"], params["final_b"])
        else:
            w2, b2 = None, None
        packed["deconv"].append((rhs3, shift4, w2, b2))
    if n_layers == 0:
        outc, cin = params["final_w"].shape[:2]
        packed["final_w"] = jnp.asarray(
            np.asarray(params["final_w"], np.float32).reshape(outc, cin).T,
            jnp.bfloat16)
        packed["final_b"] = jnp.asarray(
            np.asarray(params["final_b"], np.float32).reshape(1, outc),
            jnp.float32)
    return packed


def deconv_layer(x_nhwc, rhs3, shift4, w2=None, b2=None):
    """One deconv+BN+ReLU layer (optionally with the final 1x1 conv fused)."""
    n, h, w, cin = x_nhwc.shape
    hp = h + 2
    xpad = jnp.pad(x_nhwc.astype(jnp.bfloat16),
                   ((0, 0), (1, 1), (1, 1), (0, 0)))
    # Horizontal (3-tap) im2col only, in bf16: 3x inflation instead of 9x.
    # The vertical taps are row shifts of +0/+w/+2w handled inside the kernel.
    lhs = jnp.concatenate([xpad[:, :, dx:dx + w, :] for dx in range(3)], axis=-1)
    lhs = lhs.reshape(n * hp * w, 3 * cin)
    rows_out = n * hp * w                                 # incl. 2 pad rows/img
    out_dtype = jnp.bfloat16 if w2 is None else jnp.float32
    out = _deconv_gemm(lhs, rhs3, shift4, w2, b2,
                       rows_out=rows_out, row_step=w, out_dtype=out_dtype)
    c = out.shape[1] // 4
    out = out[:rows_out].reshape(n, hp, w, 2, 2, c)[:, :h]   # drop pad rows
    out = out.transpose(0, 1, 3, 2, 4, 5).reshape(n, 2 * h, 2 * w, c)
    return out


def final_conv_1x1(x_nhwc, w_t, b):
    """num_deconv_layers == 0 path: plain 1x1 conv (+bias)."""
    n, h, w, cin = x_nhwc.shape
    outc = w_t.shape[1]
    rows = n * h * w
    tm = _pick_tm(rows)
    ntiles = (rows + tm - 1) // tm
    rows_pad = ntiles * tm
    lhs = x_nhwc.astype(jnp.bfloat16).reshape(rows, cin)
    if rows_pad > rows:
        lhs = jnp.pad(lhs, ((0, rows_pad - rows), (0, 0)))
    out = pl.pallas_call(
        _matmul_bias_kernel,
        out_shape=jax.ShapeDtypeStruct((rows_pad, outc), jnp.float32),
        grid_spec=pltpu.PrefetchScalarGridSpec(
            num_scalar_prefetch=0,
            grid=(ntiles,),
            in_specs=[
                pl.BlockSpec((tm, cin), lambda i: (i, 0)),
                pl.BlockSpec((cin, outc), lambda i: (0, 0)),
                pl.BlockSpec((1, outc), lambda i: (0, 0)),
            ],
            out_specs=pl.BlockSpec((tm, outc), lambda i: (i, 0)),
        ),
        compiler_params=_MOSAIC_PARAMS,
    )(lhs, w_t, b)
    return out[:rows].reshape(n, h, w, outc)


# --------------------------------- Forward --------------------------------- #
def heatmap3d_head_forward(x_nchw, packed, depth_size):
    x = jnp.transpose(x_nchw, (0, 2, 3, 1))                  # NCHW -> NHWC once
    for (rhs3, shift4, w2, b2) in packed["deconv"]:
        x = deconv_layer(x, rhs3, shift4, w2, b2)
    if not packed["deconv"]:                                 # 0 deconv layers
        x = final_conv_1x1(x, packed["final_w"], packed["final_b"])
    x = jnp.transpose(x.astype(jnp.float32), (0, 3, 1, 2))   # NHWC -> NCHW
    n, c, h, w = x.shape
    return x.reshape(n, c // depth_size, depth_size, h, w)


# ------------------------------ Parameter init ------------------------------ #
def init_params(key, in_channels, out_channels, num_deconv_filters, eps=1e-5):
    params = {"deconv": []}
    cin = in_channels
    for cout in num_deconv_filters:
        key, kw, kg, kb, km, kv = jax.random.split(key, 6)
        w = jax.random.normal(kw, (cin, cout, 4, 4), jnp.float32) * 0.1
        gamma = 1.0 + 0.1 * jax.random.normal(kg, (cout,), jnp.float32)
        beta = 0.1 * jax.random.normal(kb, (cout,), jnp.float32)
        mean = 0.1 * jax.random.normal(km, (cout,), jnp.float32)
        var = jnp.abs(jax.random.normal(kv, (cout,), jnp.float32)) + 0.5
        scale = gamma / jnp.sqrt(var + eps)                  # eval-mode BN fold
        shift = beta - mean * scale
        params["deconv"].append((w, scale, shift))
        cin = cout
    key, kw, kb = jax.random.split(key, 3)
    params["final_w"] = jax.random.normal(kw, (out_channels, cin, 1, 1),
                                          jnp.float32) * 0.1
    params["final_b"] = 0.1 * jax.random.normal(kb, (out_channels,), jnp.float32)
    return params


# ---------------------------- Pure-JAX reference ---------------------------- #
def _q(v):
    """Mirror the kernel's bf16 MXU-operand / bf16-intermediate quantization."""
    return v.astype(jnp.bfloat16).astype(jnp.float32)


def reference_forward(x, params, depth_size):
    for (w, scale, shift) in params["deconv"]:
        w_fold = w * scale[None, :, None, None]              # fold eval-BN scale
        w_flip = jnp.transpose(_q(w_fold)[:, :, ::-1, ::-1], (1, 0, 2, 3))
        y = jax.lax.conv_general_dilated(
            _q(x), w_flip, window_strides=(1, 1),
            padding=((2, 2), (2, 2)), lhs_dilation=(2, 2),
            dimension_numbers=("NCHW", "OIHW", "NCHW"),
            precision=jax.lax.Precision.HIGHEST)
        x = jnp.maximum(y + shift[None, :, None, None], 0.0)
    y = jax.lax.conv_general_dilated(
        _q(x), _q(params["final_w"]), (1, 1), "VALID",
        dimension_numbers=("NCHW", "OIHW", "NCHW"),
        precision=jax.lax.Precision.HIGHEST)
    x = y + params["final_b"][None, :, None, None]
    n, c, h, w = x.shape
    return x.reshape(n, c // depth_size, depth_size, h, w)


# ----------------------------------- Main ----------------------------------- #
if __name__ == "__main__":
    # Small config consistent with the module:
    #   in_channels=16, out_channels=32, depth_size=8 (32 % 8 == 0),
    #   num_deconv_layers=3, num_deconv_filters=(32, 32, 32), kernels=(4, 4, 4)
    # (4 phases * 32 channels = 128 -> lane-dense kernel outputs.)
    in_channels, out_channels, depth_size = 16, 32, 8
    num_deconv_filters = (32, 32, 32)

    key = jax.random.PRNGKey(0)
    key, kx = jax.random.split(key)
    x = jax.random.normal(kx, (2, in_channels, 8, 8), jnp.float32)

    params = init_params(key, in_channels, out_channels, num_deconv_filters)
    packed = prepare_params(params)        # weight packing hoisted (done once)

    fwd = jax.jit(functools.partial(heatmap3d_head_forward,
                                    depth_size=depth_size))
    ref_fwd = jax.jit(functools.partial(reference_forward,
                                        depth_size=depth_size))

    out = jax.block_until_ready(fwd(x, packed))
    ref = jax.block_until_ready(ref_fwd(x, params))

    assert out.shape == (2, out_channels // depth_size, depth_size, 64, 64), out.shape
    # bf16 MXU operands and bf16 intermediate activations (both paths quantize
    # identically; residual differences are f32 accumulation-order effects).
    np.testing.assert_allclose(np.asarray(out), np.asarray(ref),
                               rtol=2e-2, atol=2e-2)
    print("KERNEL_OK")
</pallas_src>

<mosaic_0001>
module attributes {stable_mosaic.version = 11 : i64} {
  func.func @_deconv_kernel(%arg0: i32, %arg1: memref<176x48xbf16, #tpu.memory_space<vmem>>, %arg2: memref<3x48x128xbf16, #tpu.memory_space<vmem>>, %arg3: memref<1x128xf32, #tpu.memory_space<vmem>>, %arg4: memref<80x128xbf16, #tpu.memory_space<vmem>>) attributes {dimension_semantics = [#tpu.dimension_semantics<parallel>], iteration_bounds = array<i64: 2>, scalar_prefetch = 0 : i64, scratch_operands = 0 : i64, tpu.core_type = #tpu.core_type<tc>, window_params = [{pipeline_mode = #tpu.pipeline_mode<synchronous>, transform_indices = @transform_0, window_bounds = array<i64: 176, 48>}, {pipeline_mode = #tpu.pipeline_mode<synchronous>, transform_indices = @transform_1, window_bounds = array<i64: 3, 48, 128>}, {pipeline_mode = #tpu.pipeline_mode<synchronous>, transform_indices = @transform_2, window_bounds = array<i64: 1, 128>}, {transform_indices = @transform_3, window_bounds = array<i64: 80, 128>}]} {
    %c80_i32 = arith.constant 80 : i32
    %0 = arith.muli %arg0, %c80_i32 : i32
    %c0_i32 = arith.constant 0 : i32
    %1 = arith.addi %0, %c0_i32 : i32
    %2 = tpu.assume_multiple %1, 8 : i32
    %3 = arith.index_cast %2 : i32 to index
    %c0 = arith.constant 0 : index
    %4 = vector.load %arg1[%3, %c0] : memref<176x48xbf16, #tpu.memory_space<vmem>>, vector<80x48xbf16>
    %c0_0 = arith.constant 0 : index
    %c0_1 = arith.constant 0 : index
    %c0_2 = arith.constant 0 : index
    %5 = vector.load %arg2[%c0_0, %c0_1, %c0_2] : memref<3x48x128xbf16, #tpu.memory_space<vmem>>, vector<1x48x128xbf16>
    %6 = vector.shape_cast %5 : vector<1x48x128xbf16> to vector<48x128xbf16>
    %cst = arith.constant dense<0.000000e+00> : vector<80x128xf32>
    %7 = tpu.matmul %4, %6, %cst {dimension_numbers = #tpu.dot_dimension_numbers<[1], [0], [0], [1], [0, 0, 1, 1], [], []>} : vector<80x48xbf16>, vector<48x128xbf16>, vector<80x128xf32> -> vector<80x128xf32>
    %c8_i32 = arith.constant 8 : i32
    %8 = arith.addi %0, %c8_i32 : i32
    %9 = tpu.assume_multiple %8, 8 : i32
    %10 = arith.index_cast %9 : i32 to index
    %c0_3 = arith.constant 0 : index
    %11 = vector.load %arg1[%10, %c0_3] : memref<176x48xbf16, #tpu.memory_space<vmem>>, vector<80x48xbf16>
    %c1 = arith.constant 1 : index
    %c0_4 = arith.constant 0 : index
    %c0_5 = arith.constant 0 : index
    %12 = vector.load %arg2[%c1, %c0_4, %c0_5] : memref<3x48x128xbf16, #tpu.memory_space<vmem>>, vector<1x48x128xbf16>
    %13 = vector.shape_cast %12 : vector<1x48x128xbf16> to vector<48x128xbf16>
    %cst_6 = arith.constant dense<0.000000e+00> : vector<80x128xf32>
    %14 = tpu.matmul %11, %13, %cst_6 {dimension_numbers = #tpu.dot_dimension_numbers<[1], [0], [0], [1], [0, 0, 1, 1], [], []>} : vector<80x48xbf16>, vector<48x128xbf16>, vector<80x128xf32> -> vector<80x128xf32>
    %15 = arith.addf %7, %14 : vector<80x128xf32>
    %c16_i32 = arith.constant 16 : i32
    %16 = arith.addi %0, %c16_i32 : i32
    %17 = tpu.assume_multiple %16, 8 : i32
    %18 = arith.index_cast %17 : i32 to index
    %c0_7 = arith.constant 0 : index
    %19 = vector.load %arg1[%18, %c0_7] : memref<176x48xbf16, #tpu.memory_space<vmem>>, vector<80x48xbf16>
    %c2 = arith.constant 2 : index
    %c0_8 = arith.constant 0 : index
    %c0_9 = arith.constant 0 : index
    %20 = vector.load %arg2[%c2, %c0_8, %c0_9] : memref<3x48x128xbf16, #tpu.memory_space<vmem>>, vector<1x48x128xbf16>
    %21 = vector.shape_cast %20 : vector<1x48x128xbf16> to vector<48x128xbf16>
    %cst_10 = arith.constant dense<0.000000e+00> : vector<80x128xf32>
    %22 = tpu.matmul %19, %21, %cst_10 {dimension_numbers = #tpu.dot_dimension_numbers<[1], [0], [0], [1], [0, 0, 1, 1], [], []>} : vector<80x48xbf16>, vector<48x128xbf16>, vector<80x128xf32> -> vector<80x128xf32>
    %23 = arith.addf %15, %22 : vector<80x128xf32>
    %c0_11 = arith.constant 0 : index
    %c0_12 = arith.constant 0 : index
    %24 = vector.load %arg3[%c0_11, %c0_12] : memref<1x128xf32, #tpu.memory_space<vmem>>, vector<1x128xf32>
    %25 = vector.broadcast %24 : vector<1x128xf32> to vector<80x128xf32>
    %26 = arith.addf %23, %25 : vector<80x128xf32>
    %cst_13 = arith.constant 0.000000e+00 : f32
    %27 = vector.broadcast %cst_13 : f32 to vector<80x128xf32>
    %28 = arith.maximumf %26, %27 : vector<80x128xf32>
    %29 = arith.truncf %28 : vector<80x128xf32> to vector<80x128xbf16>
    %c0_14 = arith.constant 0 : index
    %c0_15 = arith.constant 0 : index
    %30 = vector.load %arg4[%c0_14, %c0_15] : memref<80x128xbf16, #tpu.memory_space<vmem>>, vector<80x128xbf16>
    tpu.vector_store %arg4[%c0_14, %c0_15], %29 {strides = array<i32>} : memref<80x128xbf16, #tpu.memory_space<vmem>>, vector<80x128xbf16>,
    return
  }
  func.func @transform_0(%arg0: i32) -> (i32, i32) {
    %c0_i32 = arith.constant 0 : i32
    %c0_i32_0 = arith.constant 0 : i32
    %c0_i32_1 = arith.constant 0 : i32
    return %c0_i32, %c0_i32_0 : i32, i32
  }
  func.func @transform_1(%arg0: i32) -> (i32, i32, i32) {
    %c0_i32 = arith.constant 0 : i32
    %c0_i32_0 = arith.constant 0 : i32
    %c0_i32_1 = arith.constant 0 : i32
    %c0_i32_2 = arith.constant 0 : i32
    return %c0_i32, %c0_i32_0, %c0_i32_1 : i32, i32, i32
  }
  func.func @transform_2(%arg0: i32) -> (i32, i32) {
    %c0_i32 = arith.constant 0 : i32
    %c0_i32_0 = arith.constant 0 : i32
    %c0_i32_1 = arith.constant 0 : i32
    return %c0_i32, %c0_i32_0 : i32, i32
  }
  func.func @transform_3(%arg0: i32) -> (i32, i32) {
    %c0_i32 = arith.constant 0 : i32
    %c0_i32_0 = arith.constant 0 : i32
    return %arg0, %c0_i32 : i32, i32
  }
}

module attributes {stable_mosaic.version = 11 : i64} {
  func.func @_deconv_kernel(%arg0: i32, %arg1: memref<608x96xbf16, #tpu.memory_space<vmem>>, %arg2: memref<3x96x128xbf16, #tpu.memory_space<vmem>>, %arg3: memref<1x128xf32, #tpu.memory_space<vmem>>, %arg4: memref<288x128xbf16, #tpu.memory_space<vmem>>) attributes {dimension_semantics = [#tpu.dimension_semantics<parallel>], iteration_bounds = array<i64: 2>, scalar_prefetch = 0 : i64, scratch_operands = 0 : i64, tpu.core_type = #tpu.core_type<tc>, window_params = [{pipeline_mode = #tpu.pipeline_mode<synchronous>, transform_indices = @transform_0, window_bounds = array<i64: 608, 96>}, {pipeline_mode = #tpu.pipeline_mode<synchronous>, transform_indices = @transform_1, window_bounds = array<i64: 3, 96, 128>}, {pipeline_mode = #tpu.pipeline_mode<synchronous>, transform_indices = @transform_2, window_bounds = array<i64: 1, 128>}, {transform_indices = @transform_3, window_bounds = array<i64: 288, 128>}]} {
    %c288_i32 = arith.constant 288 : i32
    %0 = arith.muli %arg0, %c288_i32 : i32
    %c0_i32 = arith.constant 0 : i32
    %1 = arith.addi %0, %c0_i32 : i32
    %2 = tpu.assume_multiple %1, 8 : i32
    %3 = arith.index_cast %2 : i32 to index
    %c0 = arith.constant 0 : index
    %4 = vector.load %arg1[%3, %c0] : memref<608x96xbf16, #tpu.memory_space<vmem>>, vector<288x96xbf16>
    %c0_0 = arith.constant 0 : index
    %c0_1 = arith.constant 0 : index
    %c0_2 = arith.constant 0 : index
    %5 = vector.load %arg2[%c0_0, %c0_1, %c0_2] : memref<3x96x128xbf16, #tpu.memory_space<vmem>>, vector<1x96x128xbf16>
    %6 = vector.shape_cast %5 : vector<1x96x128xbf16> to vector<96x128xbf16>
    %cst = arith.constant dense<0.000000e+00> : vector<288x128xf32>
    %7 = tpu.matmul %4, %6, %cst {dimension_numbers = #tpu.dot_dimension_numbers<[1], [0], [0], [1], [0, 0, 1, 1], [], []>} : vector<288x96xbf16>, vector<96x128xbf16>, vector<288x128xf32> -> vector<288x128xf32>
    %c16_i32 = arith.constant 16 : i32
    %8 = arith.addi %0, %c16_i32 : i32
    %9 = tpu.assume_multiple %8, 8 : i32
    %10 = arith.index_cast %9 : i32 to index
    %c0_3 = arith.constant 0 : index
    %11 = vector.load %arg1[%10, %c0_3] : memref<608x96xbf16, #tpu.memory_space<vmem>>, vector<288x96xbf16>
    %c1 = arith.constant 1 : index
    %c0_4 = arith.constant 0 : index
    %c0_5 = arith.constant 0 : index
    %12 = vector.load %arg2[%c1, %c0_4, %c0_5] : memref<3x96x128xbf16, #tpu.memory_space<vmem>>, vector<1x96x128xbf16>
    %13 = vector.shape_cast %12 : vector<1x96x128xbf16> to vector<96x128xbf16>
    %cst_6 = arith.constant dense<0.000000e+00> : vector<288x128xf32>
    %14 = tpu.matmul %11, %13, %cst_6 {dimension_numbers = #tpu.dot_dimension_numbers<[1], [0], [0], [1], [0, 0, 1, 1], [], []>} : vector<288x96xbf16>, vector<96x128xbf16>, vector<288x128xf32> -> vector<288x128xf32>
    %15 = arith.addf %7, %14 : vector<288x128xf32>
    %c32_i32 = arith.constant 32 : i32
    %16 = arith.addi %0, %c32_i32 : i32
    %17 = tpu.assume_multiple %16, 8 : i32
    %18 = arith.index_cast %17 : i32 to index
    %c0_7 = arith.constant 0 : index
    %19 = vector.load %arg1[%18, %c0_7] : memref<608x96xbf16, #tpu.memory_space<vmem>>, vector<288x96xbf16>
    %c2 = arith.constant 2 : index
    %c0_8 = arith.constant 0 : index
    %c0_9 = arith.constant 0 : index
    %20 = vector.load %arg2[%c2, %c0_8, %c0_9] : memref<3x96x128xbf16, #tpu.memory_space<vmem>>, vector<1x96x128xbf16>
    %21 = vector.shape_cast %20 : vector<1x96x128xbf16> to vector<96x128xbf16>
    %cst_10 = arith.constant dense<0.000000e+00> : vector<288x128xf32>
    %22 = tpu.matmul %19, %21, %cst_10 {dimension_numbers = #tpu.dot_dimension_numbers<[1], [0], [0], [1], [0, 0, 1, 1], [], []>} : vector<288x96xbf16>, vector<96x128xbf16>, vector<288x128xf32> -> vector<288x128xf32>
    %23 = arith.addf %15, %22 : vector<288x128xf32>
    %c0_11 = arith.constant 0 : index
    %c0_12 = arith.constant 0 : index
    %24 = vector.load %arg3[%c0_11, %c0_12] : memref<1x128xf32, #tpu.memory_space<vmem>>, vector<1x128xf32>
    %25 = vector.broadcast %24 : vector<1x128xf32> to vector<288x128xf32>
    %26 = arith.addf %23, %25 : vector<288x128xf32>
    %cst_13 = arith.constant 0.000000e+00 : f32
    %27 = vector.broadcast %cst_13 : f32 to vector<288x128xf32>
    %28 = arith.maximumf %26, %27 : vector<288x128xf32>
    %29 = arith.truncf %28 : vector<288x128xf32> to vector<288x128xbf16>
    %c0_14 = arith.constant 0 : index
    %c0_15 = arith.constant 0 : index
    %30 = vector.load %arg4[%c0_14, %c0_15] : memref<288x128xbf16, #tpu.memory_space<vmem>>, vector<288x128xbf16>
    tpu.vector_store %arg4[%c0_14, %c0_15], %29 {strides = array<i32>} : memref<288x128xbf16, #tpu.memory_space<vmem>>, vector<288x128xbf16>,
    return
  }
  func.func @transform_0(%arg0: i32) -> (i32, i32) {
    %c0_i32 = arith.constant 0 : i32
    %c0_i32_0 = arith.constant 0 : i32
    %c0_i32_1 = arith.constant 0 : i32
    return %c0_i32, %c0_i32_0 : i32, i32
  }
  func.func @transform_1(%arg0: i32) -> (i32, i32, i32) {
    %c0_i32 = arith.constant 0 : i32
    %c0_i32_0 = arith.constant 0 : i32
    %c0_i32_1 = arith.constant 0 : i32
    %c0_i32_2 = arith.constant 0 : i32
    return %c0_i32, %c0_i32_0, %c0_i32_1 : i32, i32, i32
  }
  func.func @transform_2(%arg0: i32) -> (i32, i32) {
    %c0_i32 = arith.constant 0 : i32
    %c0_i32_0 = arith.constant 0 : i32
    %c0_i32_1 = arith.constant 0 : i32
    return %c0_i32, %c0_i32_0 : i32, i32
  }
  func.func @transform_3(%arg0: i32) -> (i32, i32) {
    %c0_i32 = arith.constant 0 : i32
    %c0_i32_0 = arith.constant 0 : i32
    return %arg0, %c0_i32 : i32, i32
  }
}

module attributes {stable_mosaic.version = 11 : i64} {
  func.func @_deconv_final_kernel(%arg0: i32, %arg1: memref<3136x96xbf16, #tpu.memory_space<vmem>>, %arg2: memref<3x96x128xbf16, #tpu.memory_space<vmem>>, %arg3: memref<1x128xf32, #tpu.memory_space<vmem>>, %arg4: memref<128x128xbf16, #tpu.memory_space<vmem>>, %arg5: memref<1x128xf32, #tpu.memory_space<vmem>>, %arg6: memref<1024x128xf32, #tpu.memory_space<vmem>>) attributes {dimension_semantics = [#tpu.dimension_semantics<parallel>], iteration_bounds = array<i64: 3>, scalar_prefetch = 0 : i64, scratch_operands = 0 : i64, tpu.core_type = #tpu.core_type<tc>, window_params = [{pipeline_mode = #tpu.pipeline_mode<synchronous>, transform_indices = @transform_0, window_bounds = array<i64: 3136, 96>}, {pipeline_mode = #tpu.pipeline_mode<synchronous>, transform_indices = @transform_1, window_bounds = array<i64: 3, 96, 128>}, {pipeline_mode = #tpu.pipeline_mode<synchronous>, transform_indices = @transform_2, window_bounds = array<i64: 1, 128>}, {pipeline_mode = #tpu.pipeline_mode<synchronous>, transform_indices = @transform_3, window_bounds = array<i64: 128, 128>}, {pipeline_mode = #tpu.pipeline_mode<synchronous>, transform_indices = @transform_4, window_bounds = array<i64: 1, 128>}, {transform_indices = @transform_5, window_bounds = array<i64: 1024, 128>}]} {
    %c1024_i32 = arith.constant 1024 : i32
    %0 = arith.muli %arg0, %c1024_i32 : i32
    %c0_i32 = arith.constant 0 : i32
    %1 = arith.addi %0, %c0_i32 : i32
    %2 = tpu.assume_multiple %1, 8 : i32
    %3 = arith.index_cast %2 : i32 to index
    %c0 = arith.constant 0 : index
    %4 = vector.load %arg1[%3, %c0] : memref<3136x96xbf16, #tpu.memory_space<vmem>>, vector<1024x96xbf16>
    %c0_0 = arith.constant 0 : index
    %c0_1 = arith.constant 0 : index
    %c0_2 = arith.constant 0 : index
    %5 = vector.load %arg2[%c0_0, %c0_1, %c0_2] : memref<3x96x128xbf16, #tpu.memory_space<vmem>>, vector<1x96x128xbf16>
    %6 = vector.shape_cast %5 : vector<1x96x128xbf16> to vector<96x128xbf16>
    %cst = arith.constant dense<0.000000e+00> : vector<1024x128xf32>
    %7 = tpu.matmul %4, %6, %cst {dimension_numbers = #tpu.dot_dimension_numbers<[1], [0], [0], [1], [0, 0, 1, 1], [], []>} : vector<1024x96xbf16>, vector<96x128xbf16>, vector<1024x128xf32> -> vector<1024x128xf32>
    %c32_i32 = arith.constant 32 : i32
    %8 = arith.addi %0, %c32_i32 : i32
    %9 = tpu.assume_multiple %8, 8 : i32
    %10 = arith.index_cast %9 : i32 to index
    %c0_3 = arith.constant 0 : index
    %11 = vector.load %arg1[%10, %c0_3] : memref<3136x96xbf16, #tpu.memory_space<vmem>>, vector<1024x96xbf16>
    %c1 = arith.constant 1 : index
    %c0_4 = arith.constant 0 : index
    %c0_5 = arith.constant 0 : index
    %12 = vector.load %arg2[%c1, %c0_4, %c0_5] : memref<3x96x128xbf16, #tpu.memory_space<vmem>>, vector<1x96x128xbf16>
    %13 = vector.shape_cast %12 : vector<1x96x128xbf16> to vector<96x128xbf16>
    %cst_6 = arith.constant dense<0.000000e+00> : vector<1024x128xf32>
    %14 = tpu.matmul %11, %13, %cst_6 {dimension_numbers = #tpu.dot_dimension_numbers<[1], [0], [0], [1], [0, 0, 1, 1], [], []>} : vector<1024x96xbf16>, vector<96x128xbf16>, vector<1024x128xf32> -> vector<1024x128xf32>
    %15 = arith.addf %7, %14 : vector<1024x128xf32>
    %c64_i32 = arith.constant 64 : i32
    %16 = arith.addi %0, %c64_i32 : i32
    %17 = tpu.assume_multiple %16, 8 : i32
    %18 = arith.index_cast %17 : i32 to index
    %c0_7 = arith.constant 0 : index
    %19 = vector.load %arg1[%18, %c0_7] : memref<3136x96xbf16, #tpu.memory_space<vmem>>, vector<1024x96xbf16>
    %c2 = arith.constant 2 : index
    %c0_8 = arith.constant 0 : index
    %c0_9 = arith.constant 0 : index
    %20 = vector.load %arg2[%c2, %c0_8, %c0_9] : memref<3x96x128xbf16, #tpu.memory_space<vmem>>, vector<1x96x128xbf16>
    %21 = vector.shape_cast %20 : vector<1x96x128xbf16> to vector<96x128xbf16>
    %cst_10 = arith.constant dense<0.000000e+00> : vector<1024x128xf32>
    %22 = tpu.matmul %19, %21, %cst_10 {dimension_numbers = #tpu.dot_dimension_numbers<[1], [0], [0], [1], [0, 0, 1, 1], [], []>} : vector<1024x96xbf16>, vector<96x128xbf16>, vector<1024x128xf32> -> vector<1024x128xf32>
    %23 = arith.addf %15, %22 : vector<1024x128xf32>
    %c0_11 = arith.constant 0 : index
    %c0_12 = arith.constant 0 : index
    %24 = vector.load %arg3[%c0_11, %c0_12] : memref<1x128xf32, #tpu.memory_space<vmem>>, vector<1x128xf32>
    %25 = vector.broadcast %24 : vector<1x128xf32> to vector<1024x128xf32>
    %26 = arith.addf %23, %25 : vector<1024x128xf32>
    %cst_13 = arith.constant 0.000000e+00 : f32
    %27 = vector.broadcast %cst_13 : f32 to vector<1024x128xf32>
    %28 = arith.maximumf %26, %27 : vector<1024x128xf32>
    %29 = arith.truncf %28 : vector<1024x128xf32> to vector<1024x128xbf16>
    %c0_14 = arith.constant 0 : index
    %c0_15 = arith.constant 0 : index
    %30 = vector.load %arg4[%c0_14, %c0_15] : memref<128x128xbf16, #tpu.memory_space<vmem>>, vector<128x128xbf16>
    %cst_16 = arith.constant dense<0.000000e+00> : vector<1024x128xf32>
    %31 = tpu.matmul %29, %30, %cst_16 {dimension_numbers = #tpu.dot_dimension_numbers<[1], [0], [0], [1], [0, 0, 1, 1], [], []>} : vector<1024x128xbf16>, vector<128x128xbf16>, vector<1024x128xf32> -> vector<1024x128xf32>
    %c0_17 = arith.constant 0 : index
    %c0_18 = arith.constant 0 : index
    %32 = vector.load %arg5[%c0_17, %c0_18] : memref<1x128xf32, #tpu.memory_space<vmem>>, vector<1x128xf32>
    %33 = vector.broadcast %32 : vector<1x128xf32> to vector<1024x128xf32>
    %34 = arith.addf %31, %33 : vector<1024x128xf32>
    %c0_19 = arith.constant 0 : index
    %c0_20 = arith.constant 0 : index
    %35 = vector.load %arg6[%c0_19, %c0_20] : memref<1024x128xf32, #tpu.memory_space<vmem>>, vector<1024x128xf32>
    tpu.vector_store %arg6[%c0_19, %c0_20], %34 {strides = array<i32>} : memref<1024x128xf32, #tpu.memory_space<vmem>>, vector<1024x128xf32>,
    return
  }
  func.func @transform_0(%arg0: i32) -> (i32, i32) {
    %c0_i32 = arith.constant 0 : i32
    %c0_i32_0 = arith.constant 0 : i32
    %c0_i32_1 = arith.constant 0 : i32
    return %c0_i32, %c0_i32_0 : i32, i32
  }
  func.func @transform_1(%arg0: i32) -> (i32, i32, i32) {
    %c0_i32 = arith.constant 0 : i32
    %c0_i32_0 = arith.constant 0 : i32
    %c0_i32_1 = arith.constant 0 : i32
    %c0_i32_2 = arith.constant 0 : i32
    return %c0_i32, %c0_i32_0, %c0_i32_1 : i32, i32, i32
  }
  func.func @transform_2(%arg0: i32) -> (i32, i32) {
    %c0_i32 = arith.constant 0 : i32
    %c0_i32_0 = arith.constant 0 : i32
    %c0_i32_1 = arith.constant 0 : i32
    return %c0_i32, %c0_i32_0 : i32, i32
  }
  func.func @transform_3(%arg0: i32) -> (i32, i32) {
    %c0_i32 = arith.constant 0 : i32
    %c0_i32_0 = arith.constant 0 : i32
    %c0_i32_1 = arith.constant 0 : i32
    return %c0_i32, %c0_i32_0 : i32, i32
  }
  func.func @transform_4(%arg0: i32) -> (i32, i32) {
    %c0_i32 = arith.constant 0 : i32
    %c0_i32_0 = arith.constant 0 : i32
    %c0_i32_1 = arith.constant 0 : i32
    return %c0_i32, %c0_i32_0 : i32, i32
  }
  func.func @transform_5(%arg0: i32) -> (i32, i32) {
    %c0_i32 = arith.constant 0 : i32
    %c0_i32_0 = arith.constant 0 : i32
    return %arg0, %c0_i32 : i32, i32
  }
}

</mosaic_0001>

<bundles_post_ra>
// kernel: heatmap3d_head_forward.3
= control target key start
LH: loop header
LB: loop body
LE: loop exit
PB: predicated region body
PF: predicated region fallthrough
CT: control target
= control target key end

     0   :  { %8 = vsyncpa [#allocation3], 0  ;;  %s1385_s0 = inlined_call_operand.vmem [shape: bf16[176,48], index: 0, kind: input, shape index: {}]   ;;  %s1386_s1 = inlined_call_operand.hbm [shape: bf16[3,48,128], index: 1, kind: input, shape index: {}]   ;;  %s1387_s2 = inlined_call_operand.hbm [shape: f32[1,128], index: 2, kind: input, shape index: {}]   ;;  %s1388_s3 = inlined_call_operand.vmem [shape: bf16[160,128], index: 3, kind: output, shape index: {}]  }
   0x1   :  { %9 = vsyncpa [#allocation5], 0  ;;  %s1165_s12 = smov 0  }
   0x2 LB: > { %s1171_s13 = sadd.s32 4294967295, %s1137_s12   ;;  %p801_p0 = scmp.ge.s32.totalorder %s1137_s12, 1  ;;  %s1137_s12 = sphi %s1165_s12, %s15_s12  }
   0x3   : > { %p109_p1 = scmp.lt.s32.totalorder %s1137_s12, 3  ;;  %s1139_s14 = smov [#allocation2]  }
   0x4   : > { %s124_s15 = sshll.u32 %s1139_s14, 4  ;;  %p1389_p3 = scmp.eq.s32.totalorder %s1171_s13, 0  ;;  %s125_s15 = int_to_ptr.vmem [resolvable:$true] %s124_s15 }
   0x5   : > { %p1175_p2 = pnand %p801_p0, %p109_p1  ;;  %s1140_s17 = smov [#allocation4]  }
   0x6   : > { %s138_s18 = sshll.u32 %s1140_s17, 4  ;;  %s1067_s22 = scalar_lea.hbm %s1386_s1, 1152  ;;  %s1188_s18 = int_to_ptr.vmem [resolvable:$true] %s138_s18 }
   0x7   : > { %s1391_s16 = scalar_select %p1175_p2, 1, 0 }
   0x8   : > { %p1018_p4 = pneg %p1175_p2  ;;  %p1068_p6 = scmp.ne.s32.totalorder %s1386_s1, %s1067_s22 }
   0x9   : > { %p1074_p10 = scmp.lt.u32.totalorder %s1067_s22, %s1386_s1 }
   0xa   : > { %p1184_p5 = pnand %p1389_p3, %p1018_p4 }
   0xc   : > { %p1069_p7 = pneg %p1184_p5 }
   0xe   : > { %p1070_p8 = pnand %p1069_p7, %p1068_p6 }
  0x10   : > { %p1071_p9 = pneg %p1070_p8 }
  0x12   : > { %p1076_p11 = pnand %p1074_p10, %p1071_p9 }
  0x14   : > { %1079 = shalt.err (!%p1076_p11)
}
  0x15   : > { %s1080_s27 = scalar_lea.vmem %s125_s15, 1152  ;;  %p1088_p1 = scmp.lt.s32.totalorder %s125_s15, %s125_s15 }
  0x16   : > { %p1081_p12 = scmp.ne.s32.totalorder %s125_s15, %s1080_s27  ;;  %p1089_p4 = scmp.lt.s32.totalorder %s1080_s27, %s1080_s27 }
  0x18   : > { %p1083_p13 = pnand %p1081_p12, %p1069_p7  ;;  %p1090_p3 = por %p1089_p4, %p1088_p1 }
  0x1a   : > { %p1084_p0 = pneg %p1083_p13 }
  0x1c   : > { %p1091_p2 = pnand %p1090_p3, %p1084_p0 }
  0x1e   : > { %1094 = shalt.err (!%p1091_p2)
}
  0x1f   : > { %s1141_s28 = smov 64   ;;  %s1142_s29 = smov 4  }
  0x20   : > { %1021 = dma.hbm_to_vmem [thread:$0]  (!%p1184_p5), %s1386_s1, 1152, %s125_s15, [#allocation3], %s1141_s28, %s1141_s28, %s1142_s29  }
  0x21   : > { %s1095_s7 = scalar_lea.hbm %s1387_s2, 16 }
  0x22   : > { %p1096_p6 = scmp.ne.s32.totalorder %s1387_s2, %s1095_s7  ;;  %p1102_p8 = scmp.lt.u32.totalorder %s1095_s7, %s1387_s2 }
  0x24   : > { %p1098_p2 = pnand %p1096_p6, %p1069_p7 }
  0x26   : > { %p1099_p3 = pneg %p1098_p2 }
  0x28   : > { %p1104_p9 = pnand %p1102_p8, %p1099_p3 }
  0x2a   : > { %1107 = shalt.err (!%p1104_p9)
}
  0x2b   : > { %s1108_s14 = scalar_lea.vmem %s1188_s18, 16  ;;  %s1115_s15 = scalar_lea.vmem %s1188_s18, 32 }
  0x2c   : > { %p1109_p10 = scmp.ne.s32.totalorder %s1188_s18, %s1108_s14  ;;  %p1116_p13 = scmp.lt.s32.totalorder %s1188_s18, %s1188_s18 }
  0x2d   : > { %p1117_p0 = scmp.lt.s32.totalorder %s1115_s15, %s1108_s14 }
  0x2e   : > { %p1111_p11 = pnand %p1109_p10, %p1069_p7 }
  0x2f   : > { %p1118_p1 = por %p1117_p0, %p1116_p13 }
  0x30   : > { %p1112_p12 = pneg %p1111_p11 }
  0x32   : > { %p1119_p4 = pnand %p1118_p1, %p1112_p12 }
  0x34   : > { %1122 = shalt.err (!%p1119_p4)
}
  0x35   : > { %1024 = dma.hbm_to_vmem [thread:$0]  (!%p1184_p5), %s1387_s2, 16, %s1188_s18, [#allocation5]  }
  0x36   : > { %p1393_p6 = scmp.ne.s32.totalorder %s1391_s16, 0 }
  0x37   : > { %p1394_p7 = scmp.eq.s32.totalorder (!%p1393_p6), %s1171_s13, 0 }
  0x38   : > { %151 = sbr.rel (%p1393_p6) target bundleno = 363 (0x16b), region = 32 }
  0x3f   : > { %1128 = dma.done.wait (%p1394_p7), [#allocation3], 1152   ;;  %p1395_p2 = pmov %p1394_p7 }
  0x41   : > { %1130 = vsyncadd (%p1395_p2), [#allocation3], 4294966144  ;;  %p1396_p3 = pmov %p1395_p2 }
  0x42   : > { %p1397_p8 = pmov %p1395_p2 }
  0x43   : > { %1132 = dma.done.wait (%p1396_p3), [#allocation5], 16  }
  0x44   : > { %1134 = vsyncadd (%p1397_p8), [#allocation5], 4294967280  ;;  %s1249_s19 = smul.u32 80, %s1171_s13  ;;  %v1143_v0 = vmov 0.0   ;;  %vm1144_vm0 = vmmov 0   ;;  %v1043_v1 = vld [vmem:[#allocation2 + $0x18] sm:$0xff]  }
  0x45   : > { %1004 = vmatprep.subr.bf16.mxu1 %v1143_v0  ;;  %926 = vmatprep.subr.bf16.mxu0 %v1143_v0  ;;  %v1044_v2 = vld [vmem:[#allocation2 + $0x20] sm:$0xff]   ;;  %v1045_v3 = vld [vmem:[#allocation2 + $0x28] sm:$0xff]   ;;  %vm267_vm1 = vcmask 392192   ;;  %v1051_v7 = vld [vmem:[#allocation2 + $0x30] sm:$0xff]   ;;  %s174_s9 = smul.u32 10, %s1171_s13 }
  0x46   : > { %940 = vmatprep.mubr.msk.bf16.mxu1 %vm1144_vm0, %v1143_v0  ;;  %s202_s16 = sadd.s32 8, %s1249_s19  ;;  %932 = vmatprep.mubr.msk.bf16.mxu0 %vm1144_vm0, %v1143_v0  ;;  %s487_s25 = sadd.s32 16, %s1249_s19  ;;  %v1047_v6 = vld [vmem:[#allocation2] sm:$0xff]   ;;  %v1050_v8 = vld [vmem:[#allocation2 + $0x8] sm:$0xff]   ;;  %v1055_v9 = vld [vmem:[#allocation2 + $0x38] sm:$0xff]  }
  0x47   : > { %s203_s18 = sshra.s32 %s202_s16, 3  ;;  %1007 = vmatpush3.bf16.msra.mxu1 %v1043_v1  ;;  %927 = vmatpush3.bf16.msra.mxu0 %v1043_v1  ;;  %s182_s26 = sshra.s32 %s1249_s19, 3  ;;  %v1054_v12 = vld [vmem:[#allocation2 + $0x10] sm:$0xff]   ;;  %v1056_v13 = vld [vmem:[#allocation2 + $0x40] sm:$0xff]   ;;  %v1354_v54 = vld [vmem:[#allocation4] ss:$0 sm:$0xff] }
  0x48   : > { %s809_s21 = sshll.u32 %s203_s18, 2  ;;  %1005 = vmatprep.subr.bf16.mxu1 %v1143_v0  ;;  %928 = vmatprep.subr.bf16.mxu0 %v1143_v0  ;;  %s488_s27 = sshra.s32 %s487_s25, 3 }
  0x49   : > { %s1261_s24 = scalar_lea.vmem %s1385_s0, %s809_s21  ;;  %s808_s28 = sshll.u32 %s182_s26, 2 }
  0x4a   : > { %v1046_v4 = vld [vmem:[%s1261_s24 + $0x10] sm:$0xff]   ;;  %v1048_v5 = vld [vmem:[%s1261_s24] sm:$0xff]   ;;  %s836_s29 = sshll.u32 %s488_s27, 2  ;;  %s1278_s5 = scalar_lea.vmem %s1385_s0, %s808_s28  ;;  %v1049_v10 = vld [vmem:[%s1261_s24 + $0x18] sm:$0xff]  }
  0x4b   : > { %1008 = vmatpush3.bf16.msra.mxu1 %v1044_v2  ;;  %929 = vmatpush3.bf16.msra.mxu0 %v1044_v2  ;;  %s1285_s8 = scalar_lea.vmem %s1385_s0, %s836_s29  ;;  %v1052_v11 = vld [vmem:[%s1261_s24 + $0x8] sm:$0xff]   ;;  %v1053_v14 = vld [vmem:[%s1261_s24 + $0x20] sm:$0xff]   ;;  %v1061_v20 = vld [vmem:[%s1278_s5 + $0x10] sm:$0xff]   ;;  %p175_p5 = scmp.lt.s32.totalorder %s174_s9, 19 }
  0x4c   : > { %1006 = vmatprep.subr.bf16.mxu1 %v1143_v0  ;;  %930 = vmatprep.subr.bf16.mxu0 %v1143_v0  ;;  %v1058_v15 = vld [vmem:[%s1285_s8] sm:$0xff]   ;;  %v1060_v17 = vld [vmem:[%s1285_s8 + $0x8] sm:$0xff]   ;;  %v1062_v19 = vld [vmem:[%s1285_s8 + $0x10] sm:$0xff]  }
  0x4d   : > { %v1057_v16 = vld [vmem:[%s1278_s5] sm:$0xff]   ;;  %v1059_v18 = vld [vmem:[%s1278_s5 + $0x8] sm:$0xff]   ;;  %v1064_v21 = vld [vmem:[%s1285_s8 + $0x18] sm:$0xff]   ;;  %s1399_s9 = smov (!%p175_p5, %s174_s9), 19 }
  0x4e   : > { %v1063_v22 = vld [vmem:[%s1278_s5 + $0x18] sm:$0xff]   ;;  %v1066_v23 = vld [vmem:[%s1285_s8 + $0x20] sm:$0xff]   ;;  %s807_s13 = sshll.u32 %s1399_s9, 2 }
  0x4f   : > { %1009 = vmatpush3.bf16.msra.mxu1 %v1045_v3  ;;  %931 = vmatpush3.bf16.msra.mxu0 %v1045_v3  ;;  %v1065_v24 = vld [vmem:[%s1278_s5 + $0x20] sm:$0xff]   ;;  %s1361_s14 = scalar_lea.vmem %s1388_s3, %s807_s13 }
  0x50   : > { %952 = vmatprep.subr.bf16.mxu1 %v1143_v0  ;;  %978 = vmatprep.subr.bf16.mxu0 %v1143_v0 }
  0x52   : > { %941 = vmatmul.mubr.msk.bf16.vlgmr.msra.gmra.mrb[0].mxu1 %vm267_vm1, %v1046_v4  ;;  %933 = vmatmul.mubr.msk.bf16.vlgmr.msra.gmra.mrb[0].mxu0 %vm267_vm1, %v1048_v5 }
  0x53   : > { %953 = vmatpush3.bf16.msra.mxu1 %v1047_v6  ;;  %944 = vmatprep.mubr.msk.bf16.mxu1 %vm1144_vm0, %v1143_v0 }
  0x54   : > { %954 = vmatprep.subr.bf16.mxu1 %v1143_v0  ;;  %979 = vmatpush3.bf16.msra.mxu0 %v1051_v7 }
  0x55   : > { %936 = vmatprep.mubr.msk.bf16.mxu0 %vm1144_vm0, %v1143_v0  ;;  %980 = vmatprep.subr.bf16.mxu0 %v1143_v0 }
  0x57   : > { %955 = vmatpush3.bf16.msra.mxu1 %v1050_v8 }
  0x58   : > { %956 = vmatprep.subr.bf16.mxu1 %v1143_v0  ;;  %981 = vmatpush3.bf16.msra.mxu0 %v1055_v9 }
  0x59   : > { %982 = vmatprep.subr.bf16.mxu0 %v1143_v0 }
  0x5a   : > { %945 = vmatmul.mubr.msk.bf16.gmra.mrb[4].mxu1 %vm267_vm1, %v1049_v10  ;;  %937 = vmatmul.mubr.msk.bf16.gmra.mrb[4].mxu0 %vm267_vm1, %v1052_v11 }
  0x5b   : > { %948 = vmatprep.mubr.msk.bf16.mxu1 %vm1144_vm0, %v1143_v0  ;;  %957 = vmatpush3.bf16.msra.mxu1 %v1054_v12 }
  0x5c   : > { %983 = vmatpush3.bf16.msra.mxu0 %v1056_v13  ;;  %984 = vmatprep.mubr.msk.bf16.mxu0 %vm1144_vm0, %v1143_v0 }
  0x62   : > { %949 = vmatmul.mubr.msk.bf16.gmra.mrb[8].mxu1 %vm267_vm1, %v1053_v14  ;;  %985 = vmatmul.mubr.msk.bf16.vlgmr.msra.gmra.mrb[8].mxu0 %vm267_vm1, %v1058_v15 }
  0x63   : > { %958 = vmatprep.mubr.msk.bf16.mxu1 %vm1144_vm0, %v1143_v0  ;;  %988 = vmatprep.mubr.msk.bf16.mxu0 %vm1144_vm0, %v1143_v0 }
  0x6a   : > { %959 = vmatmul.mubr.msk.bf16.vlgmr.msra.gmra.mrb[12].mxu1 %vm267_vm1, %v1057_v16  ;;  %989 = vmatmul.mubr.msk.bf16.gmra.mrb[12].mxu0 %vm267_vm1, %v1060_v17 }
  0x6b   : > { %962 = vmatprep.mubr.msk.bf16.mxu1 %vm1144_vm0, %v1143_v0  ;;  %992 = vmatprep.mubr.msk.bf16.mxu0 %vm1144_vm0, %v1143_v0 }
  0x72   : > { %963 = vmatmul.mubr.msk.bf16.gmra.mrb[16].mxu1 %vm267_vm1, %v1059_v18  ;;  %993 = vmatmul.mubr.msk.bf16.gmra.mrb[16].mxu0 %vm267_vm1, %v1062_v19 }
  0x73   : > { %966 = vmatprep.mubr.msk.bf16.mxu1 %vm1144_vm0, %v1143_v0  ;;  %996 = vmatprep.mubr.msk.bf16.mxu0 %vm1144_vm0, %v1143_v0 }
  0x7a   : > { %967 = vmatmul.mubr.msk.bf16.gmra.mrb[20].mxu1 %vm267_vm1, %v1061_v20  ;;  %997 = vmatmul.mubr.msk.bf16.gmra.mrb[20].mxu0 %vm267_vm1, %v1064_v21 }
  0x7b   : > { %970 = vmatprep.mubr.msk.bf16.mxu1 %vm1144_vm0, %v1143_v0  ;;  %1000 = vmatprep.mubr.msk.bf16.mxu0 %vm1144_vm0, %v1143_v0 }
  0x82   : > { %971 = vmatmul.mubr.msk.bf16.gmra.mrb[24].mxu1 %vm267_vm1, %v1063_v22  ;;  %1001 = vmatmul.mubr.msk.bf16.gmra.mrb[24].mxu0 %vm267_vm1, %v1066_v23 }
  0x83   : > { %974 = vmatprep.mubr.msk.bf16.mxu1 %vm1144_vm0, %v1143_v0 }
  0x8a   : > { %975 = vmatmul.mubr.msk.bf16.gmra.mrb[28].mxu1 %vm267_vm1, %v1065_v24 }
 0x125   : > { %v1341_v25 = vpop.f32.mrb[0].mxu1  ;;  %v317_v26 = vpop.f32.mrb[0].mxu0 }
 0x126   : > { %v942_v27 = vpop.f32.mrb[1].mxu1  ;;  %v934_v28 = vpop.f32.mrb[1].mxu0 }
 0x127   : > { %v1343_v29 = vpop.f32.mrb[2].mxu1  ;;  %v320_v30 = vpop.f32.mrb[2].mxu0 }
 0x128   : > { %v943_v31 = vpop.f32.mrb[3].mxu1  ;;  %v935_v32 = vpop.f32.mrb[3].mxu0 }
 0x12d   : > { %v1345_v33 = vpop.f32.mrb[4].mxu1  ;;  %v325_v34 = vpop.f32.mrb[4].mxu0 }
 0x12e   : > { %v946_v35 = vpop.f32.mrb[5].mxu1  ;;  %v938_v36 = vpop.f32.mrb[5].mxu0 }
 0x12f   : > { %v1347_v37 = vpop.f32.mrb[6].mxu1  ;;  %v328_v38 = vpop.f32.mrb[6].mxu0 }
 0x130   : > { %v947_v39 = vpop.f32.mrb[7].mxu1  ;;  %v939_v40 = vpop.f32.mrb[7].mxu0 }
 0x135   : > { %v1349_v41 = vpop.f32.mrb[8].mxu1  ;;  %v601_v42 = vpop.f32.mrb[8].mxu0 }
 0x136   : > { %v950_v43 = vpop.f32.mrb[9].mxu1  ;;  %v986_v44 = vpop.f32.mrb[9].mxu0 }
 0x137   : > { %v1351_v45 = vpop.f32.mrb[10].mxu1  ;;  %v604_v46 = vpop.f32.mrb[10].mxu0 }
 0x138   : > { %v951_v47 = vpop.f32.mrb[11].mxu1  ;;  %v987_v48 = vpop.f32.mrb[11].mxu0 }
 0x13d   : > { %v448_v49 = vpop.f32.mrb[12].mxu1  ;;  %v609_v50 = vpop.f32.mrb[12].mxu0 }
 0x13e   : > { %v449_v51 = vadd.f32 %v448_v49, %v317_v26  ;;  %v960_v52 = vpop.f32.mrb[13].mxu1  ;;  %v990_v53 = vpop.f32.mrb[13].mxu0 }
 0x13f   : > { %v451_v55 = vpop.f32.mrb[14].mxu1  ;;  %v612_v56 = vpop.f32.mrb[14].mxu0 }
 0x140   : > { %v640_v57 = vadd.f32 %v601_v42, %v449_v51  ;;  %v452_v58 = vadd.f32 %v451_v55, %v320_v30  ;;  %v961_v59 = vpop.f32.mrb[15].mxu1  ;;  %v991_v60 = vpop.f32.mrb[15].mxu0 }
 0x142   : > { %v657_v61 = vadd.f32 %v1354_v54, %v640_v57  ;;  %v641_v62 = vadd.f32 %v604_v46, %v452_v58 }
 0x144   : > { %v658_v63 = vadd.f32 %v1354_v54, %v641_v62  ;;  %v667_v2 = vmax.f32 %v657_v61, 0.0 }
 0x145   : > { %v456_v0 = vpop.f32.mrb[16].mxu1  ;;  %v617_v1 = vpop.f32.mrb[16].mxu0 }
 0x146   : > { %v668_v3 = vmax.f32 %v658_v63, 0.0  ;;  %v457_v4 = vadd.f32 %v456_v0, %v325_v34  ;;  %v964_v5 = vpop.f32.mrb[17].mxu1  ;;  %v994_v6 = vpop.f32.mrb[17].mxu0 }
 0x147   : > { %v459_v7 = vpop.f32.mrb[18].mxu1  ;;  %v620_v8 = vpop.f32.mrb[18].mxu0 }
 0x148   : > { %v876_v9 = vpack.c.bf16 %v668_v3, %v667_v2  ;;  %v642_v10 = vadd.f32 %v609_v50, %v457_v4  ;;  %v460_v11 = vadd.f32 %v459_v7, %v328_v38  ;;  %v965_v12 = vpop.f32.mrb[19].mxu1  ;;  %v995_v13 = vpop.f32.mrb[19].mxu0 }
 0x14a   : > { %877 = vst [vmem:[%s1361_s14] sm:$0xff] %v876_v9   ;;  %v659_v14 = vadd.f32 %v1354_v54, %v642_v10  ;;  %v643_v15 = vadd.f32 %v612_v56, %v460_v11 }
 0x14c   : > { %v660_v16 = vadd.f32 %v1354_v54, %v643_v15  ;;  %v669_v19 = vmax.f32 %v659_v14, 0.0 }
 0x14d   : > { %v464_v17 = vpop.f32.mrb[20].mxu1  ;;  %v625_v18 = vpop.f32.mrb[20].mxu0 }
 0x14e   : > { %v670_v20 = vmax.f32 %v660_v16, 0.0  ;;  %v465_v21 = vadd.f32 %v464_v17, %v1341_v25  ;;  %v968_v22 = vpop.f32.mrb[21].mxu1  ;;  %v998_v23 = vpop.f32.mrb[21].mxu0 }
 0x14f   : > { %v467_v24 = vpop.f32.mrb[22].mxu1  ;;  %v628_v26 = vpop.f32.mrb[22].mxu0 }
 0x150   : > { %v881_v27 = vpack.c.bf16 %v670_v20, %v669_v19  ;;  %v644_v28 = vadd.f32 %v617_v1, %v465_v21  ;;  %v468_v30 = vadd.f32 %v467_v24, %v1343_v29  ;;  %v969_v31 = vpop.f32.mrb[23].mxu1  ;;  %v999_v32 = vpop.f32.mrb[23].mxu0 }
 0x152   : > { %898 = vst [vmem:[%s1361_s14 + $0x8] sm:$0xff] %v881_v27   ;;  %v661_v34 = vadd.f32 %v1354_v54, %v644_v28  ;;  %v645_v35 = vadd.f32 %v620_v8, %v468_v30 }
 0x154   : > { %v662_v36 = vadd.f32 %v1354_v54, %v645_v35  ;;  %v671_v25 = vmax.f32 %v661_v34, 0.0 }
 0x155   : > { %v472_v38 = vpop.f32.mrb[24].mxu1  ;;  %v633_v39 = vpop.f32.mrb[24].mxu0 }
 0x156   : > { %v672_v40 = vmax.f32 %v662_v36, 0.0  ;;  %v473_v42 = vadd.f32 %v472_v38, %v1345_v33  ;;  %v972_v43 = vpop.f32.mrb[25].mxu1  ;;  %v1002_v44 = vpop.f32.mrb[25].mxu0 }
 0x157   : > { %v475_v46 = vpop.f32.mrb[26].mxu1  ;;  %v636_v47 = vpop.f32.mrb[26].mxu0 }
 0x158   : > { %v886_v29 = vpack.c.bf16 %v672_v40, %v671_v25  ;;  %v646_v48 = vadd.f32 %v625_v18, %v473_v42  ;;  %v476_v49 = vadd.f32 %v475_v46, %v1347_v37  ;;  %v973_v50 = vpop.f32.mrb[27].mxu1  ;;  %v1003_v51 = vpop.f32.mrb[27].mxu0 }
 0x15a   : > { %899 = vst [vmem:[%s1361_s14 + $0x10] sm:$0xff] %v886_v29   ;;  %v663_v52 = vadd.f32 %v1354_v54, %v646_v48  ;;  %v647_v53 = vadd.f32 %v628_v26, %v476_v49 }
 0x15c   : > { %v664_v55 = vadd.f32 %v1354_v54, %v647_v53  ;;  %v673_v57 = vmax.f32 %v663_v52, 0.0 }
 0x15d   : > { %v480_v56 = vpop.f32.mrb[28].mxu1 }
 0x15e   : > { %v674_v33 = vmax.f32 %v664_v55, 0.0  ;;  %v481_v58 = vadd.f32 %v480_v56, %v1349_v41  ;;  %v976_v59 = vpop.f32.mrb[29].mxu1 }
 0x15f   : > { %v483_v60 = vpop.f32.mrb[30].mxu1 }
 0x160   : > { %v891_v61 = vpack.c.bf16 %v674_v33, %v673_v57  ;;  %v648_v62 = vadd.f32 %v633_v39, %v481_v58  ;;  %v484_v37 = vadd.f32 %v483_v60, %v1351_v45  ;;  %v977_v63 = vpop.f32.mrb[31].mxu1 }
 0x162   : > { %900 = vst [vmem:[%s1361_s14 + $0x18] sm:$0xff] %v891_v61   ;;  %v665_v0 = vadd.f32 %v1354_v54, %v648_v62  ;;  %v649_v1 = vadd.f32 %v636_v47, %v484_v37 }
 0x164   : > { %v666_v2 = vadd.f32 %v1354_v54, %v649_v1  ;;  %v675_v3 = vmax.f32 %v665_v0, 0.0 }
 0x166   : > { %v676_v4 = vmax.f32 %v666_v2, 0.0 }
 0x168   : > { %v896_v5 = vpack.c.bf16 %v676_v4, %v675_v3 }
 0x16a   : > { %901 = vst [vmem:[%s1361_s14 + $0x20] sm:$0xff] %v896_v5  }
 0x16b PF: > { %s15_s12 = sadd.s32 1, %s1137_s12  }
 0x16c   : > { %p12_p9 = scmp.ge.s32.totalorder %s15_s12, 4  }
 0x16e   :  { %14 = sbr.rel (!%p12_p9) target bundleno = 2 (0x2), region = 73 }
 0x175   :  { %749 = vsyncpa [#allocation3], 1 }
 0x176   :  { %751 = vsyncpa [#allocation3 + $0x1], 1 }
 0x177   :  { %752 = vsyncpa [#allocation5], 1 }

// kernel: heatmap3d_head_forward.4
= control target key start
LH: loop header
LB: loop body
LE: loop exit
PB: predicated region body
PF: predicated region fallthrough
CT: control target
= control target key end

     0   :  { %8 = vsyncpa [#allocation3], 0  ;;  %s2934_s0 = inlined_call_operand.vmem [shape: bf16[608,96], index: 0, kind: input, shape index: {}]   ;;  %s2935_s1 = inlined_call_operand.hbm [shape: bf16[3,96,128], index: 1, kind: input, shape index: {}]   ;;  %s2936_s2 = inlined_call_operand.hbm [shape: f32[1,128], index: 2, kind: input, shape index: {}]   ;;  %s2937_s3 = inlined_call_operand.vmem [shape: bf16[576,128], index: 3, kind: output, shape index: {}]  }
   0x1   :  { %9 = vsyncpa [#allocation5], 0  ;;  %s2600_s12 = smov 0  }
   0x2 LB: > { %s2606_s13 = sadd.s32 4294967295, %s2574_s12   ;;  %p1783_p0 = scmp.ge.s32.totalorder %s2574_s12, 1  ;;  %s2574_s12 = sphi %s2600_s12, %s15_s12  }
   0x3   : > { %p109_p1 = scmp.lt.s32.totalorder %s2574_s12, 3  ;;  %s2576_s14 = smov [#allocation2]  }
   0x4   : > { %s124_s15 = sshll.u32 %s2576_s14, 4  ;;  %p2938_p3 = scmp.eq.s32.totalorder %s2606_s13, 0  ;;  %s125_s15 = int_to_ptr.vmem [resolvable:$true] %s124_s15 }
   0x5   : > { %p2610_p2 = pnand %p1783_p0, %p109_p1  ;;  %s2577_s17 = smov [#allocation4]  }
   0x6   : > { %s138_s18 = sshll.u32 %s2577_s17, 4  ;;  %s2504_s22 = scalar_lea.hbm %s2935_s1, 2304  ;;  %s2623_s18 = int_to_ptr.vmem [resolvable:$true] %s138_s18 }
   0x7   : > { %s2940_s16 = scalar_select %p2610_p2, 1, 0 }
   0x8   : > { %p2409_p4 = pneg %p2610_p2  ;;  %p2505_p6 = scmp.ne.s32.totalorder %s2935_s1, %s2504_s22 }
   0x9   : > { %p2511_p10 = scmp.lt.u32.totalorder %s2504_s22, %s2935_s1 }
   0xa   : > { %p2619_p5 = pnand %p2938_p3, %p2409_p4 }
   0xc   : > { %p2506_p7 = pneg %p2619_p5 }
   0xe   : > { %p2507_p8 = pnand %p2506_p7, %p2505_p6 }
  0x10   : > { %p2508_p9 = pneg %p2507_p8 }
  0x12   : > { %p2513_p11 = pnand %p2511_p10, %p2508_p9 }
  0x14   : > { %2516 = shalt.err (!%p2513_p11)
}
  0x15   : > { %s2517_s27 = scalar_lea.vmem %s125_s15, 2304  ;;  %p2525_p1 = scmp.lt.s32.totalorder %s125_s15, %s125_s15 }
  0x16   : > { %p2518_p12 = scmp.ne.s32.totalorder %s125_s15, %s2517_s27  ;;  %p2526_p4 = scmp.lt.s32.totalorder %s2517_s27, %s2517_s27 }
  0x18   : > { %p2520_p13 = pnand %p2518_p12, %p2506_p7  ;;  %p2527_p3 = por %p2526_p4, %p2525_p1 }
  0x1a   : > { %p2521_p0 = pneg %p2520_p13 }
  0x1c   : > { %p2528_p2 = pnand %p2527_p3, %p2521_p0 }
  0x1e   : > { %2531 = shalt.err (!%p2528_p2)
}
  0x1f   : > { %s2578_s28 = smov 64   ;;  %s2579_s29 = smov 4  }
  0x20   : > { %2412 = dma.hbm_to_vmem [thread:$0]  (!%p2619_p5), %s2935_s1, 2304, %s125_s15, [#allocation3], %s2578_s28, %s2578_s28, %s2579_s29  }
  0x21   : > { %s2532_s7 = scalar_lea.hbm %s2936_s2, 16 }
  0x22   : > { %p2533_p6 = scmp.ne.s32.totalorder %s2936_s2, %s2532_s7  ;;  %p2539_p8 = scmp.lt.u32.totalorder %s2532_s7, %s2936_s2 }
  0x24   : > { %p2535_p2 = pnand %p2533_p6, %p2506_p7 }
  0x26   : > { %p2536_p3 = pneg %p2535_p2 }
  0x28   : > { %p2541_p9 = pnand %p2539_p8, %p2536_p3 }
  0x2a   : > { %2544 = shalt.err (!%p2541_p9)
}
  0x2b   : > { %s2545_s14 = scalar_lea.vmem %s2623_s18, 16  ;;  %s2552_s15 = scalar_lea.vmem %s2623_s18, 32 }
  0x2c   : > { %p2546_p10 = scmp.ne.s32.totalorder %s2623_s18, %s2545_s14  ;;  %p2553_p13 = scmp.lt.s32.totalorder %s2623_s18, %s2623_s18 }
  0x2d   : > { %p2554_p0 = scmp.lt.s32.totalorder %s2552_s15, %s2545_s14 }
  0x2e   : > { %p2548_p11 = pnand %p2546_p10, %p2506_p7 }
  0x2f   : > { %p2555_p1 = por %p2554_p0, %p2553_p13 }
  0x30   : > { %p2549_p12 = pneg %p2548_p11 }
  0x32   : > { %p2556_p4 = pnand %p2555_p1, %p2549_p12 }
  0x34   : > { %2559 = shalt.err (!%p2556_p4)
}
  0x35   : > { %2415 = dma.hbm_to_vmem [thread:$0]  (!%p2619_p5), %s2936_s2, 16, %s2623_s18, [#allocation5]  }
  0x36   : > { %p2942_p6 = scmp.ne.s32.totalorder %s2940_s16, 0 }
  0x37   : > { %p2943_p7 = scmp.eq.s32.totalorder (!%p2942_p6), %s2606_s13, 0 }
  0x38   : > { %151 = sbr.rel (%p2942_p6) target bundleno = 422 (0x1a6), region = 32 }
  0x3f   : > { %2565 = dma.done.wait (%p2943_p7), [#allocation3], 2304   ;;  %p2944_p2 = pmov %p2943_p7 }
  0x41   : > { %2567 = vsyncadd (%p2944_p2), [#allocation3], 4294964992  ;;  %p2945_p3 = pmov %p2944_p2 }
  0x42   : > { %p2946_p8 = pmov %p2944_p2 }
  0x43   : > { %2569 = dma.done.wait (%p2945_p3), [#allocation5], 16  }
  0x44   : > { %2571 = vsyncadd (%p2946_p8), [#allocation5], 4294967280  ;;  %s2684_s19 = smul.u32 288, %s2606_s13  ;;  %v2432_v0 = vld [vmem:[#allocation2 + $0x30] sm:$0xff]   ;;  %v2433_v1 = vld [vmem:[#allocation2] sm:$0xff]   ;;  %vm414_vm0 = vcmask 785408  }
  0x45   : > { %2173 = vmatprep.subr.bf16.mxu1 %v2432_v0  ;;  %v2434_v2 = vld [vmem:[#allocation2 + $0x38] sm:$0xff]   ;;  %2221 = vmatprep.subr.bf16.mxu0 %v2433_v1  ;;  %v2687_v3 = vld [vmem:[#allocation2 + $0x8] sm:$0xff]   ;;  %v2436_v4 = vld [vmem:[#allocation2 + $0x40] sm:$0xff]   ;;  %s174_s9 = smul.u32 36, %s2606_s13 }
  0x46   : > { %s234_s16 = sadd.s32 16, %s2684_s19  ;;  %2174 = vmatpush3.bf16.msra.mxu1 %v2432_v0  ;;  %2222 = vmatpush3.bf16.msra.mxu0 %v2433_v1  ;;  %s182_s21 = sshra.s32 %s2684_s19, 3  ;;  %v2691_v5 = vld [vmem:[#allocation2 + $0x10] sm:$0xff]   ;;  %v2438_v6 = vld [vmem:[#allocation2 + $0x48] sm:$0xff]   ;;  %v2695_v7 = vld [vmem:[#allocation2 + $0x18] sm:$0xff]  }
  0x47   : > { %s235_s18 = sshra.s32 %s234_s16, 3  ;;  %2175 = vmatprep.subr.bf16.mxu1 %v2434_v2  ;;  %2223 = vmatprep.subr.bf16.mxu0 %v2687_v3  ;;  %s1790_s23 = sshll.u32 %s182_s21, 2  ;;  %v2440_v8 = vld [vmem:[#allocation2 + $0x50] sm:$0xff]   ;;  %v2707_v9 = vld [vmem:[#allocation2 + $0x20] sm:$0xff]   ;;  %v2442_v12 = vld [vmem:[#allocation2 + $0x58] sm:$0xff]  }
  0x48   : > { %s1791_s22 = sshll.u32 %s235_s18, 2  ;;  %s2705_s29 = scalar_lea.vmem %s2934_s0, %s1790_s23  ;;  %v2717_v13 = vld [vmem:[#allocation2 + $0x28] sm:$0xff]   ;;  %v2448_v15 = vld [vmem:[#allocation2 + $0x60] sm:$0xff]   ;;  %v2454_v21 = vld [vmem:[#allocation2 + $0x70] sm:$0xff]  }
  0x49   : > { %s2700_s26 = scalar_lea.vmem %s2934_s0, %s1791_s22  ;;  %v2445_v11 = vld [vmem:[%s2705_s29] sm:$0xff]   ;;  %v2447_v16 = vld [vmem:[%s2705_s29 + $0x8] sm:$0xff]   ;;  %v2450_v18 = vld [vmem:[%s2705_s29 + $0x10] sm:$0xff]   ;;  %s1003_s30 = sadd.s32 32, %s2684_s19 }
  0x4a   : > { %2176 = vmatpush3.bf16.msra.mxu1 %v2434_v2  ;;  %2224 = vmatpush3.bf16.msra.mxu0 %v2687_v3  ;;  %v2444_v10 = vld [vmem:[%s2700_s26] sm:$0xff]   ;;  %v2446_v14 = vld [vmem:[%s2700_s26 + $0x8] sm:$0xff]   ;;  %v2449_v17 = vld [vmem:[%s2700_s26 + $0x10] sm:$0xff]   ;;  %s1004_s4 = sshra.s32 %s1003_s30, 3  ;;  %p175_p5 = scmp.lt.s32.totalorder %s174_s9, 71 }
  0x4b   : > { %2177 = vmatprep.subr.bf16.mxu1 %v2436_v4  ;;  %2225 = vmatprep.subr.bf16.mxu0 %v2691_v5  ;;  %v2451_v19 = vld [vmem:[#allocation2 + $0x68] sm:$0xff]   ;;  %v2452_v20 = vld [vmem:[%s2700_s26 + $0x18] sm:$0xff]   ;;  %v2455_v23 = vld [vmem:[%s2700_s26 + $0x20] sm:$0xff]   ;;  %s1876_s5 = sshll.u32 %s1004_s4, 2 }
  0x4c   : > { %2185 = vmatprep.mubr.msk.bf16.mxu1 %vm414_vm0, %v2444_v10  ;;  %2233 = vmatprep.mubr.msk.bf16.mxu0 %vm414_vm0, %v2445_v11  ;;  %v2453_v22 = vld [vmem:[%s2705_s29 + $0x18] sm:$0xff]   ;;  %v2456_v24 = vld [vmem:[%s2705_s29 + $0x20] sm:$0xff]   ;;  %v2457_v26 = vld [vmem:[%s2700_s26 + $0x28] sm:$0xff]   ;;  %s2748_s8 = scalar_lea.vmem %s2934_s0, %s1876_s5  ;;  %s2948_s9 = smov (!%p175_p5, %s174_s9), 71 }
  0x4d   : > { %v2459_v25 = vld [vmem:[#allocation2 + $0x78] sm:$0xff]   ;;  %v2464_v27 = vld [vmem:[#allocation2 + $0x80] sm:$0xff]   ;;  %v2458_v28 = vld [vmem:[%s2705_s29 + $0x28] sm:$0xff]   ;;  %s1789_s10 = sshll.u32 %s2948_s9, 2 }
  0x4e   : > { %2178 = vmatpush3.bf16.msra.mxu1 %v2436_v4  ;;  %2226 = vmatpush3.bf16.msra.mxu0 %v2691_v5  ;;  %v2460_v29 = vld [vmem:[%s2700_s26 + $0x30] sm:$0xff]   ;;  %v2469_v31 = vld [vmem:[#allocation2 + $0x88] sm:$0xff]   ;;  %v2462_v32 = vld [vmem:[%s2700_s26 + $0x38] sm:$0xff]   ;;  %s2870_s14 = scalar_lea.vmem %s2937_s3, %s1789_s10 }
  0x4f   : > { %2179 = vmatprep.subr.bf16.mxu1 %v2438_v6  ;;  %2227 = vmatprep.subr.bf16.mxu0 %v2695_v7  ;;  %v2461_v30 = vld [vmem:[%s2705_s29 + $0x30] sm:$0xff]   ;;  %v2463_v33 = vld [vmem:[%s2705_s29 + $0x38] sm:$0xff]   ;;  %v2465_v34 = vld [vmem:[%s2700_s26 + $0x40] sm:$0xff]  }
  0x50   : > { %v2466_v35 = vld [vmem:[%s2705_s29 + $0x40] sm:$0xff]   ;;  %v2467_v36 = vld [vmem:[%s2700_s26 + $0x48] sm:$0xff]   ;;  %v2470_v38 = vld [vmem:[%s2700_s26 + $0x50] sm:$0xff]  }
  0x51   : > { %v2468_v37 = vld [vmem:[%s2705_s29 + $0x48] sm:$0xff]   ;;  %v2471_v39 = vld [vmem:[%s2748_s8] sm:$0xff]   ;;  %v2472_v40 = vld [vmem:[%s2700_s26 + $0x58] sm:$0xff]  }
  0x52   : > { %2180 = vmatpush3.bf16.msra.mxu1 %v2438_v6  ;;  %2228 = vmatpush3.bf16.msra.mxu0 %v2695_v7  ;;  %v2473_v41 = vld [vmem:[%s2748_s8 + $0x8] sm:$0xff]   ;;  %v2474_v42 = vld [vmem:[%s2700_s26 + $0x60] sm:$0xff]   ;;  %v2475_v43 = vld [vmem:[%s2748_s8 + $0x10] sm:$0xff]  }
  0x53   : > { %2181 = vmatprep.subr.bf16.mxu1 %v2440_v8  ;;  %2229 = vmatprep.subr.bf16.mxu0 %v2707_v9  ;;  %v2476_v44 = vld [vmem:[%s2700_s26 + $0x68] sm:$0xff]   ;;  %v2477_v45 = vld [vmem:[%s2748_s8 + $0x18] sm:$0xff]   ;;  %v2478_v46 = vld [vmem:[%s2700_s26 + $0x70] sm:$0xff]  }
  0x54   : > { %v2479_v47 = vld [vmem:[%s2748_s8 + $0x20] sm:$0xff]   ;;  %v2480_v48 = vld [vmem:[%s2700_s26 + $0x78] sm:$0xff]   ;;  %v2481_v49 = vld [vmem:[%s2748_s8 + $0x28] sm:$0xff]  }
  0x55   : > { %v2482_v50 = vld [vmem:[%s2700_s26 + $0x80] sm:$0xff]   ;;  %v2483_v51 = vld [vmem:[%s2748_s8 + $0x30] sm:$0xff]   ;;  %v2484_v52 = vld [vmem:[%s2700_s26 + $0x88] sm:$0xff]  }
  0x56   : > { %2182 = vmatpush3.bf16.msra.mxu1 %v2440_v8  ;;  %2230 = vmatpush3.bf16.msra.mxu0 %v2707_v9  ;;  %v2485_v53 = vld [vmem:[%s2748_s8 + $0x38] sm:$0xff]   ;;  %v2486_v54 = vld [vmem:[%s2705_s29 + $0x50] sm:$0xff]   ;;  %v2487_v55 = vld [vmem:[%s2748_s8 + $0x40] sm:$0xff]  }
  0x57   : > { %2183 = vmatprep.subr.bf16.mxu1 %v2442_v12  ;;  %2231 = vmatprep.subr.bf16.mxu0 %v2717_v13  ;;  %v2488_v56 = vld [vmem:[%s2705_s29 + $0x58] sm:$0xff]   ;;  %v2489_v57 = vld [vmem:[%s2748_s8 + $0x48] sm:$0xff]   ;;  %v2490_v58 = vld [vmem:[%s2705_s29 + $0x60] sm:$0xff]  }
  0x58   : > { %v2491_v59 = vld [vmem:[%s2748_s8 + $0x50] sm:$0xff]   ;;  %v2492_v60 = vld [vmem:[%s2705_s29 + $0x68] sm:$0xff]   ;;  %v2493_v61 = vld [vmem:[%s2748_s8 + $0x58] sm:$0xff]  }
  0x59   : > { %v2494_v62 = vld [vmem:[%s2705_s29 + $0x70] sm:$0xff]   ;;  %v2495_v63 = vld [vmem:[%s2748_s8 + $0x60] sm:$0xff]   ;;  %v2496_v0 = vld [vmem:[%s2705_s29 + $0x78] sm:$0xff]  }
  0x5a   : > { %2184 = vmatpush3.bf16.msra.mxu1 %v2442_v12  ;;  %2232 = vmatpush3.bf16.msra.mxu0 %v2717_v13  ;;  %v2498_v2 = vld [vmem:[%s2705_s29 + $0x80] sm:$0xff]   ;;  %v2500_v4 = vld [vmem:[%s2705_s29 + $0x88] sm:$0xff]  }
  0x5b   : > { %2317 = vmatprep.subr.bf16.mxu1 %v2433_v1  ;;  %2269 = vmatprep.subr.bf16.mxu0 %v2448_v15  ;;  %v2502_v6 = vld [vmem:[%s2748_s8 + $0x80] sm:$0xff]  }
  0x5d   : > { %2186 = vmatmul.mubr.msk.bf16.vlgmr.msra.gmra.mrb[0].mxu1 %vm414_vm0, %v2446_v14  ;;  %2234 = vmatmul.mubr.msk.bf16.vlgmr.msra.gmra.mrb[0].mxu0 %vm414_vm0, %v2447_v16 }
  0x5e   : > { %2189 = vmatprep.mubr.msk.bf16.mxu1 %vm414_vm0, %v2449_v17  ;;  %2270 = vmatpush3.bf16.msra.mxu0 %v2448_v15 }
  0x5f   : > { %2237 = vmatprep.mubr.msk.bf16.mxu0 %vm414_vm0, %v2450_v18  ;;  %2271 = vmatprep.subr.bf16.mxu0 %v2451_v19 }
  0x60   : > { %2323 = vmatpush3.bf16.msra.mxu1 %v2433_v1  ;;  %v2497_v1 = vld [vmem:[%s2748_s8 + $0x68] sm:$0xff]  }
  0x61   : > { %2318 = vmatprep.subr.bf16.mxu1 %v2687_v3 }
  0x62   : > { %2272 = vmatpush3.bf16.msra.mxu0 %v2451_v19 }
  0x63   : > { %2273 = vmatprep.subr.bf16.mxu0 %v2454_v21 }
  0x64   : > { %2324 = vmatpush3.bf16.msra.mxu1 %v2687_v3  ;;  %v2499_v3 = vld [vmem:[%s2748_s8 + $0x70] sm:$0xff]  }
  0x65   : > { %2190 = vmatmul.mubr.msk.bf16.gmra.mrb[4].mxu1 %vm414_vm0, %v2452_v20  ;;  %2319 = vmatprep.subr.bf16.mxu1 %v2691_v5 }
  0x66   : > { %2238 = vmatmul.mubr.msk.bf16.gmra.mrb[4].mxu0 %vm414_vm0, %v2453_v22  ;;  %2193 = vmatprep.mubr.msk.bf16.mxu1 %vm414_vm0, %v2455_v23 }
  0x67   : > { %2241 = vmatprep.mubr.msk.bf16.mxu0 %vm414_vm0, %v2456_v24  ;;  %2274 = vmatpush3.bf16.msra.mxu0 %v2454_v21 }
  0x68   : > { %2275 = vmatprep.subr.bf16.mxu0 %v2459_v25  ;;  %2325 = vmatpush3.bf16.msra.mxu1 %v2691_v5  ;;  %v2501_v5 = vld [vmem:[%s2748_s8 + $0x78] sm:$0xff]  }
  0x69   : > { %2320 = vmatprep.subr.bf16.mxu1 %v2695_v7 }
  0x6b   : > { %2276 = vmatpush3.bf16.msra.mxu0 %v2459_v25 }
  0x6c   : > { %2277 = vmatprep.subr.bf16.mxu0 %v2464_v27  ;;  %2326 = vmatpush3.bf16.msra.mxu1 %v2695_v7  ;;  %v2503_v7 = vld [vmem:[%s2748_s8 + $0x88] sm:$0xff]  }
  0x6d   : > { %2194 = vmatmul.mubr.msk.bf16.gmra.mrb[8].mxu1 %vm414_vm0, %v2457_v26  ;;  %2321 = vmatprep.subr.bf16.mxu1 %v2707_v9 }
  0x6e   : > { %2242 = vmatmul.mubr.msk.bf16.gmra.mrb[8].mxu0 %vm414_vm0, %v2458_v28  ;;  %2197 = vmatprep.mubr.msk.bf16.mxu1 %vm414_vm0, %v2460_v29  ;;  %v2861_v29 = vld [vmem:[#allocation4] ss:$0 sm:$0xff] }
  0x6f   : > { %2245 = vmatprep.mubr.msk.bf16.mxu0 %vm414_vm0, %v2461_v30  ;;  %2278 = vmatpush3.bf16.msra.mxu0 %v2464_v27 }
  0x70   : > { %2279 = vmatprep.subr.bf16.mxu0 %v2469_v31  ;;  %2327 = vmatpush3.bf16.msra.mxu1 %v2707_v9 }
  0x71   : > { %2322 = vmatprep.subr.bf16.mxu1 %v2717_v13 }
  0x73   : > { %2280 = vmatpush3.bf16.msra.mxu0 %v2469_v31 }
  0x74   : > { %2328 = vmatpush3.bf16.msra.mxu1 %v2717_v13 }
  0x75   : > { %2198 = vmatmul.mubr.msk.bf16.gmra.mrb[12].mxu1 %vm414_vm0, %v2462_v32 }
  0x76   : > { %2246 = vmatmul.mubr.msk.bf16.gmra.mrb[12].mxu0 %vm414_vm0, %v2463_v33  ;;  %2201 = vmatprep.mubr.msk.bf16.mxu1 %vm414_vm0, %v2465_v34 }
  0x77   : > { %2249 = vmatprep.mubr.msk.bf16.mxu0 %vm414_vm0, %v2466_v35 }
  0x7d   : > { %2202 = vmatmul.mubr.msk.bf16.gmra.mrb[16].mxu1 %vm414_vm0, %v2467_v36 }
  0x7e   : > { %2250 = vmatmul.mubr.msk.bf16.gmra.mrb[16].mxu0 %vm414_vm0, %v2468_v37  ;;  %2205 = vmatprep.mubr.msk.bf16.mxu1 %vm414_vm0, %v2470_v38 }
  0x7f   : > { %2281 = vmatprep.mubr.msk.bf16.mxu0 %vm414_vm0, %v2471_v39 }
  0x85   : > { %2206 = vmatmul.mubr.msk.bf16.gmra.mrb[20].mxu1 %vm414_vm0, %v2472_v40 }
  0x86   : > { %2282 = vmatmul.mubr.msk.bf16.vlgmr.msra.gmra.mrb[0].mxu0 %vm414_vm0, %v2473_v41  ;;  %2209 = vmatprep.mubr.msk.bf16.mxu1 %vm414_vm0, %v2474_v42 }
  0x87   : > { %2285 = vmatprep.mubr.msk.bf16.mxu0 %vm414_vm0, %v2475_v43 }
  0x8d   : > { %2210 = vmatmul.mubr.msk.bf16.gmra.mrb[24].mxu1 %vm414_vm0, %v2476_v44 }
  0x8e   : > { %2286 = vmatmul.mubr.msk.bf16.gmra.mrb[4].mxu0 %vm414_vm0, %v2477_v45  ;;  %2213 = vmatprep.mubr.msk.bf16.mxu1 %vm414_vm0, %v2478_v46 }
  0x8f   : > { %2289 = vmatprep.mubr.msk.bf16.mxu0 %vm414_vm0, %v2479_v47 }
  0x95   : > { %2214 = vmatmul.mubr.msk.bf16.gmra.mrb[28].mxu1 %vm414_vm0, %v2480_v48 }
  0x96   : > { %2290 = vmatmul.mubr.msk.bf16.gmra.mrb[8].mxu0 %vm414_vm0, %v2481_v49  ;;  %2217 = vmatprep.mubr.msk.bf16.mxu1 %vm414_vm0, %v2482_v50 }
  0x97   : > { %2293 = vmatprep.mubr.msk.bf16.mxu0 %vm414_vm0, %v2483_v51 }
  0x9d   : > { %2218 = vmatmul.mubr.msk.bf16.gmra.mrb[32].mxu1 %vm414_vm0, %v2484_v52 }
  0x9e   : > { %2294 = vmatmul.mubr.msk.bf16.gmra.mrb[12].mxu0 %vm414_vm0, %v2485_v53  ;;  %2253 = vmatprep.mubr.msk.bf16.mxu1 %vm414_vm0, %v2486_v54 }
  0x9f   : > { %2297 = vmatprep.mubr.msk.bf16.mxu0 %vm414_vm0, %v2487_v55 }
  0xa5   : > { %2254 = vmatmul.mubr.msk.bf16.vlgmr.msra.gmra.mrb[20].mxu1 %vm414_vm0, %v2488_v56 }
  0xa6   : > { %2298 = vmatmul.mubr.msk.bf16.gmra.mrb[16].mxu0 %vm414_vm0, %v2489_v57  ;;  %2257 = vmatprep.mubr.msk.bf16.mxu1 %vm414_vm0, %v2490_v58 }
  0xa7   : > { %2301 = vmatprep.mubr.msk.bf16.mxu0 %vm414_vm0, %v2491_v59 }
  0xad   : > { %2258 = vmatmul.mubr.msk.bf16.gmra.mrb[24].mxu1 %vm414_vm0, %v2492_v60 }
  0xae   : > { %2302 = vmatmul.mubr.msk.bf16.gmra.mrb[20].mxu0 %vm414_vm0, %v2493_v61  ;;  %2261 = vmatprep.mubr.msk.bf16.mxu1 %vm414_vm0, %v2494_v62 }
  0xaf   : > { %2305 = vmatprep.mubr.msk.bf16.mxu0 %vm414_vm0, %v2495_v63 }
  0xb5   : > { %2262 = vmatmul.mubr.msk.bf16.gmra.mrb[28].mxu1 %vm414_vm0, %v2496_v0 }
  0xb6   : > { %2306 = vmatmul.mubr.msk.bf16.gmra.mrb[24].mxu0 %vm414_vm0, %v2497_v1  ;;  %2265 = vmatprep.mubr.msk.bf16.mxu1 %vm414_vm0, %v2498_v2 }
  0xb7   : > { %2309 = vmatprep.mubr.msk.bf16.mxu0 %vm414_vm0, %v2499_v3 }
  0xbd   : > { %2266 = vmatmul.mubr.msk.bf16.gmra.mrb[32].mxu1 %vm414_vm0, %v2500_v4 }
  0xbe   : > { %2310 = vmatmul.mubr.msk.bf16.gmra.mrb[28].mxu0 %vm414_vm0, %v2501_v5 }
  0xbf   : > { %2313 = vmatprep.mubr.msk.bf16.mxu0 %vm414_vm0, %v2502_v6 }
  0xc6   : > { %2314 = vmatmul.mubr.msk.bf16.gmra.mrb[32].mxu0 %vm414_vm0, %v2503_v7 }
 0x130   : > { %v2187_v8 = vpop.f32.mrb[0].mxu1 }
 0x131   : > { %v503_v9 = vpop.f32.mrb[1].mxu1 }
 0x132   : > { %v2188_v10 = vpop.f32.mrb[2].mxu1 }
 0x133   : > { %v506_v11 = vpop.f32.mrb[3].mxu1 }
 0x138   : > { %v2191_v12 = vpop.f32.mrb[4].mxu1 }
 0x139   : > { %v519_v13 = vpop.f32.mrb[5].mxu1 }
 0x13a   : > { %v2192_v14 = vpop.f32.mrb[6].mxu1 }
 0x13b   : > { %v522_v15 = vpop.f32.mrb[7].mxu1 }
 0x140   : > { %v2195_v16 = vpop.f32.mrb[8].mxu1 }
 0x141   : > { %v535_v17 = vpop.f32.mrb[9].mxu1 }
 0x142   : > { %v2196_v18 = vpop.f32.mrb[10].mxu1 }
 0x143   : > { %v2842_v19 = vpop.f32.mrb[11].mxu1 }
 0x148   : > { %v2844_v20 = vpop.f32.mrb[12].mxu1 }
 0x149   : > { %v2846_v21 = vpop.f32.mrb[13].mxu1 }
 0x14a   : > { %v2848_v22 = vpop.f32.mrb[14].mxu1 }
 0x14b   : > { %v2850_v23 = vpop.f32.mrb[15].mxu1 }
 0x150   : > { %v2852_v24 = vpop.f32.mrb[16].mxu1 }
 0x151   : > { %v2854_v25 = vpop.f32.mrb[17].mxu1 }
 0x152   : > { %v2856_v26 = vpop.f32.mrb[18].mxu1 }
 0x153   : > { %v2859_v27 = vpop.f32.mrb[19].mxu1 }
 0x159   : > { %v2283_v28 = vpop.f32.mrb[0].mxu0 }
 0x15a   : > { %v2329_v30 = vadd.f32 %v2283_v28, %v2187_v8  ;;  %v1271_v31 = vpop.f32.mrb[1].mxu0 }
 0x15b   : > { %v2330_v32 = vadd.f32 %v1271_v31, %v503_v9  ;;  %v2284_v33 = vpop.f32.mrb[2].mxu0 }
 0x15c   : > { %v1459_v34 = vadd.f32 %v2329_v30, %v2861_v29  ;;  %v2331_v35 = vadd.f32 %v2284_v33, %v2188_v10  ;;  %v1274_v36 = vpop.f32.mrb[3].mxu0 }
 0x15d   : > { %v1457_v37 = vadd.f32 %v2330_v32, %v2861_v29  ;;  %v2332_v38 = vadd.f32 %v1274_v36, %v506_v11 }
 0x15e   : > { %v1460_v39 = vadd.f32 %v2331_v35, %v2861_v29  ;;  %v1495_v41 = vmax.f32 %v1459_v34, 0.0 }
 0x15f   : > { %v1458_v40 = vadd.f32 %v2332_v38, %v2861_v29  ;;  %v1493_v43 = vmax.f32 %v1457_v37, 0.0 }
 0x160   : > { %v1496_v42 = vmax.f32 %v1460_v39, 0.0 }
 0x161   : > { %v1494_v44 = vmax.f32 %v1458_v40, 0.0  ;;  %v2287_v45 = vpop.f32.mrb[4].mxu0 }
 0x162   : > { %v2002_v46 = vpack.c.bf16 %v1496_v42, %v1495_v41  ;;  %v2333_v47 = vadd.f32 %v2287_v45, %v2191_v12  ;;  %v1287_v48 = vpop.f32.mrb[5].mxu0 }
 0x163   : > { %v1997_v49 = vpack.c.bf16 %v1494_v44, %v1493_v43  ;;  %v2334_v50 = vadd.f32 %v1287_v48, %v519_v13  ;;  %v2288_v51 = vpop.f32.mrb[6].mxu0 }
 0x164   : > { %2084 = vst [vmem:[%s2870_s14 + $0x8] sm:$0xff] %v2002_v46   ;;  %v1463_v52 = vadd.f32 %v2333_v47, %v2861_v29  ;;  %v2335_v53 = vadd.f32 %v2288_v51, %v2192_v14  ;;  %v1290_v54 = vpop.f32.mrb[7].mxu0 }
 0x165   : > { %1998 = vst [vmem:[%s2870_s14] sm:$0xff] %v1997_v49   ;;  %v1461_v55 = vadd.f32 %v2334_v50, %v2861_v29  ;;  %v2336_v56 = vadd.f32 %v1290_v54, %v522_v15 }
 0x166   : > { %v1464_v57 = vadd.f32 %v2335_v53, %v2861_v29  ;;  %v1499_v59 = vmax.f32 %v1463_v52, 0.0 }
 0x167   : > { %v1462_v58 = vadd.f32 %v2336_v56, %v2861_v29  ;;  %v1497_v61 = vmax.f32 %v1461_v55, 0.0 }
 0x168   : > { %v1500_v60 = vmax.f32 %v1464_v57, 0.0 }
 0x169   : > { %v1498_v62 = vmax.f32 %v1462_v58, 0.0  ;;  %v2291_v63 = vpop.f32.mrb[8].mxu0 }
 0x16a   : > { %v2012_v0 = vpack.c.bf16 %v1500_v60, %v1499_v59  ;;  %v2337_v1 = vadd.f32 %v2291_v63, %v2195_v16  ;;  %v1303_v2 = vpop.f32.mrb[9].mxu0 }
 0x16b   : > { %v2007_v3 = vpack.c.bf16 %v1498_v62, %v1497_v61  ;;  %v2338_v4 = vadd.f32 %v1303_v2, %v535_v17  ;;  %v2292_v5 = vpop.f32.mrb[10].mxu0 }
 0x16c   : > { %2086 = vst [vmem:[%s2870_s14 + $0x18] sm:$0xff] %v2012_v0   ;;  %v1467_v6 = vadd.f32 %v2337_v1, %v2861_v29  ;;  %v2339_v7 = vadd.f32 %v2292_v5, %v2196_v18  ;;  %v1306_v8 = vpop.f32.mrb[11].mxu0 }
 0x16d   : > { %2085 = vst [vmem:[%s2870_s14 + $0x10] sm:$0xff] %v2007_v3   ;;  %v1465_v9 = vadd.f32 %v2338_v4, %v2861_v29  ;;  %v2340_v10 = vadd.f32 %v1306_v8, %v2842_v19 }
 0x16e   : > { %v1468_v11 = vadd.f32 %v2339_v7, %v2861_v29  ;;  %v1503_v13 = vmax.f32 %v1467_v6, 0.0 }
 0x16f   : > { %v1466_v12 = vadd.f32 %v2340_v10, %v2861_v29  ;;  %v1501_v15 = vmax.f32 %v1465_v9, 0.0 }
 0x170   : > { %v1504_v14 = vmax.f32 %v1468_v11, 0.0 }
 0x171   : > { %v1502_v16 = vmax.f32 %v1466_v12, 0.0  ;;  %v2295_v17 = vpop.f32.mrb[12].mxu0 }
 0x172   : > { %v2022_v28 = vpack.c.bf16 %v1504_v14, %v1503_v13  ;;  %v2341_v18 = vadd.f32 %v2295_v17, %v2844_v20  ;;  %v1319_v30 = vpop.f32.mrb[13].mxu0 }
 0x173   : > { %v2017_v31 = vpack.c.bf16 %v1502_v16, %v1501_v15  ;;  %v2342_v32 = vadd.f32 %v1319_v30, %v2846_v21  ;;  %v2296_v33 = vpop.f32.mrb[14].mxu0 }
 0x174   : > { %2088 = vst [vmem:[%s2870_s14 + $0x28] sm:$0xff] %v2022_v28   ;;  %v1471_v19 = vadd.f32 %v2341_v18, %v2861_v29  ;;  %v2343_v34 = vadd.f32 %v2296_v33, %v2848_v22  ;;  %v1322_v35 = vpop.f32.mrb[15].mxu0 }
 0x175   : > { %2087 = vst [vmem:[%s2870_s14 + $0x20] sm:$0xff] %v2017_v31   ;;  %v1469_v36 = vadd.f32 %v2342_v32, %v2861_v29  ;;  %v2344_v37 = vadd.f32 %v1322_v35, %v2850_v23 }
 0x176   : > { %v1472_v38 = vadd.f32 %v2343_v34, %v2861_v29  ;;  %v1507_v39 = vmax.f32 %v1471_v19, 0.0 }
 0x177   : > { %v1470_v20 = vadd.f32 %v2344_v37, %v2861_v29  ;;  %v1505_v41 = vmax.f32 %v1469_v36, 0.0 }
 0x178   : > { %v1508_v40 = vmax.f32 %v1472_v38, 0.0  ;;  %v2255_v21 = vpop.f32.mrb[20].mxu1 }
 0x179   : > { %v1506_v42 = vmax.f32 %v1470_v20, 0.0  ;;  %v2299_v43 = vpop.f32.mrb[16].mxu0  ;;  %v940_v44 = vpop.f32.mrb[21].mxu1 }
 0x17a   : > { %v2032_v22 = vpack.c.bf16 %v1508_v40, %v1507_v39  ;;  %v2345_v45 = vadd.f32 %v2299_v43, %v2852_v24  ;;  %v1335_v46 = vpop.f32.mrb[17].mxu0  ;;  %v2256_v47 = vpop.f32.mrb[22].mxu1 }
 0x17b   : > { %v2027_v48 = vpack.c.bf16 %v1506_v42, %v1505_v41  ;;  %v2346_v23 = vadd.f32 %v1335_v46, %v2854_v25  ;;  %v2300_v49 = vpop.f32.mrb[18].mxu0  ;;  %v943_v50 = vpop.f32.mrb[23].mxu1 }
 0x17c   : > { %2090 = vst [vmem:[%s2870_s14 + $0x38] sm:$0xff] %v2032_v22   ;;  %v1475_v51 = vadd.f32 %v2345_v45, %v2861_v29  ;;  %v2347_v52 = vadd.f32 %v2300_v49, %v2856_v26  ;;  %v1338_v53 = vpop.f32.mrb[19].mxu0 }
 0x17d   : > { %2089 = vst [vmem:[%s2870_s14 + $0x30] sm:$0xff] %v2027_v48   ;;  %v1473_v54 = vadd.f32 %v2346_v23, %v2861_v29  ;;  %v2348_v55 = vadd.f32 %v1338_v53, %v2859_v27 }
 0x17e   : > { %v1476_v24 = vadd.f32 %v2347_v52, %v2861_v29  ;;  %v1511_v57 = vmax.f32 %v1475_v51, 0.0 }
 0x17f   : > { %v1474_v56 = vadd.f32 %v2348_v55, %v2861_v29  ;;  %v1509_v59 = vmax.f32 %v1473_v54, 0.0 }
 0x180   : > { %v1512_v25 = vmax.f32 %v1476_v24, 0.0  ;;  %v2259_v58 = vpop.f32.mrb[24].mxu1 }
 0x181   : > { %v1510_v60 = vmax.f32 %v1474_v56, 0.0  ;;  %v2303_v61 = vpop.f32.mrb[20].mxu0  ;;  %v956_v62 = vpop.f32.mrb[25].mxu1 }
 0x182   : > { %v2042_v26 = vpack.c.bf16 %v1512_v25, %v1511_v57  ;;  %v2349_v63 = vadd.f32 %v2303_v61, %v2255_v21  ;;  %v1351_v0 = vpop.f32.mrb[21].mxu0  ;;  %v2260_v1 = vpop.f32.mrb[26].mxu1 }
 0x183   : > { %v2037_v2 = vpack.c.bf16 %v1510_v60, %v1509_v59  ;;  %v2350_v3 = vadd.f32 %v1351_v0, %v940_v44  ;;  %v2304_v27 = vpop.f32.mrb[22].mxu0  ;;  %v959_v4 = vpop.f32.mrb[27].mxu1 }
 0x184   : > { %2092 = vst [vmem:[%s2870_s14 + $0x48] sm:$0xff] %v2042_v26   ;;  %v1479_v5 = vadd.f32 %v2349_v63, %v2861_v29  ;;  %v2351_v6 = vadd.f32 %v2304_v27, %v2256_v47  ;;  %v1354_v7 = vpop.f32.mrb[23].mxu0 }
 0x185   : > { %2091 = vst [vmem:[%s2870_s14 + $0x40] sm:$0xff] %v2037_v2   ;;  %v1477_v8 = vadd.f32 %v2350_v3, %v2861_v29  ;;  %v2352_v9 = vadd.f32 %v1354_v7, %v943_v50 }
 0x186   : > { %v1480_v10 = vadd.f32 %v2351_v6, %v2861_v29  ;;  %v1515_v12 = vmax.f32 %v1479_v5, 0.0 }
 0x187   : > { %v1478_v11 = vadd.f32 %v2352_v9, %v2861_v29  ;;  %v1513_v15 = vmax.f32 %v1477_v8, 0.0 }
 0x188   : > { %v1516_v13 = vmax.f32 %v1480_v10, 0.0  ;;  %v2263_v14 = vpop.f32.mrb[28].mxu1 }
 0x189   : > { %v1514_v16 = vmax.f32 %v1478_v11, 0.0  ;;  %v2307_v17 = vpop.f32.mrb[24].mxu0  ;;  %v972_v28 = vpop.f32.mrb[29].mxu1 }
 0x18a   : > { %v2052_v18 = vpack.c.bf16 %v1516_v13, %v1515_v12  ;;  %v2353_v30 = vadd.f32 %v2307_v17, %v2259_v58  ;;  %v1367_v31 = vpop.f32.mrb[25].mxu0  ;;  %v2264_v32 = vpop.f32.mrb[30].mxu1 }
 0x18b   : > { %v2047_v33 = vpack.c.bf16 %v1514_v16, %v1513_v15  ;;  %v2354_v19 = vadd.f32 %v1367_v31, %v956_v62  ;;  %v2308_v34 = vpop.f32.mrb[26].mxu0  ;;  %v975_v35 = vpop.f32.mrb[31].mxu1 }
 0x18c   : > { %2094 = vst [vmem:[%s2870_s14 + $0x58] sm:$0xff] %v2052_v18   ;;  %v1483_v36 = vadd.f32 %v2353_v30, %v2861_v29  ;;  %v2355_v37 = vadd.f32 %v2308_v34, %v2260_v1  ;;  %v1370_v38 = vpop.f32.mrb[27].mxu0 }
 0x18d   : > { %2093 = vst [vmem:[%s2870_s14 + $0x50] sm:$0xff] %v2047_v33   ;;  %v1481_v20 = vadd.f32 %v2354_v19, %v2861_v29  ;;  %v2356_v39 = vadd.f32 %v1370_v38, %v959_v4 }
 0x18e   : > { %v1484_v40 = vadd.f32 %v2355_v37, %v2861_v29  ;;  %v1519_v41 = vmax.f32 %v1483_v36, 0.0 }
 0x18f   : > { %v1482_v21 = vadd.f32 %v2356_v39, %v2861_v29  ;;  %v1517_v44 = vmax.f32 %v1481_v20, 0.0 }
 0x190   : > { %v1520_v42 = vmax.f32 %v1484_v40, 0.0  ;;  %v2267_v43 = vpop.f32.mrb[32].mxu1 }
 0x191   : > { %v1518_v22 = vmax.f32 %v1482_v21, 0.0  ;;  %v2311_v45 = vpop.f32.mrb[28].mxu0  ;;  %v988_v46 = vpop.f32.mrb[33].mxu1 }
 0x192   : > { %v2062_v47 = vpack.c.bf16 %v1520_v42, %v1519_v41  ;;  %v2357_v48 = vadd.f32 %v2311_v45, %v2263_v14  ;;  %v1383_v23 = vpop.f32.mrb[29].mxu0  ;;  %v2268_v49 = vpop.f32.mrb[34].mxu1 }
 0x193   : > { %v2057_v50 = vpack.c.bf16 %v1518_v22, %v1517_v44  ;;  %v2358_v51 = vadd.f32 %v1383_v23, %v972_v28  ;;  %v2312_v52 = vpop.f32.mrb[30].mxu0  ;;  %v991_v53 = vpop.f32.mrb[35].mxu1 }
 0x194   : > { %2096 = vst [vmem:[%s2870_s14 + $0x68] sm:$0xff] %v2062_v47   ;;  %v1487_v54 = vadd.f32 %v2357_v48, %v2861_v29  ;;  %v2359_v55 = vadd.f32 %v2312_v52, %v2264_v32  ;;  %v1386_v24 = vpop.f32.mrb[31].mxu0 }
 0x195   : > { %2095 = vst [vmem:[%s2870_s14 + $0x60] sm:$0xff] %v2057_v50   ;;  %v1485_v56 = vadd.f32 %v2358_v51, %v2861_v29  ;;  %v2360_v57 = vadd.f32 %v1386_v24, %v975_v35 }
 0x196   : > { %v1488_v25 = vadd.f32 %v2359_v55, %v2861_v29  ;;  %v1523_v59 = vmax.f32 %v1487_v54, 0.0 }
 0x197   : > { %v1486_v58 = vadd.f32 %v2360_v57, %v2861_v29  ;;  %v1521_v61 = vmax.f32 %v1485_v56, 0.0 }
 0x198   : > { %v1524_v60 = vmax.f32 %v1488_v25, 0.0 }
 0x199   : > { %v1522_v62 = vmax.f32 %v1486_v58, 0.0  ;;  %v2315_v26 = vpop.f32.mrb[32].mxu0 }
 0x19a   : > { %v2072_v63 = vpack.c.bf16 %v1524_v60, %v1523_v59  ;;  %v2361_v0 = vadd.f32 %v2315_v26, %v2267_v43  ;;  %v1399_v1 = vpop.f32.mrb[33].mxu0 }
 0x19b   : > { %v2067_v2 = vpack.c.bf16 %v1522_v62, %v1521_v61  ;;  %v2362_v3 = vadd.f32 %v1399_v1, %v988_v46  ;;  %v2316_v27 = vpop.f32.mrb[34].mxu0 }
 0x19c   : > { %2098 = vst [vmem:[%s2870_s14 + $0x78] sm:$0xff] %v2072_v63   ;;  %v1491_v4 = vadd.f32 %v2361_v0, %v2861_v29  ;;  %v2363_v5 = vadd.f32 %v2316_v27, %v2268_v49  ;;  %v1402_v6 = vpop.f32.mrb[35].mxu0 }
 0x19d   : > { %2097 = vst [vmem:[%s2870_s14 + $0x70] sm:$0xff] %v2067_v2   ;;  %v1489_v7 = vadd.f32 %v2362_v3, %v2861_v29  ;;  %v2364_v8 = vadd.f32 %v1402_v6, %v991_v53 }
 0x19e   : > { %v1492_v9 = vadd.f32 %v2363_v5, %v2861_v29  ;;  %v1527_v11 = vmax.f32 %v1491_v4, 0.0 }
 0x19f   : > { %v1490_v10 = vadd.f32 %v2364_v8, %v2861_v29  ;;  %v1525_v13 = vmax.f32 %v1489_v7, 0.0 }
 0x1a0   : > { %v1528_v12 = vmax.f32 %v1492_v9, 0.0 }
 0x1a1   : > { %v1526_v14 = vmax.f32 %v1490_v10, 0.0 }
 0x1a2   : > { %v2082_v15 = vpack.c.bf16 %v1528_v12, %v1527_v11 }
 0x1a3   : > { %v2077_v16 = vpack.c.bf16 %v1526_v14, %v1525_v13 }
 0x1a4   : > { %2100 = vst [vmem:[%s2870_s14 + $0x88] sm:$0xff] %v2082_v15  }
 0x1a5   : > { %2099 = vst [vmem:[%s2870_s14 + $0x80] sm:$0xff] %v2077_v16  }
 0x1a6 PF: > { %s15_s12 = sadd.s32 1, %s2574_s12  }
 0x1a7   : > { %p12_p9 = scmp.ge.s32.totalorder %s15_s12, 4  }
 0x1a9   :  { %14 = sbr.rel (!%p12_p9) target bundleno = 2 (0x2), region = 73 }
 0x1b0   :  { %1731 = vsyncpa [#allocation3], 1 }
 0x1b1   :  { %1733 = vsyncpa [#allocation3 + $0x1], 1 }
 0x1b2   :  { %1734 = vsyncpa [#allocation5], 1 }

// kernel: heatmap3d_head_forward.5
= control target key start
LH: loop header
LB: loop body
LE: loop exit
PB: predicated region body
PF: predicated region fallthrough
CT: control target
= control target key end

     0   :  { %s6988_s18 = smov 0   ;;  %s8273_s0 = inlined_call_operand.vmem [shape: bf16[3136,96], index: 0, kind: input, shape index: {}]   ;;  %s8274_s1 = inlined_call_operand.vmem [shape: bf16[3,96,128], index: 1, kind: input, shape index: {}]   ;;  %s8275_s2 = inlined_call_operand.vmem [shape: f32[1,128], index: 2, kind: input, shape index: {}]   ;;  %s8276_s3 = inlined_call_operand.vmem [shape: bf16[128,128], index: 3, kind: input, shape index: {}]   ;;  %s8277_s4 = inlined_call_operand.vmem [shape: f32[1,128], index: 4, kind: input, shape index: {}]   ;;  %s8278_s5 = inlined_call_operand.vmem [shape: f32[3072,128], index: 5, kind: output, shape index: {}]  }
   0x1 LB: > { %s5173_s19 = sadd.s32 4294967295, %s6956_s18   ;;  %p5176_p0 = scmp.ge.s32.totalorder %s6956_s18, 1  ;;  %s6956_s18 = sphi %s6988_s18, %s15_s18  }
   0x2   : > { %p177_p1 = scmp.lt.s32.totalorder %s6956_s18, 4 }
   0x4   : > { %p178_p2 = pnand %p5176_p0, %p177_p1 }
   0x6   : > { %181 = sbr.rel (%p178_p2) target bundleno = 984 (0x3d8), region = 40 }
   0xd   : > { %v6731_v0 = vld [vmem:[%s8274_s1] sm:$0xff]   ;;  %s7001_s22 = sshll.u32 %s5173_s19, 10  ;;  %v6732_v1 = vld [vmem:[%s8274_s1 + $0x8] sm:$0xff]   ;;  %v6733_v2 = vld [vmem:[%s8274_s1 + $0x10] sm:$0xff]   ;;  %vm854_vm0 = vcmask 785408  }
   0xe   : > { %s208_s25 = sshra.s32 %s7001_s22, 3  ;;  %6043 = vmatprep.subr.bf16.mxu0 %v6731_v0  ;;  %v6734_v4 = vld [vmem:[%s8274_s1 + $0x18] sm:$0xff]   ;;  %v6735_v5 = vld [vmem:[%s8274_s1 + $0x20] sm:$0xff]   ;;  %v6736_v6 = vld [vmem:[%s8274_s1 + $0x28] sm:$0xff]   ;;  %s2685_s24 = sadd.s32 64, %s7001_s22 }
   0xf   : > { %s5180_s26 = sshll.u32 %s208_s25, 2  ;;  %6044 = vmatpush3.bf16.msra.mxu0 %v6731_v0  ;;  %v6739_v7 = vld [vmem:[%s8274_s1 + $0x60] sm:$0xff]   ;;  %v6750_v10 = vld [vmem:[%s8274_s1 + $0x68] sm:$0xff]   ;;  %v6761_v12 = vld [vmem:[%s8274_s1 + $0x70] sm:$0xff]   ;;  %s2686_s25 = sshra.s32 %s2685_s24, 3 }
  0x10   : > { %s7010_s29 = scalar_lea.vmem %s8273_s0, %s5180_s26  ;;  %6045 = vmatprep.subr.bf16.mxu0 %v6732_v1  ;;  %v6774_v16 = vld [vmem:[%s8274_s1 + $0x78] sm:$0xff]   ;;  %v6785_v23 = vld [vmem:[%s8274_s1 + $0x80] sm:$0xff]   ;;  %s5462_s28 = sshll.u32 %s2686_s25, 2  ;;  %v6792_v30 = vld [vmem:[%s8274_s1 + $0x30] sm:$0xff]  }
  0x11   : > { %v6737_v3 = vld [vmem:[%s7010_s29] sm:$0xff]   ;;  %v6738_v8 = vld [vmem:[%s7010_s29 + $0x8] sm:$0xff]   ;;  %v6740_v9 = vld [vmem:[%s7010_s29 + $0x10] sm:$0xff]   ;;  %s7071_s7 = scalar_lea.vmem %s8273_s0, %s5462_s28  ;;  %5903 = vmatprep.subr.bf16.mxu1 %v6792_v30  ;;  %s352_s23 = sadd.s32 32, %s7001_s22 }
  0x12   : > { %6055 = vmatprep.mubr.msk.bf16.mxu0 %vm854_vm0, %v6737_v3  ;;  %v6741_v11 = vld [vmem:[%s7010_s29 + $0x18] sm:$0xff]   ;;  %v6742_v13 = vld [vmem:[%s7010_s29 + $0x20] sm:$0xff]   ;;  %v6743_v14 = vld [vmem:[%s7010_s29 + $0x28] sm:$0xff]   ;;  %5904 = vmatpush3.bf16.msra.mxu1 %v6792_v30  ;;  %s353_s26 = sshra.s32 %s352_s23, 3  ;;  %s5177_s28 = sshll.u32 %s5173_s19, 7 }
  0x13   : > { %6046 = vmatpush3.bf16.msra.mxu0 %v6732_v1  ;;  %v6744_v15 = vld [vmem:[%s7010_s29 + $0x30] sm:$0xff]   ;;  %v6745_v17 = vld [vmem:[%s7010_s29 + $0x38] sm:$0xff]   ;;  %v6746_v18 = vld [vmem:[%s7010_s29 + $0x40] sm:$0xff]   ;;  %s5181_s27 = sshll.u32 %s353_s26, 2  ;;  %p201_p3 = scmp.lt.s32.totalorder %s5177_s28, 383 }
  0x14   : > { %6047 = vmatprep.subr.bf16.mxu0 %v6733_v2  ;;  %v6747_v19 = vld [vmem:[%s7010_s29 + $0x48] sm:$0xff]   ;;  %v6748_v20 = vld [vmem:[%s7010_s29 + $0x50] sm:$0xff]   ;;  %v6749_v21 = vld [vmem:[%s7010_s29 + $0x58] sm:$0xff]   ;;  %s7120_s6 = scalar_lea.vmem %s8273_s0, %s5181_s27 }
  0x15   : > { %v6751_v22 = vld [vmem:[%s7010_s29 + $0x60] sm:$0xff]   ;;  %v6752_v24 = vld [vmem:[%s7010_s29 + $0x68] sm:$0xff]   ;;  %v6753_v25 = vld [vmem:[%s7010_s29 + $0x70] sm:$0xff]   ;;  %s8362_s28 = smov (!%p201_p3, %s5177_s28), 383 }
  0x16   : > { %v6754_v26 = vld [vmem:[%s7010_s29 + $0x78] sm:$0xff]   ;;  %v6755_v27 = vld [vmem:[%s7010_s29 + $0x80] sm:$0xff]   ;;  %v6756_v28 = vld [vmem:[%s7010_s29 + $0x88] sm:$0xff]   ;;  %s5178_s19 = sshll.u32 %s8362_s28, 3 }
  0x17   : > { %6048 = vmatpush3.bf16.msra.mxu0 %v6733_v2  ;;  %v6757_v29 = vld [vmem:[%s7010_s29 + $0x90] sm:$0xff]   ;;  %v6758_v31 = vld [vmem:[%s7010_s29 + $0x98] sm:$0xff]   ;;  %v6759_v32 = vld [vmem:[%s7010_s29 + $0xa0] sm:$0xff]   ;;  %s7980_s9 = scalar_lea.vmem %s8278_s5, %s5178_s19 }
  0x18   : > { %6049 = vmatprep.subr.bf16.mxu0 %v6734_v4  ;;  %v6795_v33 = vld [vmem:[%s8274_s1 + $0x38] sm:$0xff]   ;;  %v6796_v34 = vld [vmem:[%s8274_s1 + $0x40] sm:$0xff]   ;;  %v6760_v35 = vld [vmem:[%s7010_s29 + $0xa8] sm:$0xff]  }
  0x19   : > { %5905 = vmatprep.subr.bf16.mxu1 %v6795_v33  ;;  %v6762_v36 = vld [vmem:[%s7010_s29 + $0xb0] sm:$0xff]   ;;  %v6799_v37 = vld [vmem:[%s8274_s1 + $0x48] sm:$0xff]   ;;  %v6763_v40 = vld [vmem:[%s7010_s29 + $0xb8] sm:$0xff]  }
  0x1a   : > { %5906 = vmatpush3.bf16.msra.mxu1 %v6795_v33  ;;  %v6800_v38 = vld [vmem:[%s8274_s1 + $0x50] sm:$0xff]   ;;  %v6801_v39 = vld [vmem:[%s8274_s1 + $0x88] sm:$0xff]   ;;  %v6764_v41 = vld [vmem:[%s7010_s29 + $0xc0] sm:$0xff]  }
  0x1b   : > { %6050 = vmatpush3.bf16.msra.mxu0 %v6734_v4  ;;  %5907 = vmatprep.subr.bf16.mxu1 %v6796_v34  ;;  %v6804_v42 = vld [vmem:[%s8274_s1 + $0x58] sm:$0xff]   ;;  %v6765_v43 = vld [vmem:[%s7010_s29 + $0xc8] sm:$0xff]   ;;  %v6805_v44 = vld [vmem:[%s7120_s6] sm:$0xff]  }
  0x1c   : > { %6051 = vmatprep.subr.bf16.mxu0 %v6735_v5  ;;  %v6766_v45 = vld [vmem:[%s7010_s29 + $0xd0] sm:$0xff]   ;;  %v6806_v46 = vld [vmem:[%s7120_s6 + $0x8] sm:$0xff]   ;;  %5915 = vmatprep.mubr.msk.bf16.mxu1 %vm854_vm0, %v6805_v44  ;;  %v6809_v47 = vld [vmem:[%s8276_s3] sm:$0xff]  }
  0x1d   : > { %v6810_v48 = vld [vmem:[%s7120_s6 + $0x10] sm:$0xff]   ;;  %v6811_v49 = vld [vmem:[%s7120_s6 + $0x18] sm:$0xff]   ;;  %v6768_v51 = vld [vmem:[%s7010_s29 + $0xe0] sm:$0xff]  }
  0x1e   : > { %5908 = vmatpush3.bf16.msra.mxu1 %v6796_v34  ;;  %v6767_v50 = vld [vmem:[%s7010_s29 + $0xd8] sm:$0xff]   ;;  %v6814_v52 = vld [vmem:[%s7120_s6 + $0x20] sm:$0xff]   ;;  %v6815_v53 = vld [vmem:[%s7120_s6 + $0x28] sm:$0xff]  }
  0x1f   : > { %6052 = vmatpush3.bf16.msra.mxu0 %v6735_v5  ;;  %5909 = vmatprep.subr.bf16.mxu1 %v6799_v37  ;;  %v6769_v54 = vld [vmem:[%s7010_s29 + $0xe8] sm:$0xff]   ;;  %v6770_v55 = vld [vmem:[%s7010_s29 + $0xf0] sm:$0xff]   ;;  %v6819_v57 = vld [vmem:[%s7120_s6 + $0x38] sm:$0xff]  }
  0x20   : > { %6053 = vmatprep.subr.bf16.mxu0 %v6736_v6  ;;  %v6818_v56 = vld [vmem:[%s7120_s6 + $0x30] sm:$0xff]   ;;  %v6771_v58 = vld [vmem:[%s7010_s29 + $0xf8] sm:$0xff]   ;;  %v6772_v59 = vld [vmem:[%s7010_s29 + $0x100] sm:$0xff]  }
  0x21   : > { %v6822_v60 = vld [vmem:[%s7120_s6 + $0x40] sm:$0xff]   ;;  %v6823_v61 = vld [vmem:[%s7120_s6 + $0x48] sm:$0xff]   ;;  %v6775_v63 = vld [vmem:[%s7010_s29 + $0x110] sm:$0xff]  }
  0x22   : > { %5910 = vmatpush3.bf16.msra.mxu1 %v6799_v37  ;;  %v6773_v62 = vld [vmem:[%s7010_s29 + $0x108] sm:$0xff]   ;;  %v6827_v1 = vld [vmem:[%s7120_s6 + $0x50] sm:$0xff]   ;;  %v6828_v2 = vld [vmem:[%s7120_s6 + $0x58] sm:$0xff]  }
  0x23   : > { %6054 = vmatpush3.bf16.msra.mxu0 %v6736_v6  ;;  %5911 = vmatprep.subr.bf16.mxu1 %v6800_v38  ;;  %v6826_v0 = vld [vmem:[%s8276_s3 + $0x8] sm:$0xff]   ;;  %v6776_v3 = vld [vmem:[%s7010_s29 + $0x118] sm:$0xff]   ;;  %v6777_v4 = vld [vmem:[%s7010_s29 + $0x120] sm:$0xff]  }
  0x24   : > { %6183 = vmatprep.subr.bf16.mxu0 %v6739_v7  ;;  %v6831_v5 = vld [vmem:[%s7120_s6 + $0x60] sm:$0xff]   ;;  %v6832_v6 = vld [vmem:[%s7120_s6 + $0x68] sm:$0xff]   ;;  %v6793_v33 = vld [vmem:[%s7010_s29 + $0x190] sm:$0xff]  }
  0x25   : > { %v6856_v30 = vld [vmem:[%s7120_s6 + $0xc0] sm:$0xff]   ;;  %v6860_v34 = vld [vmem:[%s8276_s3 + $0x18] sm:$0xff]  }
  0x26   : > { %6056 = vmatmul.mubr.msk.bf16.vlgmr.msra.gmra.mrb[0].mxu0 %vm854_vm0, %v6738_v8  ;;  %5912 = vmatpush3.bf16.msra.mxu1 %v6800_v38  ;;  %v6779_v8 = vld [vmem:[%s7010_s29 + $0x130] sm:$0xff]   ;;  %v6794_v37 = vld [vmem:[%s7010_s29 + $0x198] sm:$0xff]   ;;  %v6797_v38 = vld [vmem:[%s7010_s29 + $0x1a0] sm:$0xff]  }
  0x27   : > { %6184 = vmatpush3.bf16.msra.mxu0 %v6739_v7  ;;  %6059 = vmatprep.mubr.msk.bf16.mxu0 %vm854_vm0, %v6740_v9  ;;  %v6778_v7 = vld [vmem:[%s7010_s29 + $0x128] sm:$0xff]   ;;  %v6835_v9 = vld [vmem:[%s7120_s6 + $0x70] sm:$0xff]   ;;  %v6870_v44 = vld [vmem:[%s7120_s6 + $0xf8] sm:$0xff]  }
  0x28   : > { %6185 = vmatprep.subr.bf16.mxu0 %v6750_v10  ;;  %5913 = vmatprep.subr.bf16.mxu1 %v6804_v42 }
  0x2a   : > { %5914 = vmatpush3.bf16.msra.mxu1 %v6804_v42  ;;  %v6802_v42 = vld [vmem:[%s7010_s29 + $0x1b0] sm:$0xff]  }
  0x2b   : > { %6186 = vmatpush3.bf16.msra.mxu0 %v6750_v10  ;;  %6323 = vmatprep.subr.bf16.mxu1 %v6809_v47  ;;  %v6836_v10 = vld [vmem:[%s7120_s6 + $0x78] sm:$0xff]  }
  0x2c   : > { %6187 = vmatprep.subr.bf16.mxu0 %v6761_v12 }
  0x2d   : > { %5916 = vmatmul.mubr.msk.bf16.vlgmr.msra.gmra.mrb[0].mxu1 %vm854_vm0, %v6806_v46  ;;  %v6807_v46 = vld [vmem:[%s7010_s29 + $0x1c0] sm:$0xff]  }
  0x2e   : > { %6060 = vmatmul.mubr.msk.bf16.gmra.mrb[4].mxu0 %vm854_vm0, %v6741_v11  ;;  %5919 = vmatprep.mubr.msk.bf16.mxu1 %vm854_vm0, %v6810_v48  ;;  %v6780_v11 = vld [vmem:[%s7010_s29 + $0x138] sm:$0xff]   ;;  %v6874_v48 = vld [vmem:[%s7120_s6 + $0x108] sm:$0xff]  }
  0x2f   : > { %6063 = vmatprep.mubr.msk.bf16.mxu0 %vm854_vm0, %v6742_v13  ;;  %6188 = vmatpush3.bf16.msra.mxu0 %v6761_v12  ;;  %v6781_v12 = vld [vmem:[%s7010_s29 + $0x140] sm:$0xff]  }
  0x30   : > { %6189 = vmatprep.subr.bf16.mxu0 %v6774_v16  ;;  %6324 = vmatpush3.bf16.msra.mxu1 %v6809_v47  ;;  %v6839_v13 = vld [vmem:[%s7120_s6 + $0x80] sm:$0xff]  }
  0x31   : > { %6325 = vmatprep.subr.bf16.mxu1 %v6826_v0  ;;  %v6873_v47 = vld [vmem:[%s7120_s6 + $0x100] sm:$0xff]  }
  0x33   : > { %6190 = vmatpush3.bf16.msra.mxu0 %v6774_v16  ;;  %v6783_v16 = vld [vmem:[%s7010_s29 + $0x150] sm:$0xff]  }
  0x34   : > { %6191 = vmatprep.subr.bf16.mxu0 %v6785_v23  ;;  %6326 = vmatpush3.bf16.msra.mxu1 %v6826_v0  ;;  %v6890_v0 = vld [vmem:[%s7120_s6 + $0x140] sm:$0xff]  }
  0x35   : > { %5920 = vmatmul.mubr.msk.bf16.gmra.mrb[4].mxu1 %vm854_vm0, %v6811_v49  ;;  %v6808_v49 = vld [vmem:[%s7010_s29 + $0x1c8] sm:$0xff]  }
  0x36   : > { %6064 = vmatmul.mubr.msk.bf16.gmra.mrb[8].mxu0 %vm854_vm0, %v6743_v14  ;;  %5923 = vmatprep.mubr.msk.bf16.mxu1 %vm854_vm0, %v6814_v52  ;;  %v6840_v14 = vld [vmem:[%s7120_s6 + $0x88] sm:$0xff]   ;;  %v6878_v52 = vld [vmem:[%s7120_s6 + $0x110] sm:$0xff]  }
  0x37   : > { %6067 = vmatprep.mubr.msk.bf16.mxu0 %vm854_vm0, %v6744_v15  ;;  %6192 = vmatpush3.bf16.msra.mxu0 %v6785_v23  ;;  %v6782_v15 = vld [vmem:[%s7010_s29 + $0x148] sm:$0xff]  }
  0x38   : > { %6193 = vmatprep.subr.bf16.mxu0 %v6801_v39  ;;  %v6849_v23 = vld [vmem:[%s7120_s6 + $0xa8] sm:$0xff]  }
  0x3b   : > { %6194 = vmatpush3.bf16.msra.mxu0 %v6801_v39  ;;  %v6865_v39 = vld [vmem:[%s7120_s6 + $0xe0] sm:$0xff]  }
  0x3d   : > { %5924 = vmatmul.mubr.msk.bf16.gmra.mrb[8].mxu1 %vm854_vm0, %v6815_v53  ;;  %v6879_v53 = vld [vmem:[%s7120_s6 + $0x118] sm:$0xff]  }
  0x3e   : > { %6068 = vmatmul.mubr.msk.bf16.gmra.mrb[12].mxu0 %vm854_vm0, %v6745_v17  ;;  %5927 = vmatprep.mubr.msk.bf16.mxu1 %vm854_vm0, %v6818_v56  ;;  %v6843_v17 = vld [vmem:[%s8276_s3 + $0x10] sm:$0xff]   ;;  %v6882_v56 = vld [vmem:[%s7120_s6 + $0x120] sm:$0xff]  }
  0x3f   : > { %6071 = vmatprep.mubr.msk.bf16.mxu0 %vm854_vm0, %v6746_v18  ;;  %v6844_v18 = vld [vmem:[%s7120_s6 + $0x90] sm:$0xff]   ;;  %6327 = vmatprep.subr.bf16.mxu1 %v6843_v17 }
  0x40   : > { %6328 = vmatpush3.bf16.msra.mxu1 %v6843_v17  ;;  %v6907_v17 = vld [vmem:[%s7120_s6 + $0x180] sm:$0xff]  }
  0x41   : > { %6329 = vmatprep.subr.bf16.mxu1 %v6860_v34 }
  0x44   : > { %6330 = vmatpush3.bf16.msra.mxu1 %v6860_v34 }
  0x45   : > { %5928 = vmatmul.mubr.msk.bf16.gmra.mrb[12].mxu1 %vm854_vm0, %v6819_v57  ;;  %v6883_v57 = vld [vmem:[%s7120_s6 + $0x128] sm:$0xff]  }
  0x46   : > { %6072 = vmatmul.mubr.msk.bf16.gmra.mrb[16].mxu0 %vm854_vm0, %v6747_v19  ;;  %5931 = vmatprep.mubr.msk.bf16.mxu1 %vm854_vm0, %v6822_v60  ;;  %v6845_v19 = vld [vmem:[%s7120_s6 + $0x98] sm:$0xff]   ;;  %v6886_v60 = vld [vmem:[%s7120_s6 + $0x130] sm:$0xff]  }
  0x47   : > { %6075 = vmatprep.mubr.msk.bf16.mxu0 %vm854_vm0, %v6748_v20  ;;  %v6784_v20 = vld [vmem:[%s7010_s29 + $0x158] sm:$0xff]  }
  0x4d   : > { %5932 = vmatmul.mubr.msk.bf16.gmra.mrb[16].mxu1 %vm854_vm0, %v6823_v61  ;;  %v6887_v61 = vld [vmem:[%s7120_s6 + $0x138] sm:$0xff]  }
  0x4e   : > { %6076 = vmatmul.mubr.msk.bf16.gmra.mrb[20].mxu0 %vm854_vm0, %v6749_v21  ;;  %5935 = vmatprep.mubr.msk.bf16.mxu1 %vm854_vm0, %v6827_v1  ;;  %v6786_v21 = vld [vmem:[%s7010_s29 + $0x160] sm:$0xff]   ;;  %v6891_v1 = vld [vmem:[%s7120_s6 + $0x148] sm:$0xff]  }
  0x4f   : > { %6079 = vmatprep.mubr.msk.bf16.mxu0 %vm854_vm0, %v6751_v22  ;;  %v6848_v22 = vld [vmem:[%s7120_s6 + $0xa0] sm:$0xff]  }
  0x55   : > { %5936 = vmatmul.mubr.msk.bf16.gmra.mrb[20].mxu1 %vm854_vm0, %v6828_v2  ;;  %v6825_v2 = vld [vmem:[%s7071_s7 + $0x8] sm:$0xff]  }
  0x56   : > { %6080 = vmatmul.mubr.msk.bf16.gmra.mrb[24].mxu0 %vm854_vm0, %v6752_v24  ;;  %5939 = vmatprep.mubr.msk.bf16.mxu1 %vm854_vm0, %v6831_v5  ;;  %v6787_v24 = vld [vmem:[%s7010_s29 + $0x168] sm:$0xff]   ;;  %v6895_v5 = vld [vmem:[%s7120_s6 + $0x150] sm:$0xff]  }
  0x57   : > { %6083 = vmatprep.mubr.msk.bf16.mxu0 %vm854_vm0, %v6753_v25  ;;  %v6788_v25 = vld [vmem:[%s7010_s29 + $0x170] sm:$0xff]  }
  0x5d   : > { %5940 = vmatmul.mubr.msk.bf16.gmra.mrb[24].mxu1 %vm854_vm0, %v6832_v6  ;;  %v6896_v6 = vld [vmem:[%s7120_s6 + $0x158] sm:$0xff]  }
  0x5e   : > { %6084 = vmatmul.mubr.msk.bf16.gmra.mrb[28].mxu0 %vm854_vm0, %v6754_v26  ;;  %5943 = vmatprep.mubr.msk.bf16.mxu1 %vm854_vm0, %v6835_v9  ;;  %v6852_v26 = vld [vmem:[%s7120_s6 + $0xb0] sm:$0xff]   ;;  %v6899_v9 = vld [vmem:[%s7120_s6 + $0x160] sm:$0xff]  }
  0x5f   : > { %6087 = vmatprep.mubr.msk.bf16.mxu0 %vm854_vm0, %v6755_v27  ;;  %v6853_v27 = vld [vmem:[%s7120_s6 + $0xb8] sm:$0xff]  }
  0x65   : > { %5944 = vmatmul.mubr.msk.bf16.gmra.mrb[28].mxu1 %vm854_vm0, %v6836_v10  ;;  %v6900_v10 = vld [vmem:[%s7120_s6 + $0x168] sm:$0xff]  }
  0x66   : > { %6088 = vmatmul.mubr.msk.bf16.gmra.mrb[32].mxu0 %vm854_vm0, %v6756_v28  ;;  %5947 = vmatprep.mubr.msk.bf16.mxu1 %vm854_vm0, %v6839_v13  ;;  %v6789_v28 = vld [vmem:[%s7010_s29 + $0x178] sm:$0xff]   ;;  %v6903_v13 = vld [vmem:[%s7120_s6 + $0x170] sm:$0xff]  }
  0x67   : > { %6091 = vmatprep.mubr.msk.bf16.mxu0 %vm854_vm0, %v6757_v29  ;;  %v6790_v29 = vld [vmem:[%s7010_s29 + $0x180] sm:$0xff]  }
  0x6d   : > { %5948 = vmatmul.mubr.msk.bf16.gmra.mrb[32].mxu1 %vm854_vm0, %v6840_v14  ;;  %v6904_v14 = vld [vmem:[%s7120_s6 + $0x178] sm:$0xff]  }
  0x6e   : > { %6092 = vmatmul.mubr.msk.bf16.gmra.mrb[36].mxu0 %vm854_vm0, %v6758_v31  ;;  %5951 = vmatprep.mubr.msk.bf16.mxu1 %vm854_vm0, %v6844_v18  ;;  %v6857_v31 = vld [vmem:[%s7120_s6 + $0xc8] sm:$0xff]  }
  0x6f   : > { %6095 = vmatprep.mubr.msk.bf16.mxu0 %vm854_vm0, %v6759_v32  ;;  %v6791_v32 = vld [vmem:[%s7010_s29 + $0x188] sm:$0xff]  }
  0x70   : > { %v6908_v18 = vld [vmem:[%s7120_s6 + $0x188] sm:$0xff]  }
  0x75   : > { %5952 = vmatmul.mubr.msk.bf16.gmra.mrb[36].mxu1 %vm854_vm0, %v6845_v19  ;;  %v6842_v19 = vld [vmem:[%s7071_s7 + $0x48] sm:$0xff]  }
  0x76   : > { %6096 = vmatmul.mubr.msk.bf16.gmra.mrb[40].mxu0 %vm854_vm0, %v6760_v35  ;;  %5955 = vmatprep.mubr.msk.bf16.mxu1 %vm854_vm0, %v6848_v22  ;;  %v6861_v35 = vld [vmem:[%s7120_s6 + $0xd0] sm:$0xff]  }
  0x77   : > { %6099 = vmatprep.mubr.msk.bf16.mxu0 %vm854_vm0, %v6762_v36  ;;  %v6862_v36 = vld [vmem:[%s7120_s6 + $0xd8] sm:$0xff]   ;;  %v6912_v22 = vld [vmem:[%s7120_s6 + $0x190] sm:$0xff]  }
  0x7d   : > { %5956 = vmatmul.mubr.msk.bf16.gmra.mrb[40].mxu1 %vm854_vm0, %v6849_v23  ;;  %v6913_v23 = vld [vmem:[%s7120_s6 + $0x198] sm:$0xff]  }
  0x7e   : > { %6100 = vmatmul.mubr.msk.bf16.gmra.mrb[44].mxu0 %vm854_vm0, %v6763_v40  ;;  %5959 = vmatprep.mubr.msk.bf16.mxu1 %vm854_vm0, %v6852_v26  ;;  %v6866_v40 = vld [vmem:[%s7120_s6 + $0xe8] sm:$0xff]   ;;  %v6916_v26 = vld [vmem:[%s7120_s6 + $0x1a0] sm:$0xff]  }
  0x7f   : > { %6103 = vmatprep.mubr.msk.bf16.mxu0 %vm854_vm0, %v6764_v41  ;;  %v6798_v41 = vld [vmem:[%s7010_s29 + $0x1a8] sm:$0xff]  }
  0x85   : > { %5960 = vmatmul.mubr.msk.bf16.gmra.mrb[44].mxu1 %vm854_vm0, %v6853_v27  ;;  %v6917_v27 = vld [vmem:[%s7120_s6 + $0x1a8] sm:$0xff]  }
  0x86   : > { %6104 = vmatmul.mubr.msk.bf16.gmra.mrb[48].mxu0 %vm854_vm0, %v6765_v43  ;;  %5963 = vmatprep.mubr.msk.bf16.mxu1 %vm854_vm0, %v6856_v30  ;;  %v6869_v43 = vld [vmem:[%s7120_s6 + $0xf0] sm:$0xff]  }
  0x87   : > { %6107 = vmatprep.mubr.msk.bf16.mxu0 %vm854_vm0, %v6766_v45  ;;  %v6803_v45 = vld [vmem:[%s7010_s29 + $0x1b8] sm:$0xff]  }
  0x8d   : > { %5964 = vmatmul.mubr.msk.bf16.gmra.mrb[48].mxu1 %vm854_vm0, %v6857_v31  ;;  %v6920_v31 = vld [vmem:[%s7120_s6 + $0x1b0] sm:$0xff]  }
  0x8e   : > { %6108 = vmatmul.mubr.msk.bf16.gmra.mrb[52].mxu0 %vm854_vm0, %v6767_v50  ;;  %5967 = vmatprep.mubr.msk.bf16.mxu1 %vm854_vm0, %v6861_v35  ;;  %v6812_v50 = vld [vmem:[%s7010_s29 + $0x1d0] sm:$0xff]  }
  0x8f   : > { %6111 = vmatprep.mubr.msk.bf16.mxu0 %vm854_vm0, %v6768_v51  ;;  %v6877_v51 = vld [vmem:[%s8276_s3 + $0x20] sm:$0xff]  }
  0x90   : > { %6331 = vmatprep.subr.bf16.mxu1 %v6877_v51 }
  0x91   : > { %6332 = vmatpush3.bf16.msra.mxu1 %v6877_v51 }
  0x95   : > { %5968 = vmatmul.mubr.msk.bf16.gmra.mrb[52].mxu1 %vm854_vm0, %v6862_v36  ;;  %v6855_v36 = vld [vmem:[%s7071_s7 + $0x78] sm:$0xff]  }
  0x96   : > { %6112 = vmatmul.mubr.msk.bf16.gmra.mrb[56].mxu0 %vm854_vm0, %v6769_v54  ;;  %5971 = vmatprep.mubr.msk.bf16.mxu1 %vm854_vm0, %v6865_v39  ;;  %v6813_v54 = vld [vmem:[%s7010_s29 + $0x1d8] sm:$0xff]   ;;  %v6924_v39 = vld [vmem:[%s7120_s6 + $0x1c0] sm:$0xff]  }
  0x97   : > { %6115 = vmatprep.mubr.msk.bf16.mxu0 %vm854_vm0, %v6770_v55  ;;  %v6816_v55 = vld [vmem:[%s7010_s29 + $0x1e0] sm:$0xff]  }
  0x9d   : > { %5972 = vmatmul.mubr.msk.bf16.gmra.mrb[56].mxu1 %vm854_vm0, %v6866_v40 }
  0x9e   : > { %6116 = vmatmul.mubr.msk.bf16.gmra.mrb[60].mxu0 %vm854_vm0, %v6771_v58  ;;  %5975 = vmatprep.mubr.msk.bf16.mxu1 %vm854_vm0, %v6869_v43  ;;  %v6817_v58 = vld [vmem:[%s7010_s29 + $0x1e8] sm:$0xff]  }
  0x9f   : > { %6119 = vmatprep.mubr.msk.bf16.mxu0 %vm854_vm0, %v6772_v59  ;;  %v6820_v59 = vld [vmem:[%s7010_s29 + $0x1f0] sm:$0xff]  }
  0xa5   : > { %5976 = vmatmul.mubr.msk.bf16.gmra.mrb[60].mxu1 %vm854_vm0, %v6870_v44  ;;  %v6859_v44 = vld [vmem:[%s7071_s7 + $0x88] sm:$0xff]  }
  0xa6   : > { %6120 = vmatmul.mubr.msk.bf16.gmra.mrb[64].mxu0 %vm854_vm0, %v6773_v62  ;;  %5979 = vmatprep.mubr.msk.bf16.mxu1 %vm854_vm0, %v6873_v47  ;;  %v6821_v62 = vld [vmem:[%s7010_s29 + $0x1f8] sm:$0xff]  }
  0xa7   : > { %6123 = vmatprep.mubr.msk.bf16.mxu0 %vm854_vm0, %v6775_v63  ;;  %v6824_v63 = vld [vmem:[%s7071_s7] sm:$0xff]  }
  0xad   : > { %5980 = vmatmul.mubr.msk.bf16.gmra.mrb[64].mxu1 %vm854_vm0, %v6874_v48  ;;  %v6929_v48 = vld [vmem:[%s7120_s6 + $0x1d0] sm:$0xff]  }
  0xae   : > { %6124 = vmatmul.mubr.msk.bf16.gmra.mrb[68].mxu0 %vm854_vm0, %v6776_v3  ;;  %5983 = vmatprep.mubr.msk.bf16.mxu1 %vm854_vm0, %v6878_v52  ;;  %v6829_v3 = vld [vmem:[%s7071_s7 + $0x10] sm:$0xff]  }
  0xaf   : > { %6127 = vmatprep.mubr.msk.bf16.mxu0 %vm854_vm0, %v6777_v4  ;;  %v6894_v4 = vld [vmem:[%s8276_s3 + $0x28] sm:$0xff]  }
  0xb0   : > { %6333 = vmatprep.subr.bf16.mxu1 %v6894_v4 }
  0xb1   : > { %6334 = vmatpush3.bf16.msra.mxu1 %v6894_v4  ;;  %v6938_v4 = vld [vmem:[%s7120_s6 + $0x1f8] sm:$0xff]  }
  0xb5   : > { %5984 = vmatmul.mubr.msk.bf16.gmra.mrb[68].mxu1 %vm854_vm0, %v6879_v53  ;;  %v6864_v53 = vld [vmem:[%s7071_s7 + $0x98] sm:$0xff]  }
  0xb6   : > { %6128 = vmatmul.mubr.msk.bf16.gmra.mrb[72].mxu0 %vm854_vm0, %v6778_v7  ;;  %5987 = vmatprep.mubr.msk.bf16.mxu1 %vm854_vm0, %v6882_v56  ;;  %v6830_v7 = vld [vmem:[%s7071_s7 + $0x18] sm:$0xff]   ;;  %v6933_v56 = vld [vmem:[%s7120_s6 + $0x1e0] sm:$0xff]  }
  0xb7   : > { %6131 = vmatprep.mubr.msk.bf16.mxu0 %vm854_vm0, %v6779_v8  ;;  %v6833_v8 = vld [vmem:[%s7071_s7 + $0x20] sm:$0xff]  }
  0xbd   : > { %5988 = vmatmul.mubr.msk.bf16.gmra.mrb[72].mxu1 %vm854_vm0, %v6883_v57 }
  0xbe   : > { %6132 = vmatmul.mubr.msk.bf16.gmra.mrb[76].mxu0 %vm854_vm0, %v6780_v11  ;;  %5991 = vmatprep.mubr.msk.bf16.mxu1 %vm854_vm0, %v6886_v60  ;;  %v6834_v11 = vld [vmem:[%s7071_s7 + $0x28] sm:$0xff]  }
  0xbf   : > { %6135 = vmatprep.mubr.msk.bf16.mxu0 %vm854_vm0, %v6781_v12  ;;  %v6837_v12 = vld [vmem:[%s7071_s7 + $0x30] sm:$0xff]  }
  0xc5   : > { %5992 = vmatmul.mubr.msk.bf16.gmra.mrb[76].mxu1 %vm854_vm0, %v6887_v61  ;;  %v6868_v61 = vld [vmem:[%s7071_s7 + $0xa8] sm:$0xff]  }
  0xc6   : > { %6136 = vmatmul.mubr.msk.bf16.gmra.mrb[80].mxu0 %vm854_vm0, %v6782_v15  ;;  %5995 = vmatprep.mubr.msk.bf16.mxu1 %vm854_vm0, %v6890_v0  ;;  %v6838_v15 = vld [vmem:[%s7071_s7 + $0x38] sm:$0xff]  }
  0xc7   : > { %6139 = vmatprep.mubr.msk.bf16.mxu0 %vm854_vm0, %v6783_v16  ;;  %v6841_v16 = vld [vmem:[%s7071_s7 + $0x40] sm:$0xff]  }
  0xcd   : > { %5996 = vmatmul.mubr.msk.bf16.gmra.mrb[80].mxu1 %vm854_vm0, %v6891_v1 }
  0xce   : > { %6140 = vmatmul.mubr.msk.bf16.gmra.mrb[84].mxu0 %vm854_vm0, %v6784_v20  ;;  %5999 = vmatprep.mubr.msk.bf16.mxu1 %vm854_vm0, %v6895_v5  ;;  %v6846_v20 = vld [vmem:[%s7071_s7 + $0x50] sm:$0xff]   ;;  %v6872_v5 = vld [vmem:[%s7071_s7 + $0xb8] sm:$0xff]  }
  0xcf   : > { %6143 = vmatprep.mubr.msk.bf16.mxu0 %vm854_vm0, %v6786_v21  ;;  %v6911_v21 = vld [vmem:[%s8276_s3 + $0x30] sm:$0xff]  }
  0xd0   : > { %6335 = vmatprep.subr.bf16.mxu1 %v6911_v21 }
  0xd1   : > { %6336 = vmatpush3.bf16.msra.mxu1 %v6911_v21 }
  0xd5   : > { %6000 = vmatmul.mubr.msk.bf16.gmra.mrb[84].mxu1 %vm854_vm0, %v6896_v6  ;;  %v6875_v6 = vld [vmem:[%s7071_s7 + $0xc0] sm:$0xff]  }
  0xd6   : > { %6144 = vmatmul.mubr.msk.bf16.gmra.mrb[88].mxu0 %vm854_vm0, %v6787_v24  ;;  %6003 = vmatprep.mubr.msk.bf16.mxu1 %vm854_vm0, %v6899_v9  ;;  %v6847_v24 = vld [vmem:[%s7071_s7 + $0x58] sm:$0xff]  }
  0xd7   : > { %6147 = vmatprep.mubr.msk.bf16.mxu0 %vm854_vm0, %v6788_v25  ;;  %v6850_v25 = vld [vmem:[%s7071_s7 + $0x60] sm:$0xff]  }
  0xdd   : > { %6004 = vmatmul.mubr.msk.bf16.gmra.mrb[88].mxu1 %vm854_vm0, %v6900_v10 }
  0xde   : > { %6148 = vmatmul.mubr.msk.bf16.gmra.mrb[92].mxu0 %vm854_vm0, %v6789_v28  ;;  %6007 = vmatprep.mubr.msk.bf16.mxu1 %vm854_vm0, %v6903_v13  ;;  %v6851_v28 = vld [vmem:[%s7071_s7 + $0x68] sm:$0xff]  }
  0xdf   : > { %6151 = vmatprep.mubr.msk.bf16.mxu0 %vm854_vm0, %v6790_v29  ;;  %v6854_v29 = vld [vmem:[%s7071_s7 + $0x70] sm:$0xff]  }
  0xe5   : > { %6008 = vmatmul.mubr.msk.bf16.gmra.mrb[92].mxu1 %vm854_vm0, %v6904_v14 }
  0xe6   : > { %6152 = vmatmul.mubr.msk.bf16.gmra.mrb[96].mxu0 %vm854_vm0, %v6791_v32  ;;  %6011 = vmatprep.mubr.msk.bf16.mxu1 %vm854_vm0, %v6907_v17  ;;  %v6881_v17 = vld [vmem:[%s7071_s7 + $0xd8] sm:$0xff]  }
  0xe7   : > { %6155 = vmatprep.mubr.msk.bf16.mxu0 %vm854_vm0, %v6793_v33  ;;  %v6921_v33 = vld [vmem:[%s7120_s6 + $0x1b8] sm:$0xff]  }
  0xed   : > { %6012 = vmatmul.mubr.msk.bf16.gmra.mrb[96].mxu1 %vm854_vm0, %v6908_v18  ;;  %v6884_v18 = vld [vmem:[%s7071_s7 + $0xe0] sm:$0xff]  }
  0xee   : > { %6156 = vmatmul.mubr.msk.bf16.gmra.mrb[100].mxu0 %vm854_vm0, %v6794_v37  ;;  %6015 = vmatprep.mubr.msk.bf16.mxu1 %vm854_vm0, %v6912_v22  ;;  %v6858_v37 = vld [vmem:[%s7071_s7 + $0x80] sm:$0xff]  }
  0xef   : > { %6159 = vmatprep.mubr.msk.bf16.mxu0 %vm854_vm0, %v6797_v38 }
  0xf5   : > { %6016 = vmatmul.mubr.msk.bf16.gmra.mrb[100].mxu1 %vm854_vm0, %v6913_v23  ;;  %v6885_v23 = vld [vmem:[%s7071_s7 + $0xe8] sm:$0xff]  }
  0xf6   : > { %6160 = vmatmul.mubr.msk.bf16.gmra.mrb[104].mxu0 %vm854_vm0, %v6798_v41  ;;  %6019 = vmatprep.mubr.msk.bf16.mxu1 %vm854_vm0, %v6916_v26  ;;  %v6925_v41 = vld [vmem:[%s7120_s6 + $0x1c8] sm:$0xff]  }
  0xf7   : > { %6163 = vmatprep.mubr.msk.bf16.mxu0 %vm854_vm0, %v6802_v42 }
  0xfd   : > { %6020 = vmatmul.mubr.msk.bf16.gmra.mrb[104].mxu1 %vm854_vm0, %v6917_v27 }
  0xfe   : > { %6164 = vmatmul.mubr.msk.bf16.gmra.mrb[108].mxu0 %vm854_vm0, %v6803_v45  ;;  %6023 = vmatprep.mubr.msk.bf16.mxu1 %vm854_vm0, %v6920_v31  ;;  %v6863_v45 = vld [vmem:[%s7071_s7 + $0x90] sm:$0xff]   ;;  %v6892_v31 = vld [vmem:[%s7071_s7 + $0x100] sm:$0xff]  }
  0xff   : > { %6167 = vmatprep.mubr.msk.bf16.mxu0 %vm854_vm0, %v6807_v46  ;;  %v6928_v46 = vld [vmem:[%s8276_s3 + $0x38] sm:$0xff]  }
 0x100   : > { %v7358_v30 = vpop.f32.mrb[0].mxu1  ;;  %6337 = vmatprep.subr.bf16.mxu1 %v6928_v46 }
 0x101   : > { %v7362_v32 = vpop.f32.mrb[1].mxu1  ;;  %6338 = vmatpush3.bf16.msra.mxu1 %v6928_v46 }
 0x102   : > { %v7365_v34 = vpop.f32.mrb[2].mxu1 }
 0x103   : > { %v7368_v35 = vpop.f32.mrb[3].mxu1 }
 0x105   : > { %6024 = vmatmul.mubr.msk.bf16.gmra.mrb[108].mxu1 %vm854_vm0, %v6921_v33 }
 0x106   : > { %6168 = vmatmul.mubr.msk.bf16.gmra.mrb[112].mxu0 %vm854_vm0, %v6808_v49  ;;  %6027 = vmatprep.mubr.msk.bf16.mxu1 %vm854_vm0, %v6924_v39 }
 0x107   : > { %6171 = vmatprep.mubr.msk.bf16.mxu0 %vm854_vm0, %v6812_v50  ;;  %v6930_v50 = vld [vmem:[%s7120_s6 + $0x1d8] sm:$0xff]  }
 0x108   : > { %v7374_v38 = vpop.f32.mrb[4].mxu1 }
 0x109   : > { %v7378_v40 = vpop.f32.mrb[5].mxu1 }
 0x10a   : > { %v7381_v42 = vpop.f32.mrb[6].mxu1 }
 0x10b   : > { %v7384_v43 = vpop.f32.mrb[7].mxu1 }
 0x10d   : > { %6028 = vmatmul.mubr.msk.bf16.gmra.mrb[112].mxu1 %vm854_vm0, %v6925_v41  ;;  %v6893_v41 = vld [vmem:[%s7071_s7 + $0x108] sm:$0xff]  }
 0x10e   : > { %6172 = vmatmul.mubr.msk.bf16.gmra.mrb[116].mxu0 %vm854_vm0, %v6813_v54  ;;  %6031 = vmatprep.mubr.msk.bf16.mxu1 %vm854_vm0, %v6929_v48  ;;  %v6867_v54 = vld [vmem:[%s7071_s7 + $0xa0] sm:$0xff]  }
 0x10f   : > { %6175 = vmatprep.mubr.msk.bf16.mxu0 %vm854_vm0, %v6816_v55 }
 0x110   : > { %v7393_v47 = vpop.f32.mrb[8].mxu1 }
 0x111   : > { %v7397_v49 = vpop.f32.mrb[9].mxu1 }
 0x112   : > { %v7400_v51 = vpop.f32.mrb[10].mxu1 }
 0x113   : > { %v7403_v52 = vpop.f32.mrb[11].mxu1 }
 0x115   : > { %6032 = vmatmul.mubr.msk.bf16.gmra.mrb[116].mxu1 %vm854_vm0, %v6930_v50 }
 0x116   : > { %6176 = vmatmul.mubr.msk.bf16.gmra.mrb[120].mxu0 %vm854_vm0, %v6817_v58  ;;  %v6934_v58 = vld [vmem:[%s7120_s6 + $0x1e8] sm:$0xff]   ;;  %6035 = vmatprep.mubr.msk.bf16.mxu1 %vm854_vm0, %v6933_v56 }
 0x117   : > { %6179 = vmatprep.mubr.msk.bf16.mxu0 %vm854_vm0, %v6820_v59 }
 0x118   : > { %v7409_v55 = vpop.f32.mrb[12].mxu1 }
 0x119   : > { %v7413_v57 = vpop.f32.mrb[13].mxu1 }
 0x11a   : > { %v7416_v59 = vpop.f32.mrb[14].mxu1 }
 0x11b   : > { %v7419_v60 = vpop.f32.mrb[15].mxu1 }
 0x11d   : > { %6036 = vmatmul.mubr.msk.bf16.gmra.mrb[120].mxu1 %vm854_vm0, %v6934_v58 }
 0x11e   : > { %6180 = vmatmul.mubr.msk.bf16.gmra.mrb[124].mxu0 %vm854_vm0, %v6821_v62  ;;  %v6871_v62 = vld [vmem:[%s7071_s7 + $0xb0] sm:$0xff]  }
 0x11f   : > { %6195 = vmatprep.mubr.msk.bf16.mxu0 %vm854_vm0, %v6824_v63 }
 0x120   : > { %v7425_v63 = vpop.f32.mrb[16].mxu1 }
 0x121   : > { %v7428_v0 = vpop.f32.mrb[17].mxu1 }
 0x122   : > { %v7430_v1 = vpop.f32.mrb[18].mxu1 }
 0x126   : > { %6196 = vmatmul.mubr.msk.bf16.vlgmr.msra.gmra.mrb[0].mxu0 %vm854_vm0, %v6825_v2  ;;  %v6937_v2 = vld [vmem:[%s7120_s6 + $0x1f0] sm:$0xff]  }
 0x127   : > { %6199 = vmatprep.mubr.msk.bf16.mxu0 %vm854_vm0, %v6829_v3  ;;  %v7433_v3 = vpop.f32.mrb[19].mxu1  ;;  %6039 = vmatprep.mubr.msk.bf16.mxu1 %vm854_vm0, %v6937_v2  ;;  %v6902_v2 = vld [vmem:[%s7071_s7 + $0x128] sm:$0xff]  }
 0x128   : > { %6040 = vmatmul.mubr.msk.bf16.gmra.mrb[124].mxu1 %vm854_vm0, %v6938_v4  ;;  %v6905_v4 = vld [vmem:[%s7071_s7 + $0x130] sm:$0xff]  }
 0x12e   : > { %6200 = vmatmul.mubr.msk.bf16.gmra.mrb[4].mxu0 %vm854_vm0, %v6830_v7  ;;  %v7441_v7 = vpop.f32.mrb[20].mxu1 }
 0x12f   : > { %6203 = vmatprep.mubr.msk.bf16.mxu0 %vm854_vm0, %v6833_v8  ;;  %v7444_v8 = vpop.f32.mrb[21].mxu1 }
 0x130   : > { %v7446_v9 = vpop.f32.mrb[22].mxu1 }
 0x131   : > { %v7448_v10 = vpop.f32.mrb[23].mxu1 }
 0x132   : > { %v7453_v13 = vpop.f32.mrb[24].mxu1 }
 0x133   : > { %v7456_v14 = vpop.f32.mrb[25].mxu1 }
 0x136   : > { %6204 = vmatmul.mubr.msk.bf16.gmra.mrb[8].mxu0 %vm854_vm0, %v6834_v11  ;;  %v6876_v11 = vld [vmem:[%s7071_s7 + $0xc8] sm:$0xff]  }
 0x137   : > { %6207 = vmatprep.mubr.msk.bf16.mxu0 %vm854_vm0, %v6837_v12  ;;  %v6880_v12 = vld [vmem:[%s7071_s7 + $0xd0] sm:$0xff]  }
 0x13e   : > { %6208 = vmatmul.mubr.msk.bf16.gmra.mrb[12].mxu0 %vm854_vm0, %v6838_v15  ;;  %v7458_v15 = vpop.f32.mrb[26].mxu1 }
 0x13f   : > { %6211 = vmatprep.mubr.msk.bf16.mxu0 %vm854_vm0, %v6841_v16  ;;  %v7460_v16 = vpop.f32.mrb[27].mxu1 }
 0x146   : > { %6212 = vmatmul.mubr.msk.bf16.gmra.mrb[16].mxu0 %vm854_vm0, %v6842_v19  ;;  %v7465_v19 = vpop.f32.mrb[28].mxu1 }
 0x147   : > { %6215 = vmatprep.mubr.msk.bf16.mxu0 %vm854_vm0, %v6846_v20  ;;  %v7468_v20 = vpop.f32.mrb[29].mxu1 }
 0x148   : > { %v7470_v21 = vpop.f32.mrb[30].mxu1 }
 0x149   : > { %v7472_v22 = vpop.f32.mrb[31].mxu1 }
 0x14e   : > { %6216 = vmatmul.mubr.msk.bf16.gmra.mrb[20].mxu0 %vm854_vm0, %v6847_v24  ;;  %v6888_v24 = vld [vmem:[%s7071_s7 + $0xf0] sm:$0xff]  }
 0x14f   : > { %6219 = vmatprep.mubr.msk.bf16.mxu0 %vm854_vm0, %v6850_v25  ;;  %v7477_v25 = vpop.f32.mrb[32].mxu1 }
 0x150   : > { %v7480_v26 = vpop.f32.mrb[33].mxu1 }
 0x151   : > { %v7482_v27 = vpop.f32.mrb[34].mxu1 }
 0x156   : > { %6220 = vmatmul.mubr.msk.bf16.gmra.mrb[24].mxu0 %vm854_vm0, %v6851_v28  ;;  %v7484_v28 = vpop.f32.mrb[35].mxu1 }
 0x157   : > { %6223 = vmatprep.mubr.msk.bf16.mxu0 %vm854_vm0, %v6854_v29  ;;  %v6889_v29 = vld [vmem:[%s7071_s7 + $0xf8] sm:$0xff]   ;;  %v7489_v33 = vpop.f32.mrb[36].mxu1 }
 0x15e   : > { %6224 = vmatmul.mubr.msk.bf16.gmra.mrb[28].mxu0 %vm854_vm0, %v6855_v36  ;;  %v7492_v36 = vpop.f32.mrb[37].mxu1 }
 0x15f   : > { %6227 = vmatprep.mubr.msk.bf16.mxu0 %vm854_vm0, %v6858_v37  ;;  %v7494_v37 = vpop.f32.mrb[38].mxu1 }
 0x160   : > { %v7496_v39 = vpop.f32.mrb[39].mxu1 }
 0x166   : > { %6228 = vmatmul.mubr.msk.bf16.gmra.mrb[32].mxu0 %vm854_vm0, %v6859_v44  ;;  %v6897_v44 = vld [vmem:[%s7071_s7 + $0x110] sm:$0xff]  }
 0x167   : > { %6231 = vmatprep.mubr.msk.bf16.mxu0 %vm854_vm0, %v6863_v45  ;;  %v7501_v45 = vpop.f32.mrb[40].mxu1 }
 0x168   : > { %v7504_v46 = vpop.f32.mrb[41].mxu1 }
 0x169   : > { %v7506_v48 = vpop.f32.mrb[42].mxu1 }
 0x16a   : > { %v7508_v50 = vpop.f32.mrb[43].mxu1 }
 0x16b   : > { %v7513_v56 = vpop.f32.mrb[44].mxu1 }
 0x16c   : > { %v7516_v58 = vpop.f32.mrb[45].mxu1 }
 0x16e   : > { %6232 = vmatmul.mubr.msk.bf16.gmra.mrb[36].mxu0 %vm854_vm0, %v6864_v53  ;;  %v6898_v53 = vld [vmem:[%s7071_s7 + $0x118] sm:$0xff]  }
 0x16f   : > { %6235 = vmatprep.mubr.msk.bf16.mxu0 %vm854_vm0, %v6867_v54  ;;  %v6901_v54 = vld [vmem:[%s7071_s7 + $0x120] sm:$0xff]  }
 0x176   : > { %6236 = vmatmul.mubr.msk.bf16.gmra.mrb[40].mxu0 %vm854_vm0, %v6868_v61  ;;  %v7518_v61 = vpop.f32.mrb[46].mxu1 }
 0x177   : > { %6239 = vmatprep.mubr.msk.bf16.mxu0 %vm854_vm0, %v6871_v62  ;;  %v7520_v62 = vpop.f32.mrb[47].mxu1 }
 0x178   : > { %8279 = vst [vmem:[#allocation2_spill] sm:$0xff] %v7520_v62  ;;  %v6943_v62 = vld [vmem:[%s7071_s7 + $0x1d0] sm:$0xff]  }
 0x17e   : > { %6240 = vmatmul.mubr.msk.bf16.gmra.mrb[44].mxu0 %vm854_vm0, %v6872_v5  ;;  %v7525_v5 = vpop.f32.mrb[48].mxu1 }
 0x17f   : > { %6243 = vmatprep.mubr.msk.bf16.mxu0 %vm854_vm0, %v6875_v6  ;;  %8280 = vst [vmem:[#allocation3_spill] sm:$0xff] %v7525_v5  ;;  %v7528_v6 = vpop.f32.mrb[49].mxu1 }
 0x180   : > { %8281 = vst [vmem:[#allocation4_spill] sm:$0xff] %v7528_v6 }
 0x186   : > { %6244 = vmatmul.mubr.msk.bf16.gmra.mrb[48].mxu0 %vm854_vm0, %v6876_v11  ;;  %v7530_v11 = vpop.f32.mrb[50].mxu1 }
 0x187   : > { %6247 = vmatprep.mubr.msk.bf16.mxu0 %vm854_vm0, %v6880_v12  ;;  %8282 = vst [vmem:[#allocation5_spill] sm:$0xff] %v7530_v11  ;;  %v7532_v12 = vpop.f32.mrb[51].mxu1 }
 0x188   : > { %8283 = vst [vmem:[#allocation6_spill] sm:$0xff] %v7532_v12 }
 0x18e   : > { %6248 = vmatmul.mubr.msk.bf16.gmra.mrb[52].mxu0 %vm854_vm0, %v6881_v17  ;;  %v6906_v17 = vld [vmem:[%s7071_s7 + $0x138] sm:$0xff]  }
 0x18f   : > { %6251 = vmatprep.mubr.msk.bf16.mxu0 %vm854_vm0, %v6884_v18  ;;  %v6909_v18 = vld [vmem:[%s7071_s7 + $0x140] sm:$0xff]  }
 0x196   : > { %6252 = vmatmul.mubr.msk.bf16.gmra.mrb[56].mxu0 %vm854_vm0, %v6885_v23  ;;  %v7537_v23 = vpop.f32.mrb[52].mxu1 }
 0x197   : > { %6255 = vmatprep.mubr.msk.bf16.mxu0 %vm854_vm0, %v6888_v24  ;;  %8284 = vst [vmem:[#allocation7_spill] sm:$0xff] %v7537_v23  ;;  %v7540_v24 = vpop.f32.mrb[53].mxu1 }
 0x198   : > { %8285 = vst [vmem:[#allocation8_spill] sm:$0xff] %v7540_v24 }
 0x19e   : > { %6256 = vmatmul.mubr.msk.bf16.gmra.mrb[60].mxu0 %vm854_vm0, %v6889_v29  ;;  %v7542_v29 = vpop.f32.mrb[54].mxu1 }
 0x19f   : > { %6259 = vmatprep.mubr.msk.bf16.mxu0 %vm854_vm0, %v6892_v31  ;;  %8286 = vst [vmem:[#allocation9_spill] sm:$0xff] %v7542_v29  ;;  %v7544_v31 = vpop.f32.mrb[55].mxu1 }
 0x1a0   : > { %8287 = vst [vmem:[#allocation10_spill] sm:$0xff] %v7544_v31 }
 0x1a6   : > { %6260 = vmatmul.mubr.msk.bf16.gmra.mrb[64].mxu0 %vm854_vm0, %v6893_v41  ;;  %v6910_v41 = vld [vmem:[%s7071_s7 + $0x148] sm:$0xff]  }
 0x1a7   : > { %6263 = vmatprep.mubr.msk.bf16.mxu0 %vm854_vm0, %v6897_v44  ;;  %v6914_v44 = vld [vmem:[%s7071_s7 + $0x150] sm:$0xff]  }
 0x1ae   : > { %6264 = vmatmul.mubr.msk.bf16.gmra.mrb[68].mxu0 %vm854_vm0, %v6898_v53  ;;  %v7549_v53 = vpop.f32.mrb[56].mxu1 }
 0x1af   : > { %6267 = vmatprep.mubr.msk.bf16.mxu0 %vm854_vm0, %v6901_v54  ;;  %8288 = vst [vmem:[#allocation11_spill] sm:$0xff] %v7549_v53  ;;  %v7552_v54 = vpop.f32.mrb[57].mxu1 }
 0x1b0   : > { %8289 = vst [vmem:[#allocation12_spill] sm:$0xff] %v7552_v54  ;;  %v6919_v54 = vld [vmem:[%s7071_s7 + $0x168] sm:$0xff]  }
 0x1b6   : > { %6268 = vmatmul.mubr.msk.bf16.gmra.mrb[72].mxu0 %vm854_vm0, %v6902_v2  ;;  %v7554_v2 = vpop.f32.mrb[58].mxu1 }
 0x1b7   : > { %6271 = vmatprep.mubr.msk.bf16.mxu0 %vm854_vm0, %v6905_v4  ;;  %8290 = vst [vmem:[#allocation13_spill] sm:$0xff] %v7554_v2  ;;  %v7556_v4 = vpop.f32.mrb[59].mxu1  ;;  %v6922_v2 = vld [vmem:[%s7071_s7 + $0x170] sm:$0xff]  }
 0x1b8   : > { %8291 = vst [vmem:[#allocation14_spill] sm:$0xff] %v7556_v4  ;;  %v7561_v31 = vpop.f32.mrb[60].mxu1 }
 0x1b9   : > { %8292 = vst [vmem:[#allocation15_spill] sm:$0xff] %v7561_v31 }
 0x1be   : > { %6272 = vmatmul.mubr.msk.bf16.gmra.mrb[76].mxu0 %vm854_vm0, %v6906_v17  ;;  %v6915_v17 = vld [vmem:[%s7071_s7 + $0x158] sm:$0xff]  }
 0x1bf   : > { %6275 = vmatprep.mubr.msk.bf16.mxu0 %vm854_vm0, %v6909_v18  ;;  %v6918_v18 = vld [vmem:[%s7071_s7 + $0x160] sm:$0xff]  }
 0x1c6   : > { %6276 = vmatmul.mubr.msk.bf16.gmra.mrb[80].mxu0 %vm854_vm0, %v6910_v41  ;;  %v7564_v41 = vpop.f32.mrb[61].mxu1 }
 0x1c7   : > { %6279 = vmatprep.mubr.msk.bf16.mxu0 %vm854_vm0, %v6914_v44  ;;  %8293 = vst [vmem:[#allocation16_spill] sm:$0xff] %v7564_v41  ;;  %v7566_v53 = vpop.f32.mrb[62].mxu1  ;;  %v6923_v41 = vld [vmem:[%s7071_s7 + $0x178] sm:$0xff]  }
 0x1c8   : > { %8294 = vst [vmem:[#allocation17_spill] sm:$0xff] %v7566_v53  ;;  %v7568_v44 = vpop.f32.mrb[63].mxu1  ;;  %v6926_v53 = vld [vmem:[%s7071_s7 + $0x180] sm:$0xff]  }
 0x1c9   : > { %8295 = vst [vmem:[#allocation18_spill] sm:$0xff] %v7568_v44  ;;  %v7573_v4 = vpop.f32.mrb[64].mxu1 }
 0x1ca   : > { %8296 = vst [vmem:[#allocation19_spill] sm:$0xff] %v7573_v4 }
 0x1ce   : > { %6280 = vmatmul.mubr.msk.bf16.gmra.mrb[84].mxu0 %vm854_vm0, %v6915_v17  ;;  %v7576_v17 = vpop.f32.mrb[65].mxu1 }
 0x1cf   : > { %6283 = vmatprep.mubr.msk.bf16.mxu0 %vm854_vm0, %v6918_v18  ;;  %8297 = vst [vmem:[#allocation20_spill] sm:$0xff] %v7576_v17  ;;  %v7578_v31 = vpop.f32.mrb[66].mxu1  ;;  %v6927_v17 = vld [vmem:[%s7071_s7 + $0x188] sm:$0xff]  }
 0x1d0   : > { %8298 = vst [vmem:[#allocation21_spill] sm:$0xff] %v7578_v31  ;;  %v7580_v18 = vpop.f32.mrb[67].mxu1  ;;  %v6931_v31 = vld [vmem:[%s7071_s7 + $0x190] sm:$0xff]  }
 0x1d1   : > { %8299 = vst [vmem:[#allocation22_spill] sm:$0xff] %v7580_v18  ;;  %v7585_v44 = vpop.f32.mrb[68].mxu1 }
 0x1d2   : > { %8300 = vst [vmem:[#allocation23_spill] sm:$0xff] %v7585_v44 }
 0x1d6   : > { %6284 = vmatmul.mubr.msk.bf16.gmra.mrb[88].mxu0 %vm854_vm0, %v6919_v54  ;;  %v7588_v54 = vpop.f32.mrb[69].mxu1 }
 0x1d7   : > { %6287 = vmatprep.mubr.msk.bf16.mxu0 %vm854_vm0, %v6922_v2  ;;  %8301 = vst [vmem:[#allocation24_spill] sm:$0xff] %v7588_v54  ;;  %v7590_v4 = vpop.f32.mrb[70].mxu1  ;;  %v6932_v54 = vld [vmem:[%s7071_s7 + $0x198] sm:$0xff]  }
 0x1d8   : > { %8302 = vst [vmem:[#allocation25_spill] sm:$0xff] %v7590_v4  ;;  %v7592_v2 = vpop.f32.mrb[71].mxu1  ;;  %v6935_v4 = vld [vmem:[%s7071_s7 + $0x1a0] sm:$0xff]  }
 0x1d9   : > { %8303 = vst [vmem:[#allocation26_spill] sm:$0xff] %v7592_v2  ;;  %v7597_v18 = vpop.f32.mrb[72].mxu1 }
 0x1da   : > { %8304 = vst [vmem:[#allocation27_spill] sm:$0xff] %v7597_v18 }
 0x1de   : > { %6288 = vmatmul.mubr.msk.bf16.gmra.mrb[92].mxu0 %vm854_vm0, %v6923_v41  ;;  %v7600_v41 = vpop.f32.mrb[73].mxu1 }
 0x1df   : > { %6291 = vmatprep.mubr.msk.bf16.mxu0 %vm854_vm0, %v6926_v53  ;;  %8305 = vst [vmem:[#allocation28_spill] sm:$0xff] %v7600_v41  ;;  %v7602_v44 = vpop.f32.mrb[74].mxu1  ;;  %v6936_v41 = vld [vmem:[%s7071_s7 + $0x1a8] sm:$0xff]  }
 0x1e0   : > { %8306 = vst [vmem:[#allocation29_spill] sm:$0xff] %v7602_v44  ;;  %v7604_v53 = vpop.f32.mrb[75].mxu1  ;;  %v6939_v44 = vld [vmem:[%s7071_s7 + $0x1b0] sm:$0xff]  }
 0x1e1   : > { %8307 = vst [vmem:[#allocation30_spill] sm:$0xff] %v7604_v53  ;;  %v7609_v2 = vpop.f32.mrb[76].mxu1 }
 0x1e2   : > { %8308 = vst [vmem:[#allocation31_spill] sm:$0xff] %v7609_v2 }
 0x1e6   : > { %6292 = vmatmul.mubr.msk.bf16.gmra.mrb[96].mxu0 %vm854_vm0, %v6927_v17  ;;  %v7612_v17 = vpop.f32.mrb[77].mxu1 }
 0x1e7   : > { %6295 = vmatprep.mubr.msk.bf16.mxu0 %vm854_vm0, %v6931_v31  ;;  %8309 = vst [vmem:[#allocation32_spill] sm:$0xff] %v7612_v17  ;;  %v7614_v18 = vpop.f32.mrb[78].mxu1 }
 0x1e8   : > { %8310 = vst [vmem:[#allocation33_spill] sm:$0xff] %v7614_v18  ;;  %v7616_v31 = vpop.f32.mrb[79].mxu1  ;;  %v7631_v18 = vld [vmem:[%s8275_s2] ss:$0 sm:$0xff] }
 0x1e9   : > { %8311 = vst [vmem:[#allocation34_spill] sm:$0xff] %v7616_v31  ;;  %v7621_v53 = vpop.f32.mrb[80].mxu1 }
 0x1ea   : > { %8312 = vst [vmem:[#allocation35_spill] sm:$0xff] %v7621_v53 }
 0x1ee   : > { %6296 = vmatmul.mubr.msk.bf16.gmra.mrb[100].mxu0 %vm854_vm0, %v6932_v54  ;;  %v7624_v54 = vpop.f32.mrb[81].mxu1 }
 0x1ef   : > { %6299 = vmatprep.mubr.msk.bf16.mxu0 %vm854_vm0, %v6935_v4  ;;  %8313 = vst [vmem:[#allocation36_spill] sm:$0xff] %v7624_v54  ;;  %v7626_v2 = vpop.f32.mrb[82].mxu1 }
 0x1f0   : > { %8314 = vst [vmem:[#allocation37_spill] sm:$0xff] %v7626_v2  ;;  %v7633_v31 = vpop.f32.mrb[83].mxu1 }
 0x1f1   : > { %8315 = vst [vmem:[#allocation38_spill] sm:$0xff] %v7633_v31  ;;  %v6942_v31 = vld [vmem:[%s7071_s7 + $0x1c8] sm:$0xff]  }
 0x1f6   : > { %6300 = vmatmul.mubr.msk.bf16.gmra.mrb[104].mxu0 %vm854_vm0, %v6936_v41  ;;  %v6940_v41 = vld [vmem:[%s7071_s7 + $0x1b8] sm:$0xff]  }
 0x1f7   : > { %6303 = vmatprep.mubr.msk.bf16.mxu0 %vm854_vm0, %v6939_v44  ;;  %v6941_v44 = vld [vmem:[%s7071_s7 + $0x1c0] sm:$0xff]  }
 0x1f9   : > { %v6197_v4 = vpop.f32.mrb[0].mxu0 }
 0x1fa   : > { %v6467_v17 = vadd.f32 %v6197_v4, %v7358_v30  ;;  %v3413_v29 = vpop.f32.mrb[1].mxu0  ;;  %v7645_v30 = vpop.f32.mrb[84].mxu1 }
 0x1fb   : > { %v6468_v53 = vadd.f32 %v3413_v29, %v7362_v32  ;;  %v6198_v24 = vpop.f32.mrb[2].mxu0  ;;  %8316 = vst [vmem:[#allocation39_spill] sm:$0xff] %v7645_v30  ;;  %v7649_v29 = vpop.f32.mrb[85].mxu1 }
 0x1fc   : > { %v4061_v54 = vadd.f32 %v6467_v17, %v7631_v18  ;;  %v6469_v2 = vadd.f32 %v6198_v24, %v7365_v34  ;;  %v3416_v23 = vpop.f32.mrb[3].mxu0  ;;  %v7651_v17 = vpop.f32.mrb[86].mxu1 }
 0x1fd   : > { %v4059_v12 = vadd.f32 %v6468_v53, %v7631_v18  ;;  %v6470_v11 = vadd.f32 %v3416_v23, %v7368_v35  ;;  %8317 = vst [vmem:[#allocation40_spill] sm:$0xff] %v7651_v17 }
 0x1fe   : > { %v4062_v6 = vadd.f32 %v6469_v2, %v7631_v18  ;;  %6304 = vmatmul.mubr.msk.bf16.gmra.mrb[108].mxu0 %vm854_vm0, %v6940_v41  ;;  %v4189_v34 = vmax.f32 %v4061_v54, 0.0  ;;  %v7653_v2 = vpop.f32.mrb[87].mxu1 }
 0x1ff   : > { %v4060_v32 = vadd.f32 %v6470_v11, %v7631_v18  ;;  %6307 = vmatprep.mubr.msk.bf16.mxu0 %vm854_vm0, %v6941_v44  ;;  %v4187_v53 = vmax.f32 %v4059_v12, 0.0 }
 0x200   : > { %v4190_v24 = vmax.f32 %v4062_v6, 0.0 }
 0x201   : > { %v4188_v35 = vmax.f32 %v4060_v32, 0.0  ;;  %v6201_v23 = vpop.f32.mrb[4].mxu0 }
 0x202   : > { %v4316_v4 = vpack.c.bf16 %v4190_v24, %v4189_v34  ;;  %v6471_v41 = vadd.f32 %v6201_v23, %v7374_v38  ;;  %v3429_v30 = vpop.f32.mrb[5].mxu0  ;;  %v7665_v38 = vpop.f32.mrb[88].mxu1 }
 0x203   : > { %v6472_v11 = vadd.f32 %v3429_v30, %v7378_v40  ;;  %v6202_v44 = vpop.f32.mrb[6].mxu0  ;;  %v4315_v5 = vpack.c.bf16 %v4188_v35, %v4187_v53 }
 0x204   : > { %v4065_v54 = vadd.f32 %v6471_v41, %v7631_v18  ;;  %v6473_v6 = vadd.f32 %v6202_v44, %v7381_v42  ;;  %v3432_v17 = vpop.f32.mrb[7].mxu0  ;;  %v7669_v42 = vpop.f32.mrb[89].mxu1 }
 0x205   : > { %v4063_v12 = vadd.f32 %v6472_v11, %v7631_v18  ;;  %v6474_v32 = vadd.f32 %v3432_v17, %v7384_v43  ;;  %6339 = vmatprep.mubr.bf16.mxu1 %v4315_v5  ;;  %v7671_v53 = vpop.f32.mrb[90].mxu1 }
 0x206   : > { %v4066_v34 = vadd.f32 %v6473_v6, %v7631_v18  ;;  %6308 = vmatmul.mubr.msk.bf16.gmra.mrb[112].mxu0 %vm854_vm0, %v6942_v31  ;;  %6340 = vmatmul.mubr.bf16.vlgmr.msra.gmra.mrb[128].mxu1 %v4316_v4  ;;  %v4193_v30 = vmax.f32 %v4065_v54, 0.0  ;;  %v7673_v35 = vpop.f32.mrb[91].mxu1  ;;  %v6944_v4 = vld [vmem:[%s7071_s7 + $0x1d8] sm:$0xff]   ;;  %v6945_v6 = vld [vmem:[%s7071_s7 + $0x1e0] sm:$0xff]  }
 0x207   : > { %v4064_v40 = vadd.f32 %v6474_v32, %v7631_v18  ;;  %6311 = vmatprep.mubr.msk.bf16.mxu0 %vm854_vm0, %v6943_v62  ;;  %v4191_v43 = vmax.f32 %v4063_v12, 0.0 }
 0x208   : > { %v4194_v24 = vmax.f32 %v4066_v34, 0.0 }
 0x209   : > { %v4192_v5 = vmax.f32 %v4064_v40, 0.0  ;;  %v6205_v17 = vpop.f32.mrb[8].mxu0 }
 0x20a   : > { %v6475_v31 = vadd.f32 %v6205_v17, %v7393_v47  ;;  %v3445_v23 = vpop.f32.mrb[9].mxu0  ;;  %v4318_v41 = vpack.c.bf16 %v4194_v24, %v4193_v30 }
 0x20b   : > { %v6476_v11 = vadd.f32 %v3445_v23, %v7397_v49  ;;  %v6206_v62 = vpop.f32.mrb[10].mxu0  ;;  %v4317_v44 = vpack.c.bf16 %v4192_v5, %v4191_v43  ;;  %v7685_v49 = vpop.f32.mrb[92].mxu1 }
 0x20c   : > { %v4069_v54 = vadd.f32 %v6475_v31, %v7631_v18  ;;  %v6477_v32 = vadd.f32 %v6206_v62, %v7400_v51  ;;  %v3448_v34 = vpop.f32.mrb[11].mxu0  ;;  %v7689_v51 = vpop.f32.mrb[93].mxu1 }
 0x20d   : > { %v4067_v12 = vadd.f32 %v6476_v11, %v7631_v18  ;;  %v6478_v40 = vadd.f32 %v3448_v34, %v7403_v52  ;;  %6343 = vmatprep.mubr.bf16.mxu1 %v4317_v44  ;;  %v7691_v5 = vpop.f32.mrb[94].mxu1  ;;  %v6946_v11 = vld [vmem:[%s7071_s7 + $0x1e8] sm:$0xff]   ;;  %v6947_v34 = vld [vmem:[%s7071_s7 + $0x1f0] sm:$0xff]  }
 0x20e   : > { %v4070_v47 = vadd.f32 %v6477_v32, %v7631_v18  ;;  %6312 = vmatmul.mubr.msk.bf16.gmra.mrb[116].mxu0 %vm854_vm0, %v6944_v4  ;;  %6344 = vmatmul.mubr.bf16.gmra.mrb[132].mxu1 %v4318_v41  ;;  %v4197_v24 = vmax.f32 %v4069_v54, 0.0  ;;  %v7693_v23 = vpop.f32.mrb[95].mxu1 }
 0x20f   : > { %v4068_v30 = vadd.f32 %v6478_v40, %v7631_v18  ;;  %6315 = vmatprep.mubr.msk.bf16.mxu0 %vm854_vm0, %v6945_v6  ;;  %v4195_v52 = vmax.f32 %v4067_v12, 0.0 }
 0x210   : > { %v4198_v43 = vmax.f32 %v4070_v47, 0.0 }
 0x211   : > { %v4196_v17 = vmax.f32 %v4068_v30, 0.0  ;;  %v6209_v31 = vpop.f32.mrb[12].mxu0 }
 0x212   : > { %v6479_v4 = vadd.f32 %v6209_v31, %v7409_v55  ;;  %v3461_v41 = vpop.f32.mrb[13].mxu0  ;;  %v4320_v62 = vpack.c.bf16 %v4198_v43, %v4197_v24 }
 0x213   : > { %v6480_v44 = vadd.f32 %v3461_v41, %v7413_v57  ;;  %v6210_v6 = vpop.f32.mrb[14].mxu0  ;;  %v4319_v32 = vpack.c.bf16 %v4196_v17, %v4195_v52  ;;  %v7705_v57 = vpop.f32.mrb[96].mxu1 }
 0x214   : > { %v4073_v54 = vadd.f32 %v6479_v4, %v7631_v18  ;;  %v6481_v40 = vadd.f32 %v6210_v6, %v7416_v59  ;;  %v3464_v47 = vpop.f32.mrb[15].mxu0  ;;  %v7709_v43 = vpop.f32.mrb[97].mxu1 }
 0x215   : > { %v4071_v12 = vadd.f32 %v6480_v44, %v7631_v18  ;;  %v6482_v30 = vadd.f32 %v3464_v47, %v7419_v60  ;;  %6347 = vmatprep.mubr.bf16.mxu1 %v4319_v32  ;;  %v7711_v17 = vpop.f32.mrb[98].mxu1  ;;  %v6948_v44 = vld [vmem:[%s7071_s7 + $0x1f8] sm:$0xff]  }
 0x216   : > { %v4074_v55 = vadd.f32 %v6481_v40, %v7631_v18  ;;  %6316 = vmatmul.mubr.msk.bf16.gmra.mrb[120].mxu0 %vm854_vm0, %v6946_v11  ;;  %6348 = vmatmul.mubr.bf16.gmra.mrb[136].mxu1 %v4320_v62  ;;  %v4201_v59 = vmax.f32 %v4073_v54, 0.0  ;;  %v7713_v41 = vpop.f32.mrb[99].mxu1 }
 0x217   : > { %v4072_v24 = vadd.f32 %v6482_v30, %v7631_v18  ;;  %6319 = vmatprep.mubr.msk.bf16.mxu0 %vm854_vm0, %v6947_v34  ;;  %v4199_v60 = vmax.f32 %v4071_v12, 0.0 }
 0x218   : > { %v4202_v52 = vmax.f32 %v4074_v55, 0.0 }
 0x219   : > { %v4200_v31 = vmax.f32 %v4072_v24, 0.0  ;;  %v6213_v4 = vpop.f32.mrb[16].mxu0 }
 0x21a   : > { %v6483_v11 = vadd.f32 %v6213_v4, %v7425_v63  ;;  %v3477_v62 = vpop.f32.mrb[17].mxu0  ;;  %v4322_v6 = vpack.c.bf16 %v4202_v52, %v4201_v59  ;;  %v7724_v63 = vpop.f32.mrb[100].mxu1 }
 0x21b   : > { %v6484_v32 = vadd.f32 %v3477_v62, %v7428_v0  ;;  %v6214_v40 = vpop.f32.mrb[18].mxu0  ;;  %v4321_v34 = vpack.c.bf16 %v4200_v31, %v4199_v60  ;;  %v7727_v59 = vpop.f32.mrb[101].mxu1 }
 0x21c   : > { %v4077_v47 = vadd.f32 %v6483_v11, %v7631_v18  ;;  %v6485_v54 = vadd.f32 %v6214_v40, %v7430_v1  ;;  %v3480_v30 = vpop.f32.mrb[19].mxu0  ;;  %v7729_v1 = vpop.f32.mrb[102].mxu1 }
 0x21d   : > { %v4075_v12 = vadd.f32 %v6484_v32, %v7631_v18  ;;  %v6486_v55 = vadd.f32 %v3480_v30, %v7433_v3  ;;  %6351 = vmatprep.mubr.bf16.mxu1 %v4321_v34  ;;  %v7731_v3 = vpop.f32.mrb[103].mxu1 }
 0x21e   : > { %v4078_v24 = vadd.f32 %v6485_v54, %v7631_v18  ;;  %6320 = vmatmul.mubr.msk.bf16.gmra.mrb[124].mxu0 %vm854_vm0, %v6948_v44  ;;  %6352 = vmatmul.mubr.bf16.gmra.mrb[140].mxu1 %v4322_v6  ;;  %v4205_v52 = vmax.f32 %v4077_v47, 0.0 }
 0x21f   : > { %v4076_v0 = vadd.f32 %v6486_v55, %v7631_v18  ;;  %v4203_v31 = vmax.f32 %v4075_v12, 0.0 }
 0x220   : > { %v4206_v60 = vmax.f32 %v4078_v24, 0.0 }
 0x221   : > { %v4204_v4 = vmax.f32 %v4076_v0, 0.0  ;;  %v6217_v11 = vpop.f32.mrb[20].mxu0 }
 0x222   : > { %v6487_v62 = vadd.f32 %v6217_v11, %v7441_v7  ;;  %v3493_v32 = vpop.f32.mrb[21].mxu0  ;;  %v4324_v44 = vpack.c.bf16 %v4206_v60, %v4205_v52  ;;  %v7740_v7 = vpop.f32.mrb[104].mxu1 }
 0x223   : > { %v6488_v6 = vadd.f32 %v3493_v32, %v7444_v8  ;;  %v6218_v40 = vpop.f32.mrb[22].mxu0  ;;  %v4323_v34 = vpack.c.bf16 %v4204_v4, %v4203_v31  ;;  %v7743_v8 = vpop.f32.mrb[105].mxu1 }
 0x224   : > { %v4081_v54 = vadd.f32 %v6487_v62, %v7631_v18  ;;  %v6489_v47 = vadd.f32 %v6218_v40, %v7446_v9  ;;  %v3496_v30 = vpop.f32.mrb[23].mxu0  ;;  %v7745_v31 = vpop.f32.mrb[106].mxu1 }
 0x225   : > { %v4079_v55 = vadd.f32 %v6488_v6, %v7631_v18  ;;  %v6490_v12 = vadd.f32 %v3496_v30, %v7448_v10  ;;  %6355 = vmatprep.mubr.bf16.mxu1 %v4323_v34  ;;  %v7747_v62 = vpop.f32.mrb[107].mxu1 }
 0x226   : > { %v4082_v24 = vadd.f32 %v6489_v47, %v7631_v18  ;;  %6356 = vmatmul.mubr.bf16.gmra.mrb[144].mxu1 %v4324_v44  ;;  %v4209_v52 = vmax.f32 %v4081_v54, 0.0 }
 0x227   : > { %v4080_v0 = vadd.f32 %v6490_v12, %v7631_v18  ;;  %v4207_v9 = vmax.f32 %v4079_v55, 0.0 }
 0x228   : > { %v4210_v60 = vmax.f32 %v4082_v24, 0.0 }
 0x229   : > { %v4208_v4 = vmax.f32 %v4080_v0, 0.0  ;;  %v6221_v11 = vpop.f32.mrb[24].mxu0 }
 0x22a   : > { %v6491_v10 = vadd.f32 %v6221_v11, %v7453_v13  ;;  %v3509_v32 = vpop.f32.mrb[25].mxu0  ;;  %v4326_v6 = vpack.c.bf16 %v4210_v60, %v4209_v52  ;;  %v7756_v13 = vpop.f32.mrb[108].mxu1 }
 0x22b   : > { %v6492_v44 = vadd.f32 %v3509_v32, %v7456_v14  ;;  %v6222_v40 = vpop.f32.mrb[26].mxu0  ;;  %v4325_v34 = vpack.c.bf16 %v4208_v4, %v4207_v9  ;;  %v7759_v14 = vpop.f32.mrb[109].mxu1 }
 0x22c   : > { %v4085_v47 = vadd.f32 %v6491_v10, %v7631_v18  ;;  %v6493_v54 = vadd.f32 %v6222_v40, %v7458_v15  ;;  %v3512_v30 = vpop.f32.mrb[27].mxu0  ;;  %v7761_v9 = vpop.f32.mrb[110].mxu1 }
 0x22d   : > { %v4083_v12 = vadd.f32 %v6492_v44, %v7631_v18  ;;  %v6494_v55 = vadd.f32 %v3512_v30, %v7460_v16  ;;  %6359 = vmatprep.mubr.bf16.mxu1 %v4325_v34  ;;  %v7763_v10 = vpop.f32.mrb[111].mxu1 }
 0x22e   : > { %v4086_v24 = vadd.f32 %v6493_v54, %v7631_v18  ;;  %6360 = vmatmul.mubr.bf16.gmra.mrb[148].mxu1 %v4326_v6  ;;  %v4213_v52 = vmax.f32 %v4085_v47, 0.0 }
 0x22f   : > { %v4084_v0 = vadd.f32 %v6494_v55, %v7631_v18  ;;  %v4211_v15 = vmax.f32 %v4083_v12, 0.0 }
 0x230   : > { %v4214_v60 = vmax.f32 %v4086_v24, 0.0 }
 0x231   : > { %v4212_v4 = vmax.f32 %v4084_v0, 0.0  ;;  %v6225_v11 = vpop.f32.mrb[28].mxu0 }
 0x232   : > { %v6495_v16 = vadd.f32 %v6225_v11, %v7465_v19  ;;  %v3525_v32 = vpop.f32.mrb[29].mxu0  ;;  %v4328_v44 = vpack.c.bf16 %v4214_v60, %v4213_v52  ;;  %v7772_v19 = vpop.f32.mrb[112].mxu1 }
 0x233   : > { %v6496_v6 = vadd.f32 %v3525_v32, %v7468_v20  ;;  %v6226_v40 = vpop.f32.mrb[30].mxu0  ;;  %v4327_v34 = vpack.c.bf16 %v4212_v4, %v4211_v15  ;;  %v7775_v20 = vpop.f32.mrb[113].mxu1 }
 0x234   : > { %v4089_v54 = vadd.f32 %v6495_v16, %v7631_v18  ;;  %v6497_v47 = vadd.f32 %v6226_v40, %v7470_v21  ;;  %v3528_v30 = vpop.f32.mrb[31].mxu0  ;;  %v7777_v15 = vpop.f32.mrb[114].mxu1 }
 0x235   : > { %v4087_v55 = vadd.f32 %v6496_v6, %v7631_v18  ;;  %v6498_v12 = vadd.f32 %v3528_v30, %v7472_v22  ;;  %6363 = vmatprep.mubr.bf16.mxu1 %v4327_v34  ;;  %v7779_v16 = vpop.f32.mrb[115].mxu1 }
 0x236   : > { %v4090_v24 = vadd.f32 %v6497_v47, %v7631_v18  ;;  %6364 = vmatmul.mubr.bf16.gmra.mrb[152].mxu1 %v4328_v44  ;;  %v4217_v52 = vmax.f32 %v4089_v54, 0.0 }
 0x237   : > { %v4088_v0 = vadd.f32 %v6498_v12, %v7631_v18  ;;  %v4215_v21 = vmax.f32 %v4087_v55, 0.0 }
 0x238   : > { %v4218_v60 = vmax.f32 %v4090_v24, 0.0 }
 0x239   : > { %v4216_v4 = vmax.f32 %v4088_v0, 0.0  ;;  %v6229_v11 = vpop.f32.mrb[32].mxu0 }
 0x23a   : > { %v6499_v22 = vadd.f32 %v6229_v11, %v7477_v25  ;;  %v3541_v32 = vpop.f32.mrb[33].mxu0  ;;  %v4330_v6 = vpack.c.bf16 %v4218_v60, %v4217_v52  ;;  %v7788_v25 = vpop.f32.mrb[116].mxu1 }
 0x23b   : > { %v6500_v44 = vadd.f32 %v3541_v32, %v7480_v26  ;;  %v6230_v40 = vpop.f32.mrb[34].mxu0  ;;  %v4329_v34 = vpack.c.bf16 %v4216_v4, %v4215_v21  ;;  %v7791_v26 = vpop.f32.mrb[117].mxu1 }
 0x23c   : > { %v4093_v47 = vadd.f32 %v6499_v22, %v7631_v18  ;;  %v6501_v54 = vadd.f32 %v6230_v40, %v7482_v27  ;;  %v3544_v30 = vpop.f32.mrb[35].mxu0  ;;  %v7793_v21 = vpop.f32.mrb[118].mxu1 }
 0x23d   : > { %v4091_v12 = vadd.f32 %v6500_v44, %v7631_v18  ;;  %v6502_v55 = vadd.f32 %v3544_v30, %v7484_v28  ;;  %6367 = vmatprep.mubr.bf16.mxu1 %v4329_v34  ;;  %v7795_v22 = vpop.f32.mrb[119].mxu1 }
 0x23e   : > { %v4094_v24 = vadd.f32 %v6501_v54, %v7631_v18  ;;  %6368 = vmatmul.mubr.bf16.gmra.mrb[156].mxu1 %v4330_v6  ;;  %v4221_v52 = vmax.f32 %v4093_v47, 0.0 }
 0x23f   : > { %v4092_v0 = vadd.f32 %v6502_v55, %v7631_v18  ;;  %v4219_v27 = vmax.f32 %v4091_v12, 0.0 }
 0x240   : > { %v4222_v60 = vmax.f32 %v4094_v24, 0.0 }
 0x241   : > { %v4220_v4 = vmax.f32 %v4092_v0, 0.0  ;;  %v6233_v11 = vpop.f32.mrb[36].mxu0 }
 0x242   : > { %v6503_v28 = vadd.f32 %v6233_v11, %v7489_v33  ;;  %v3557_v32 = vpop.f32.mrb[37].mxu0  ;;  %v4332_v44 = vpack.c.bf16 %v4222_v60, %v4221_v52  ;;  %v7804_v33 = vpop.f32.mrb[120].mxu1 }
 0x243   : > { %v6504_v6 = vadd.f32 %v3557_v32, %v7492_v36  ;;  %v6234_v40 = vpop.f32.mrb[38].mxu0  ;;  %v4331_v34 = vpack.c.bf16 %v4220_v4, %v4219_v27  ;;  %v7807_v36 = vpop.f32.mrb[121].mxu1 }
 0x244   : > { %v4097_v54 = vadd.f32 %v6503_v28, %v7631_v18  ;;  %v6505_v47 = vadd.f32 %v6234_v40, %v7494_v37  ;;  %v3560_v30 = vpop.f32.mrb[39].mxu0  ;;  %v7809_v27 = vpop.f32.mrb[122].mxu1 }
 0x245   : > { %v4095_v55 = vadd.f32 %v6504_v6, %v7631_v18  ;;  %v6506_v12 = vadd.f32 %v3560_v30, %v7496_v39  ;;  %6371 = vmatprep.mubr.bf16.mxu1 %v4331_v34  ;;  %v7811_v28 = vpop.f32.mrb[123].mxu1 }
 0x246   : > { %v4098_v24 = vadd.f32 %v6505_v47, %v7631_v18  ;;  %6372 = vmatmul.mubr.bf16.gmra.mrb[160].mxu1 %v4332_v44  ;;  %v4225_v52 = vmax.f32 %v4097_v54, 0.0 }
 0x247   : > { %v4096_v0 = vadd.f32 %v6506_v12, %v7631_v18  ;;  %v4223_v37 = vmax.f32 %v4095_v55, 0.0 }
 0x248   : > { %v4226_v60 = vmax.f32 %v4098_v24, 0.0 }
 0x249   : > { %v4224_v4 = vmax.f32 %v4096_v0, 0.0  ;;  %v6237_v11 = vpop.f32.mrb[40].mxu0 }
 0x24a   : > { %v6507_v39 = vadd.f32 %v6237_v11, %v7501_v45  ;;  %v3573_v32 = vpop.f32.mrb[41].mxu0  ;;  %v4334_v6 = vpack.c.bf16 %v4226_v60, %v4225_v52  ;;  %v7820_v45 = vpop.f32.mrb[124].mxu1 }
 0x24b   : > { %v6508_v44 = vadd.f32 %v3573_v32, %v7504_v46  ;;  %v6238_v40 = vpop.f32.mrb[42].mxu0  ;;  %v4333_v34 = vpack.c.bf16 %v4224_v4, %v4223_v37  ;;  %v7823_v46 = vpop.f32.mrb[125].mxu1 }
 0x24c   : > { %v4101_v47 = vadd.f32 %v6507_v39, %v7631_v18  ;;  %v6509_v54 = vadd.f32 %v6238_v40, %v7506_v48  ;;  %v3576_v30 = vpop.f32.mrb[43].mxu0  ;;  %v7825_v37 = vpop.f32.mrb[126].mxu1 }
 0x24d   : > { %v4099_v12 = vadd.f32 %v6508_v44, %v7631_v18  ;;  %v6510_v55 = vadd.f32 %v3576_v30, %v7508_v50  ;;  %6375 = vmatprep.mubr.bf16.mxu1 %v4333_v34  ;;  %8318 = vst [vmem:[#allocation41_spill] sm:$0xff] %v7825_v37  ;;  %v7827_v39 = vpop.f32.mrb[127].mxu1 }
 0x24e   : > { %v4102_v24 = vadd.f32 %v6509_v54, %v7631_v18  ;;  %6376 = vmatmul.mubr.bf16.gmra.mrb[164].mxu1 %v4334_v6  ;;  %v4229_v52 = vmax.f32 %v4101_v47, 0.0  ;;  %8319 = vst [vmem:[#allocation42_spill] sm:$0xff] %v7827_v39 }
 0x24f   : > { %v4100_v0 = vadd.f32 %v6510_v55, %v7631_v18  ;;  %v4227_v48 = vmax.f32 %v4099_v12, 0.0  ;;  %v8320_v12 = vld [vmem:[#allocation2_spill] sm:$0xff] }
 0x250   : > { %v4230_v60 = vmax.f32 %v4102_v24, 0.0 }
 0x251   : > { %v4228_v4 = vmax.f32 %v4100_v0, 0.0  ;;  %v6241_v11 = vpop.f32.mrb[44].mxu0 }
 0x252   : > { %v6511_v50 = vadd.f32 %v6241_v11, %v7513_v56  ;;  %v3589_v32 = vpop.f32.mrb[45].mxu0  ;;  %v4336_v44 = vpack.c.bf16 %v4230_v60, %v4229_v52 }
 0x253   : > { %v6512_v6 = vadd.f32 %v3589_v32, %v7516_v58  ;;  %v6242_v40 = vpop.f32.mrb[46].mxu0  ;;  %v4335_v34 = vpack.c.bf16 %v4228_v4, %v4227_v48  ;;  %v8321_v4 = vld [vmem:[#allocation3_spill] sm:$0xff] }
 0x254   : > { %v4105_v54 = vadd.f32 %v6511_v50, %v7631_v18  ;;  %v6513_v47 = vadd.f32 %v6242_v40, %v7518_v61  ;;  %v3592_v30 = vpop.f32.mrb[47].mxu0  ;;  %v8322_v40 = vld [vmem:[#allocation4_spill] sm:$0xff] }
 0x255   : > { %v4103_v55 = vadd.f32 %v6512_v6, %v7631_v18  ;;  %v6514_v24 = vadd.f32 %v3592_v30, %v8320_v12  ;;  %6379 = vmatprep.mubr.bf16.mxu1 %v4335_v34  ;;  %v8323_v30 = vld [vmem:[#allocation5_spill] sm:$0xff] }
 0x256   : > { %v4106_v0 = vadd.f32 %v6513_v47, %v7631_v18  ;;  %6380 = vmatmul.mubr.bf16.gmra.mrb[168].mxu1 %v4336_v44  ;;  %v4233_v52 = vmax.f32 %v4105_v54, 0.0  ;;  %v8324_v54 = vld [vmem:[#allocation6_spill] sm:$0xff] }
 0x257   : > { %v4104_v56 = vadd.f32 %v6514_v24, %v7631_v18  ;;  %v4231_v58 = vmax.f32 %v4103_v55, 0.0 }
 0x258   : > { %v4234_v60 = vmax.f32 %v4106_v0, 0.0 }
 0x259   : > { %v4232_v11 = vmax.f32 %v4104_v56, 0.0  ;;  %v6245_v48 = vpop.f32.mrb[48].mxu0 }
 0x25a   : > { %v6515_v50 = vadd.f32 %v6245_v48, %v8321_v4  ;;  %v3605_v32 = vpop.f32.mrb[49].mxu0  ;;  %v4338_v61 = vpack.c.bf16 %v4234_v60, %v4233_v52 }
 0x25b   : > { %v6516_v39 = vadd.f32 %v3605_v32, %v8322_v40  ;;  %v6246_v6 = vpop.f32.mrb[50].mxu0  ;;  %v4337_v37 = vpack.c.bf16 %v4232_v11, %v4231_v58  ;;  %v8325_v11 = vld [vmem:[#allocation7_spill] sm:$0xff]  ;;  %v8326_v40 = vld [vmem:[#allocation8_spill] sm:$0xff] }
 0x25c   : > { %v4109_v34 = vadd.f32 %v6515_v50, %v7631_v18  ;;  %v6517_v47 = vadd.f32 %v6246_v6, %v8323_v30  ;;  %v3608_v44 = vpop.f32.mrb[51].mxu0 }
 0x25d   : > { %v4107_v12 = vadd.f32 %v6516_v39, %v7631_v18  ;;  %v6518_v24 = vadd.f32 %v3608_v44, %v8324_v54  ;;  %6383 = vmatprep.mubr.bf16.mxu1 %v4337_v37  ;;  %v8327_v44 = vld [vmem:[#allocation9_spill] sm:$0xff] }
 0x25e   : > { %v4110_v55 = vadd.f32 %v6517_v47, %v7631_v18  ;;  %6384 = vmatmul.mubr.bf16.gmra.mrb[172].mxu1 %v4338_v61  ;;  %v4237_v56 = vmax.f32 %v4109_v34, 0.0  ;;  %v8328_v34 = vld [vmem:[#allocation10_spill] sm:$0xff] }
 0x25f   : > { %v4108_v0 = vadd.f32 %v6518_v24, %v7631_v18  ;;  %v4235_v60 = vmax.f32 %v4107_v12, 0.0 }
 0x260   : > { %v4238_v52 = vmax.f32 %v4110_v55, 0.0 }
 0x261   : > { %v4236_v48 = vmax.f32 %v4108_v0, 0.0  ;;  %v6249_v58 = vpop.f32.mrb[52].mxu0 }
 0x262   : > { %v6519_v4 = vadd.f32 %v6249_v58, %v8325_v11  ;;  %v3621_v50 = vpop.f32.mrb[53].mxu0  ;;  %v4340_v32 = vpack.c.bf16 %v4238_v52, %v4237_v56 }
 0x263   : > { %v6520_v6 = vadd.f32 %v3621_v50, %v8326_v40  ;;  %v6250_v39 = vpop.f32.mrb[54].mxu0  ;;  %v4339_v30 = vpack.c.bf16 %v4236_v48, %v4235_v60  ;;  %v8329_v48 = vld [vmem:[#allocation11_spill] sm:$0xff]  ;;  %v8330_v40 = vld [vmem:[#allocation12_spill] sm:$0xff] }
 0x264   : > { %v4113_v37 = vadd.f32 %v6519_v4, %v7631_v18  ;;  %v6521_v47 = vadd.f32 %v6250_v39, %v8327_v44  ;;  %v3624_v61 = vpop.f32.mrb[55].mxu0 }
 0x265   : > { %v4111_v54 = vadd.f32 %v6520_v6, %v7631_v18  ;;  %v6522_v24 = vadd.f32 %v3624_v61, %v8328_v34  ;;  %6387 = vmatprep.mubr.bf16.mxu1 %v4339_v30  ;;  %v8331_v61 = vld [vmem:[#allocation13_spill] sm:$0xff] }
 0x266   : > { %v4114_v12 = vadd.f32 %v6521_v47, %v7631_v18  ;;  %6388 = vmatmul.mubr.bf16.gmra.mrb[176].mxu1 %v4340_v32  ;;  %v4241_v0 = vmax.f32 %v4113_v37, 0.0  ;;  %v8332_v37 = vld [vmem:[#allocation14_spill] sm:$0xff] }
 0x267   : > { %v4112_v55 = vadd.f32 %v6522_v24, %v7631_v18  ;;  %v4239_v52 = vmax.f32 %v4111_v54, 0.0 }
 0x268   : > { %v4242_v56 = vmax.f32 %v4114_v12, 0.0 }
 0x269   : > { %v4240_v58 = vmax.f32 %v4112_v55, 0.0  ;;  %v6253_v60 = vpop.f32.mrb[56].mxu0 }
 0x26a   : > { %v6523_v11 = vadd.f32 %v6253_v60, %v8329_v48  ;;  %v3637_v4 = vpop.f32.mrb[57].mxu0  ;;  %v4342_v50 = vpack.c.bf16 %v4242_v56, %v4241_v0 }
 0x26b   : > { %v6524_v39 = vadd.f32 %v3637_v4, %v8330_v40  ;;  %v6254_v6 = vpop.f32.mrb[58].mxu0  ;;  %v4341_v44 = vpack.c.bf16 %v4240_v58, %v4239_v52  ;;  %v8333_v58 = vld [vmem:[#allocation15_spill] sm:$0xff]  ;;  %v8334_v40 = vld [vmem:[#allocation16_spill] sm:$0xff] }
 0x26c   : > { %v4117_v30 = vadd.f32 %v6523_v11, %v7631_v18  ;;  %v6525_v47 = vadd.f32 %v6254_v6, %v8331_v61  ;;  %v3640_v32 = vpop.f32.mrb[59].mxu0 }
 0x26d   : > { %v4115_v34 = vadd.f32 %v6524_v39, %v7631_v18  ;;  %v6526_v24 = vadd.f32 %v3640_v32, %v8332_v37  ;;  %6391 = vmatprep.mubr.bf16.mxu1 %v4341_v44  ;;  %v8335_v32 = vld [vmem:[#allocation17_spill] sm:$0xff] }
 0x26e   : > { %v4118_v54 = vadd.f32 %v6525_v47, %v7631_v18  ;;  %6392 = vmatmul.mubr.bf16.gmra.mrb[180].mxu1 %v4342_v50  ;;  %v4245_v55 = vmax.f32 %v4117_v30, 0.0  ;;  %v8336_v30 = vld [vmem:[#allocation18_spill] sm:$0xff] }
 0x26f   : > { %v4116_v12 = vadd.f32 %v6526_v24, %v7631_v18  ;;  %v4243_v56 = vmax.f32 %v4115_v34, 0.0 }
 0x270   : > { %v4246_v0 = vmax.f32 %v4118_v54, 0.0 }
 0x271   : > { %v4244_v60 = vmax.f32 %v4116_v12, 0.0  ;;  %v6257_v52 = vpop.f32.mrb[60].mxu0 }
 0x272   : > { %v6527_v48 = vadd.f32 %v6257_v52, %v8333_v58  ;;  %v3653_v11 = vpop.f32.mrb[61].mxu0  ;;  %v4344_v4 = vpack.c.bf16 %v4246_v0, %v4245_v55 }
 0x273   : > { %v6528_v6 = vadd.f32 %v3653_v11, %v8334_v40  ;;  %v6258_v39 = vpop.f32.mrb[62].mxu0  ;;  %v4343_v61 = vpack.c.bf16 %v4244_v60, %v4243_v56  ;;  %v8337_v60 = vld [vmem:[#allocation19_spill] sm:$0xff]  ;;  %v8338_v40 = vld [vmem:[#allocation20_spill] sm:$0xff] }
 0x274   : > { %v4121_v44 = vadd.f32 %v6527_v48, %v7631_v18  ;;  %v6529_v47 = vadd.f32 %v6258_v39, %v8335_v32  ;;  %v3656_v50 = vpop.f32.mrb[63].mxu0 }
 0x275   : > { %v4119_v37 = vadd.f32 %v6528_v6, %v7631_v18  ;;  %v6530_v24 = vadd.f32 %v3656_v50, %v8336_v30  ;;  %6395 = vmatprep.mubr.bf16.mxu1 %v4343_v61  ;;  %v8339_v50 = vld [vmem:[#allocation21_spill] sm:$0xff] }
 0x276   : > { %v4122_v34 = vadd.f32 %v6529_v47, %v7631_v18  ;;  %6396 = vmatmul.mubr.bf16.gmra.mrb[184].mxu1 %v4344_v4  ;;  %v4249_v12 = vmax.f32 %v4121_v44, 0.0  ;;  %v8340_v44 = vld [vmem:[#allocation22_spill] sm:$0xff] }
 0x277   : > { %v4120_v54 = vadd.f32 %v6530_v24, %v7631_v18  ;;  %v4247_v0 = vmax.f32 %v4119_v37, 0.0 }
 0x278   : > { %v4250_v55 = vmax.f32 %v4122_v34, 0.0 }
 0x279   : > { %v4248_v52 = vmax.f32 %v4120_v54, 0.0  ;;  %v6261_v56 = vpop.f32.mrb[64].mxu0 }
 0x27a   : > { %v6531_v58 = vadd.f32 %v6261_v56, %v8337_v60  ;;  %v3669_v48 = vpop.f32.mrb[65].mxu0  ;;  %v4346_v11 = vpack.c.bf16 %v4250_v55, %v4249_v12 }
 0x27b   : > { %v6532_v39 = vadd.f32 %v3669_v48, %v8338_v40  ;;  %v6262_v6 = vpop.f32.mrb[66].mxu0  ;;  %v4345_v32 = vpack.c.bf16 %v4248_v52, %v4247_v0  ;;  %v8341_v52 = vld [vmem:[#allocation23_spill] sm:$0xff]  ;;  %v8342_v40 = vld [vmem:[#allocation24_spill] sm:$0xff] }
 0x27c   : > { %v4125_v61 = vadd.f32 %v6531_v58, %v7631_v18  ;;  %v6533_v47 = vadd.f32 %v6262_v6, %v8339_v50  ;;  %v3672_v4 = vpop.f32.mrb[67].mxu0 }
 0x27d   : > { %v4123_v30 = vadd.f32 %v6532_v39, %v7631_v18  ;;  %v6534_v24 = vadd.f32 %v3672_v4, %v8340_v44  ;;  %6399 = vmatprep.mubr.bf16.mxu1 %v4345_v32  ;;  %v8343_v4 = vld [vmem:[#allocation25_spill] sm:$0xff] }
 0x27e   : > { %v4126_v37 = vadd.f32 %v6533_v47, %v7631_v18  ;;  %6400 = vmatmul.mubr.bf16.gmra.mrb[188].mxu1 %v4346_v11  ;;  %v4253_v54 = vmax.f32 %v4125_v61, 0.0  ;;  %v8344_v61 = vld [vmem:[#allocation26_spill] sm:$0xff] }
 0x27f   : > { %v4124_v34 = vadd.f32 %v6534_v24, %v7631_v18  ;;  %v4251_v55 = vmax.f32 %v4123_v30, 0.0 }
 0x280   : > { %v4254_v12 = vmax.f32 %v4126_v37, 0.0 }
 0x281   : > { %v4252_v56 = vmax.f32 %v4124_v34, 0.0  ;;  %v6265_v0 = vpop.f32.mrb[68].mxu0 }
 0x282   : > { %v6535_v60 = vadd.f32 %v6265_v0, %v8341_v52  ;;  %v3685_v58 = vpop.f32.mrb[69].mxu0  ;;  %v4348_v48 = vpack.c.bf16 %v4254_v12, %v4253_v54 }
 0x283   : > { %v6536_v6 = vadd.f32 %v3685_v58, %v8342_v40  ;;  %v6266_v39 = vpop.f32.mrb[70].mxu0  ;;  %v4347_v50 = vpack.c.bf16 %v4252_v56, %v4251_v55  ;;  %v8345_v56 = vld [vmem:[#allocation27_spill] sm:$0xff]  ;;  %v8346_v40 = vld [vmem:[#allocation28_spill] sm:$0xff] }
 0x284   : > { %v4129_v32 = vadd.f32 %v6535_v60, %v7631_v18  ;;  %v6537_v47 = vadd.f32 %v6266_v39, %v8343_v4  ;;  %v3688_v11 = vpop.f32.mrb[71].mxu0 }
 0x285   : > { %v4127_v44 = vadd.f32 %v6536_v6, %v7631_v18  ;;  %v6538_v24 = vadd.f32 %v3688_v11, %v8344_v61  ;;  %6403 = vmatprep.mubr.bf16.mxu1 %v4347_v50  ;;  %v8347_v11 = vld [vmem:[#allocation29_spill] sm:$0xff] }
 0x286   : > { %v4130_v30 = vadd.f32 %v6537_v47, %v7631_v18  ;;  %6404 = vmatmul.mubr.bf16.gmra.mrb[192].mxu1 %v4348_v48  ;;  %v4257_v34 = vmax.f32 %v4129_v32, 0.0  ;;  %v8348_v32 = vld [vmem:[#allocation30_spill] sm:$0xff] }
 0x287   : > { %v4128_v37 = vadd.f32 %v6538_v24, %v7631_v18  ;;  %v4255_v12 = vmax.f32 %v4127_v44, 0.0 }
 0x288   : > { %v4258_v54 = vmax.f32 %v4130_v30, 0.0 }
 0x289   : > { %v4256_v0 = vmax.f32 %v4128_v37, 0.0  ;;  %v6269_v55 = vpop.f32.mrb[72].mxu0 }
 0x28a   : > { %v6539_v52 = vadd.f32 %v6269_v55, %v8345_v56  ;;  %v3701_v60 = vpop.f32.mrb[73].mxu0  ;;  %v4350_v58 = vpack.c.bf16 %v4258_v54, %v4257_v34 }
 0x28b   : > { %v6540_v39 = vadd.f32 %v3701_v60, %v8346_v40  ;;  %v6270_v6 = vpop.f32.mrb[74].mxu0  ;;  %v4349_v4 = vpack.c.bf16 %v4256_v0, %v4255_v12  ;;  %v8349_v0 = vld [vmem:[#allocation31_spill] sm:$0xff]  ;;  %v8350_v40 = vld [vmem:[#allocation32_spill] sm:$0xff] }
 0x28c   : > { %v4133_v50 = vadd.f32 %v6539_v52, %v7631_v18  ;;  %v6541_v47 = vadd.f32 %v6270_v6, %v8347_v11  ;;  %v3704_v48 = vpop.f32.mrb[75].mxu0 }
 0x28d   : > { %v4131_v61 = vadd.f32 %v6540_v39, %v7631_v18  ;;  %v6542_v24 = vadd.f32 %v3704_v48, %v8348_v32  ;;  %6407 = vmatprep.mubr.bf16.mxu1 %v4349_v4  ;;  %v8351_v48 = vld [vmem:[#allocation33_spill] sm:$0xff] }
 0x28e   : > { %v4134_v44 = vadd.f32 %v6541_v47, %v7631_v18  ;;  %6408 = vmatmul.mubr.bf16.gmra.mrb[196].mxu1 %v4350_v58  ;;  %v4261_v37 = vmax.f32 %v4133_v50, 0.0  ;;  %v8352_v50 = vld [vmem:[#allocation34_spill] sm:$0xff] }
 0x28f   : > { %v4132_v30 = vadd.f32 %v6542_v24, %v7631_v18  ;;  %v4259_v54 = vmax.f32 %v4131_v61, 0.0 }
 0x290   : > { %v4262_v34 = vmax.f32 %v4134_v44, 0.0 }
 0x291   : > { %v4260_v55 = vmax.f32 %v4132_v30, 0.0  ;;  %v6273_v12 = vpop.f32.mrb[76].mxu0 }
 0x292   : > { %v6543_v56 = vadd.f32 %v6273_v12, %v8349_v0  ;;  %v3717_v52 = vpop.f32.mrb[77].mxu0  ;;  %v4352_v60 = vpack.c.bf16 %v4262_v34, %v4261_v37 }
 0x293   : > { %v6544_v6 = vadd.f32 %v3717_v52, %v8350_v40  ;;  %v6274_v39 = vpop.f32.mrb[78].mxu0  ;;  %v4351_v11 = vpack.c.bf16 %v4260_v55, %v4259_v54  ;;  %v8353_v55 = vld [vmem:[#allocation35_spill] sm:$0xff]  ;;  %v8354_v40 = vld [vmem:[#allocation36_spill] sm:$0xff] }
 0x294   : > { %v4137_v4 = vadd.f32 %v6543_v56, %v7631_v18  ;;  %v6545_v47 = vadd.f32 %v6274_v39, %v8351_v48  ;;  %v3720_v58 = vpop.f32.mrb[79].mxu0 }
 0x295   : > { %v4135_v32 = vadd.f32 %v6544_v6, %v7631_v18  ;;  %v6546_v24 = vadd.f32 %v3720_v58, %v8352_v50  ;;  %6411 = vmatprep.mubr.bf16.mxu1 %v4351_v11  ;;  %v8355_v58 = vld [vmem:[#allocation37_spill] sm:$0xff] }
 0x296   : > { %v4138_v61 = vadd.f32 %v6545_v47, %v7631_v18  ;;  %6412 = vmatmul.mubr.bf16.gmra.mrb[200].mxu1 %v4352_v60  ;;  %v4265_v30 = vmax.f32 %v4137_v4, 0.0  ;;  %v8356_v4 = vld [vmem:[#allocation38_spill] sm:$0xff] }
 0x297   : > { %v4136_v44 = vadd.f32 %v6546_v24, %v7631_v18  ;;  %v4263_v34 = vmax.f32 %v4135_v32, 0.0 }
 0x298   : > { %v4266_v37 = vmax.f32 %v4138_v61, 0.0 }
 0x299   : > { %v4264_v12 = vmax.f32 %v4136_v44, 0.0  ;;  %v6277_v54 = vpop.f32.mrb[80].mxu0 }
 0x29a   : > { %v6547_v0 = vadd.f32 %v6277_v54, %v8353_v55  ;;  %v3733_v56 = vpop.f32.mrb[81].mxu0  ;;  %v4354_v52 = vpack.c.bf16 %v4266_v37, %v4265_v30 }
 0x29b   : > { %v6548_v39 = vadd.f32 %v3733_v56, %v8354_v40  ;;  %v6278_v6 = vpop.f32.mrb[82].mxu0  ;;  %v4353_v48 = vpack.c.bf16 %v4264_v12, %v4263_v34  ;;  %v8357_v12 = vld [vmem:[#allocation39_spill] sm:$0xff] }
 0x29c   : > { %v4141_v11 = vadd.f32 %v6547_v0, %v7631_v18  ;;  %v6549_v47 = vadd.f32 %v6278_v6, %v8355_v58  ;;  %v3736_v60 = vpop.f32.mrb[83].mxu0  ;;  %v8358_v58 = vld [vmem:[#allocation40_spill] sm:$0xff] }
 0x29d   : > { %v4139_v50 = vadd.f32 %v6548_v39, %v7631_v18  ;;  %v6550_v24 = vadd.f32 %v3736_v60, %v8356_v4  ;;  %6415 = vmatprep.mubr.bf16.mxu1 %v4353_v48 }
 0x29e   : > { %v4142_v32 = vadd.f32 %v6549_v47, %v7631_v18  ;;  %6416 = vmatmul.mubr.bf16.gmra.mrb[204].mxu1 %v4354_v52  ;;  %v4269_v44 = vmax.f32 %v4141_v11, 0.0 }
 0x29f   : > { %v4140_v61 = vadd.f32 %v6550_v24, %v7631_v18  ;;  %v4267_v37 = vmax.f32 %v4139_v50, 0.0 }
 0x2a0   : > { %v4270_v30 = vmax.f32 %v4142_v32, 0.0 }
 0x2a1   : > { %v4268_v54 = vmax.f32 %v4140_v61, 0.0  ;;  %v6281_v34 = vpop.f32.mrb[84].mxu0 }
 0x2a2   : > { %v6551_v55 = vadd.f32 %v6281_v34, %v8357_v12  ;;  %v3749_v0 = vpop.f32.mrb[85].mxu0  ;;  %v4356_v56 = vpack.c.bf16 %v4270_v30, %v4269_v44 }
 0x2a3   : > { %v6552_v40 = vadd.f32 %v3749_v0, %v7649_v29  ;;  %v6282_v39 = vpop.f32.mrb[86].mxu0  ;;  %v4355_v6 = vpack.c.bf16 %v4268_v54, %v4267_v37 }
 0x2a4   : > { %v4145_v48 = vadd.f32 %v6551_v55, %v7631_v18  ;;  %v6553_v47 = vadd.f32 %v6282_v39, %v8358_v58  ;;  %v3752_v52 = vpop.f32.mrb[87].mxu0 }
 0x2a5   : > { %v4143_v60 = vadd.f32 %v6552_v40, %v7631_v18  ;;  %v6554_v11 = vadd.f32 %v3752_v52, %v7653_v2  ;;  %6419 = vmatprep.mubr.bf16.mxu1 %v4355_v6 }
 0x2a6   : > { %v4146_v50 = vadd.f32 %v6553_v47, %v7631_v18  ;;  %6420 = vmatmul.mubr.bf16.gmra.mrb[208].mxu1 %v4356_v56  ;;  %v4273_v24 = vmax.f32 %v4145_v48, 0.0 }
 0x2a7   : > { %v4144_v4 = vadd.f32 %v6554_v11, %v7631_v18  ;;  %v4271_v29 = vmax.f32 %v4143_v60, 0.0 }
 0x2a8   : > { %v4274_v32 = vmax.f32 %v4146_v50, 0.0 }
 0x2a9   : > { %v4272_v61 = vmax.f32 %v4144_v4, 0.0  ;;  %v6285_v44 = vpop.f32.mrb[88].mxu0 }
 0x2aa   : > { %v6555_v30 = vadd.f32 %v6285_v44, %v7665_v38  ;;  %v3765_v37 = vpop.f32.mrb[89].mxu0  ;;  %v4358_v54 = vpack.c.bf16 %v4274_v32, %v4273_v24  ;;  %v7926_v38 = vld [vmem:[%s8275_s2] ss:$0 sm:$0xff] }
 0x2ab   : > { %v6556_v34 = vadd.f32 %v3765_v37, %v7669_v42  ;;  %v6286_v12 = vpop.f32.mrb[90].mxu0  ;;  %v4357_v55 = vpack.c.bf16 %v4272_v61, %v4271_v29 }
 0x2ac   : > { %v4149_v2 = vadd.f32 %v6555_v30, %v7631_v18  ;;  %v6557_v0 = vadd.f32 %v6286_v12, %v7671_v53  ;;  %v3768_v56 = vpop.f32.mrb[91].mxu0 }
 0x2ad   : > { %v4147_v40 = vadd.f32 %v6556_v34, %v7631_v18  ;;  %v6558_v39 = vadd.f32 %v3768_v56, %v7673_v35  ;;  %6423 = vmatprep.mubr.bf16.mxu1 %v4357_v55 }
 0x2ae   : > { %v4150_v6 = vadd.f32 %v7926_v38, %v6557_v0  ;;  %6424 = vmatmul.mubr.bf16.gmra.mrb[212].mxu1 %v4358_v54  ;;  %v4277_v48 = vmax.f32 %v4149_v2, 0.0 }
 0x2af   : > { %v4148_v42 = vadd.f32 %v7926_v38, %v6558_v39  ;;  %v4275_v47 = vmax.f32 %v4147_v40, 0.0 }
 0x2b0   : > { %v4278_v58 = vmax.f32 %v4150_v6, 0.0 }
 0x2b1   : > { %v4276_v53 = vmax.f32 %v4148_v42, 0.0  ;;  %v6289_v52 = vpop.f32.mrb[92].mxu0 }
 0x2b2   : > { %v6559_v18 = vadd.f32 %v6289_v52, %v7685_v49  ;;  %v3781_v60 = vpop.f32.mrb[93].mxu0  ;;  %v4360_v35 = vpack.c.bf16 %v4278_v58, %v4277_v48 }
 0x2b3   : > { %v6560_v11 = vadd.f32 %v3781_v60, %v7689_v51  ;;  %v6290_v50 = vpop.f32.mrb[94].mxu0  ;;  %v4359_v4 = vpack.c.bf16 %v4276_v53, %v4275_v47 }
 0x2b4   : > { %v4153_v24 = vadd.f32 %v7926_v38, %v6559_v18  ;;  %v6561_v32 = vadd.f32 %v6290_v50, %v7691_v5  ;;  %v3784_v29 = vpop.f32.mrb[95].mxu0 }
 0x2b5   : > { %v4151_v61 = vadd.f32 %v7926_v38, %v6560_v11  ;;  %v6562_v44 = vadd.f32 %v3784_v29, %v7693_v23  ;;  %6427 = vmatprep.mubr.bf16.mxu1 %v4359_v4 }
 0x2b6   : > { %v4154_v30 = vadd.f32 %v7926_v38, %v6561_v32  ;;  %6428 = vmatmul.mubr.bf16.gmra.mrb[216].mxu1 %v4360_v35  ;;  %v4281_v37 = vmax.f32 %v4153_v24, 0.0 }
 0x2b7   : > { %v4152_v49 = vadd.f32 %v7926_v38, %v6562_v44  ;;  %v4279_v51 = vmax.f32 %v4151_v61, 0.0 }
 0x2b8   : > { %v4282_v54 = vmax.f32 %v4154_v30, 0.0 }
 0x2b9   : > { %v4280_v34 = vmax.f32 %v4152_v49, 0.0  ;;  %v6293_v12 = vpop.f32.mrb[96].mxu0 }
 0x2ba   : > { %v6563_v55 = vadd.f32 %v6293_v12, %v7705_v57  ;;  %v3797_v2 = vpop.f32.mrb[97].mxu0  ;;  %v4362_v5 = vpack.c.bf16 %v4282_v54, %v4281_v37 }
 0x2bb   : > { %v6564_v0 = vadd.f32 %v3797_v2, %v7709_v43  ;;  %v6294_v56 = vpop.f32.mrb[98].mxu0  ;;  %v4361_v40 = vpack.c.bf16 %v4280_v34, %v4279_v51 }
 0x2bc   : > { %v4157_v23 = vadd.f32 %v7926_v38, %v6563_v55  ;;  %v6565_v39 = vadd.f32 %v6294_v56, %v7711_v17  ;;  %v3800_v6 = vpop.f32.mrb[99].mxu0 }
 0x2bd   : > { %v4155_v42 = vadd.f32 %v7926_v38, %v6564_v0  ;;  %v6566_v48 = vadd.f32 %v3800_v6, %v7713_v41  ;;  %6431 = vmatprep.mubr.bf16.mxu1 %v4361_v40 }
 0x2be   : > { %v4158_v58 = vadd.f32 %v7926_v38, %v6565_v39  ;;  %6432 = vmatmul.mubr.bf16.gmra.mrb[220].mxu1 %v4362_v5  ;;  %v4285_v47 = vmax.f32 %v4157_v23, 0.0 }
 0x2bf   : > { %v4156_v57 = vadd.f32 %v7926_v38, %v6566_v48  ;;  %v4283_v43 = vmax.f32 %v4155_v42, 0.0 }
 0x2c0   : > { %v4286_v53 = vmax.f32 %v4158_v58, 0.0 }
 0x2c1   : > { %v4284_v52 = vmax.f32 %v4156_v57, 0.0  ;;  %v6297_v18 = vpop.f32.mrb[100].mxu0 }
 0x2c2   : > { %v6567_v60 = vadd.f32 %v6297_v18, %v7724_v63  ;;  %v3813_v35 = vpop.f32.mrb[101].mxu0  ;;  %v4364_v17 = vpack.c.bf16 %v4286_v53, %v4285_v47 }
 0x2c3   : > { %v6568_v11 = vadd.f32 %v3813_v35, %v7727_v59  ;;  %v6298_v50 = vpop.f32.mrb[102].mxu0  ;;  %v4363_v4 = vpack.c.bf16 %v4284_v52, %v4283_v43 }
 0x2c4   : > { %v4161_v41 = vadd.f32 %v7926_v38, %v6567_v60  ;;  %v6569_v24 = vadd.f32 %v6298_v50, %v7729_v1  ;;  %v3816_v32 = vpop.f32.mrb[103].mxu0 }
 0x2c5   : > { %v4159_v29 = vadd.f32 %v7926_v38, %v6568_v11  ;;  %v6570_v61 = vadd.f32 %v3816_v32, %v7731_v3  ;;  %6435 = vmatprep.mubr.bf16.mxu1 %v4363_v4 }
 0x2c6   : > { %v4162_v44 = vadd.f32 %v7926_v38, %v6569_v24  ;;  %6436 = vmatmul.mubr.bf16.gmra.mrb[224].mxu1 %v4364_v17  ;;  %v4289_v30 = vmax.f32 %v4161_v41, 0.0 }
 0x2c7   : > { %v4160_v63 = vadd.f32 %v7926_v38, %v6570_v61  ;;  %v4287_v49 = vmax.f32 %v4159_v29, 0.0 }
 0x2c8   : > { %v4290_v59 = vmax.f32 %v4162_v44, 0.0 }
 0x2c9   : > { %v4288_v37 = vmax.f32 %v4160_v63, 0.0  ;;  %v6301_v54 = vpop.f32.mrb[104].mxu0 }
 0x2ca   : > { %v6571_v51 = vadd.f32 %v6301_v54, %v7740_v7  ;;  %v3829_v1 = vpop.f32.mrb[105].mxu0  ;;  %v4366_v34 = vpack.c.bf16 %v4290_v59, %v4289_v30 }
 0x2cb   : > { %v6572_v12 = vadd.f32 %v3829_v1, %v7743_v8  ;;  %v6302_v55 = vpop.f32.mrb[106].mxu0  ;;  %v4365_v3 = vpack.c.bf16 %v4288_v37, %v4287_v49 }
 0x2cc   : > { %v4165_v2 = vadd.f32 %v7926_v38, %v6571_v51  ;;  %v6573_v5 = vadd.f32 %v6302_v55, %v7745_v31  ;;  %v3832_v0 = vpop.f32.mrb[107].mxu0 }
 0x2cd   : > { %v4163_v56 = vadd.f32 %v7926_v38, %v6572_v12  ;;  %v6574_v40 = vadd.f32 %v3832_v0, %v7747_v62  ;;  %6439 = vmatprep.mubr.bf16.mxu1 %v4365_v3 }
 0x2ce   : > { %v4166_v7 = vadd.f32 %v7926_v38, %v6573_v5  ;;  %6440 = vmatmul.mubr.bf16.gmra.mrb[228].mxu1 %v4366_v34  ;;  %v4293_v23 = vmax.f32 %v4165_v2, 0.0 }
 0x2cf   : > { %v4164_v8 = vadd.f32 %v7926_v38, %v6574_v40  ;;  %v4291_v6 = vmax.f32 %v4163_v56, 0.0 }
 0x2d0   : > { %v4294_v39 = vmax.f32 %v4166_v7, 0.0 }
 0x2d1   : > { %v4292_v42 = vmax.f32 %v4164_v8, 0.0  ;;  %v6305_v48 = vpop.f32.mrb[108].mxu0 }
 0x2d2   : > { %v6575_v58 = vadd.f32 %v6305_v48, %v7756_v13  ;;  %v3845_v31 = vpop.f32.mrb[109].mxu0  ;;  %v4368_v57 = vpack.c.bf16 %v4294_v39, %v4293_v23 }
 0x2d3   : > { %v6576_v47 = vadd.f32 %v3845_v31, %v7759_v14  ;;  %v6306_v62 = vpop.f32.mrb[110].mxu0  ;;  %v4367_v53 = vpack.c.bf16 %v4292_v42, %v4291_v6  ;;  %v7975_v14 = vld [vmem:[%s8277_s4] ss:$0 sm:$0xff] }
 0x2d4   : > { %v4169_v43 = vadd.f32 %v7926_v38, %v6575_v58  ;;  %v6577_v52 = vadd.f32 %v6306_v62, %v7761_v9  ;;  %v3848_v18 = vpop.f32.mrb[111].mxu0 }
 0x2d5   : > { %v4167_v60 = vadd.f32 %v7926_v38, %v6576_v47  ;;  %v6578_v35 = vadd.f32 %v3848_v18, %v7763_v10  ;;  %6443 = vmatprep.mubr.bf16.mxu1 %v4367_v53 }
 0x2d6   : > { %v4170_v17 = vadd.f32 %v7926_v38, %v6577_v52  ;;  %6444 = vmatmul.mubr.bf16.gmra.mrb[232].mxu1 %v4368_v57  ;;  %v4297_v11 = vmax.f32 %v4169_v43, 0.0 }
 0x2d7   : > { %v4168_v13 = vadd.f32 %v7926_v38, %v6578_v35  ;;  %v4295_v9 = vmax.f32 %v4167_v60, 0.0 }
 0x2d8   : > { %v4298_v50 = vmax.f32 %v4170_v17, 0.0 }
 0x2d9   : > { %v4296_v4 = vmax.f32 %v4168_v13, 0.0  ;;  %v6309_v41 = vpop.f32.mrb[112].mxu0  ;;  %v6341_v10 = vpop.f32.mrb[128].mxu1 }
 0x2da   : > { %v6579_v24 = vadd.f32 %v6309_v41, %v7772_v19  ;;  %v4493_v32 = vadd.f32 %v6341_v10, %v7975_v14  ;;  %v3861_v29 = vpop.f32.mrb[113].mxu0  ;;  %v4484_v61 = vpop.f32.mrb[129].mxu1  ;;  %v4370_v44 = vpack.c.bf16 %v4298_v50, %v4297_v11 }
 0x2db   : > { %v6580_v63 = vadd.f32 %v3861_v29, %v7775_v20  ;;  %v4485_v30 = vadd.f32 %v7975_v14, %v4484_v61  ;;  %v6310_v59 = vpop.f32.mrb[114].mxu0  ;;  %v6342_v49 = vpop.f32.mrb[130].mxu1  ;;  %v4369_v37 = vpack.c.bf16 %v4296_v4, %v4295_v9 }
 0x2dc   : > { %v4173_v54 = vadd.f32 %v7926_v38, %v6579_v24  ;;  %4997 = vst [vmem:[%s7980_s9 + $0x10] sm:$0xff] %v4493_v32  ;;  %v6581_v19 = vadd.f32 %v6310_v59, %v7777_v15  ;;  %v4496_v51 = vadd.f32 %v6342_v49, %v7975_v14  ;;  %v3864_v1 = vpop.f32.mrb[115].mxu0  ;;  %v4487_v34 = vpop.f32.mrb[131].mxu1 }
 0x2dd   : > { %v4171_v12 = vadd.f32 %v7926_v38, %v6580_v63  ;;  %4995 = vst [vmem:[%s7980_s9] sm:$0xff] %v4485_v30  ;;  %v6582_v20 = vadd.f32 %v3864_v1, %v7779_v16  ;;  %v4488_v55 = vadd.f32 %v7975_v14, %v4487_v34  ;;  %6447 = vmatprep.mubr.bf16.mxu1 %v4369_v37 }
 0x2de   : > { %v4174_v3 = vadd.f32 %v7926_v38, %v6581_v19  ;;  %4998 = vst [vmem:[%s7980_s9 + $0x18] sm:$0xff] %v4496_v51  ;;  %6448 = vmatmul.mubr.bf16.gmra.mrb[236].mxu1 %v4370_v44  ;;  %v4301_v15 = vmax.f32 %v4173_v54, 0.0 }
 0x2df   : > { %v4172_v2 = vadd.f32 %v7926_v38, %v6582_v20  ;;  %4996 = vst [vmem:[%s7980_s9 + $0x8] sm:$0xff] %v4488_v55  ;;  %v4299_v0 = vmax.f32 %v4171_v12, 0.0 }
 0x2e0   : > { %v4302_v5 = vmax.f32 %v4174_v3, 0.0 }
 0x2e1   : > { %v4300_v56 = vmax.f32 %v4172_v2, 0.0  ;;  %v6313_v40 = vpop.f32.mrb[116].mxu0  ;;  %v6345_v7 = vpop.f32.mrb[132].mxu1 }
 0x2e2   : > { %v6583_v8 = vadd.f32 %v6313_v40, %v7788_v25  ;;  %v4509_v16 = vadd.f32 %v6345_v7, %v7975_v14  ;;  %v3877_v23 = vpop.f32.mrb[117].mxu0  ;;  %v4500_v39 = vpop.f32.mrb[133].mxu1  ;;  %v4372_v6 = vpack.c.bf16 %v4302_v5, %v4301_v15 }
 0x2e3   : > { %v6584_v42 = vadd.f32 %v3877_v23, %v7791_v26  ;;  %v4501_v48 = vadd.f32 %v7975_v14, %v4500_v39  ;;  %v6314_v58 = vpop.f32.mrb[118].mxu0  ;;  %v6346_v31 = vpop.f32.mrb[134].mxu1  ;;  %v4371_v57 = vpack.c.bf16 %v4300_v56, %v4299_v0  ;;  %v8359_v39 = vld [vmem:[#allocation41_spill] sm:$0xff] }
 0x2e4   : > { %v4177_v47 = vadd.f32 %v7926_v38, %v6583_v8  ;;  %5001 = vst [vmem:[%s7980_s9 + $0x30] sm:$0xff] %v4509_v16  ;;  %v6585_v25 = vadd.f32 %v6314_v58, %v7793_v21  ;;  %v4512_v62 = vadd.f32 %v6346_v31, %v7975_v14  ;;  %v3880_v53 = vpop.f32.mrb[119].mxu0  ;;  %v4503_v43 = vpop.f32.mrb[135].mxu1 }
 0x2e5   : > { %v4175_v52 = vadd.f32 %v7926_v38, %v6584_v42  ;;  %4999 = vst [vmem:[%s7980_s9 + $0x20] sm:$0xff] %v4501_v48  ;;  %v6586_v26 = vadd.f32 %v3880_v53, %v7795_v22  ;;  %v4504_v18 = vadd.f32 %v7975_v14, %v4503_v43  ;;  %6451 = vmatprep.mubr.bf16.mxu1 %v4371_v57 }
 0x2e6   : > { %v4178_v60 = vadd.f32 %v7926_v38, %v6585_v25  ;;  %5002 = vst [vmem:[%s7980_s9 + $0x38] sm:$0xff] %v4512_v62  ;;  %6452 = vmatmul.mubr.bf16.gmra.mrb[240].mxu1 %v4372_v6  ;;  %v4305_v21 = vmax.f32 %v4177_v47, 0.0 }
 0x2e7   : > { %v4176_v35 = vadd.f32 %v7926_v38, %v6586_v26  ;;  %5000 = vst [vmem:[%s7980_s9 + $0x28] sm:$0xff] %v4504_v18  ;;  %v4303_v13 = vmax.f32 %v4175_v52, 0.0 }
 0x2e8   : > { %v4306_v17 = vmax.f32 %v4178_v60, 0.0 }
 0x2e9   : > { %v4304_v11 = vmax.f32 %v4176_v35, 0.0  ;;  %v6317_v50 = vpop.f32.mrb[120].mxu0  ;;  %v6349_v9 = vpop.f32.mrb[136].mxu1 }
 0x2ea   : > { %v6587_v4 = vadd.f32 %v6317_v50, %v7804_v33  ;;  %v4525_v22 = vadd.f32 %v6349_v9, %v7975_v14  ;;  %v3893_v41 = vpop.f32.mrb[121].mxu0  ;;  %v4516_v10 = vpop.f32.mrb[137].mxu1  ;;  %v4374_v24 = vpack.c.bf16 %v4306_v17, %v4305_v21 }
 0x2eb   : > { %v6588_v32 = vadd.f32 %v3893_v41, %v7807_v36  ;;  %v4517_v29 = vadd.f32 %v7975_v14, %v4516_v10  ;;  %v6318_v61 = vpop.f32.mrb[122].mxu0  ;;  %v6350_v44 = vpop.f32.mrb[138].mxu1  ;;  %v4373_v63 = vpack.c.bf16 %v4304_v11, %v4303_v13 }
 0x2ec   : > { %v4181_v30 = vadd.f32 %v7926_v38, %v6587_v4  ;;  %5005 = vst [vmem:[%s7980_s9 + $0x50] sm:$0xff] %v4525_v22  ;;  %v6589_v33 = vadd.f32 %v6318_v61, %v7809_v27  ;;  %v4528_v59 = vadd.f32 %v6350_v44, %v7975_v14  ;;  %v3896_v49 = vpop.f32.mrb[123].mxu0  ;;  %v4519_v37 = vpop.f32.mrb[139].mxu1 }
 0x2ed   : > { %v4179_v54 = vadd.f32 %v7926_v38, %v6588_v32  ;;  %5003 = vst [vmem:[%s7980_s9 + $0x40] sm:$0xff] %v4517_v29  ;;  %v6590_v36 = vadd.f32 %v3896_v49, %v7811_v28  ;;  %v4520_v19 = vadd.f32 %v7975_v14, %v4519_v37  ;;  %6455 = vmatprep.mubr.bf16.mxu1 %v4373_v63 }
 0x2ee   : > { %v4182_v51 = vadd.f32 %v7926_v38, %v6589_v33  ;;  %5006 = vst [vmem:[%s7980_s9 + $0x58] sm:$0xff] %v4528_v59  ;;  %6456 = vmatmul.mubr.bf16.gmra.mrb[244].mxu1 %v4374_v24  ;;  %v4309_v27 = vmax.f32 %v4181_v30, 0.0 }
 0x2ef   : > { %v4180_v1 = vadd.f32 %v7926_v38, %v6590_v36  ;;  %5004 = vst [vmem:[%s7980_s9 + $0x48] sm:$0xff] %v4520_v19  ;;  %v4307_v12 = vmax.f32 %v4179_v54, 0.0 }
 0x2f0   : > { %v4310_v34 = vmax.f32 %v4182_v51, 0.0 }
 0x2f1   : > { %v4308_v20 = vmax.f32 %v4180_v1, 0.0  ;;  %v6321_v55 = vpop.f32.mrb[124].mxu0  ;;  %v6353_v3 = vpop.f32.mrb[140].mxu1 }
 0x2f2   : > { %v6591_v2 = vadd.f32 %v6321_v55, %v7820_v45  ;;  %v4541_v28 = vadd.f32 %v6353_v3, %v7975_v14  ;;  %v3909_v15 = vpop.f32.mrb[125].mxu0  ;;  %v4532_v5 = vpop.f32.mrb[141].mxu1  ;;  %v4376_v0 = vpack.c.bf16 %v4310_v34, %v4309_v27 }
 0x2f3   : > { %v6592_v56 = vadd.f32 %v3909_v15, %v7823_v46  ;;  %v4533_v40 = vadd.f32 %v7975_v14, %v4532_v5  ;;  %v6322_v7 = vpop.f32.mrb[126].mxu0  ;;  %v6354_v8 = vpop.f32.mrb[142].mxu1  ;;  %v4375_v16 = vpack.c.bf16 %v4308_v20, %v4307_v12  ;;  %v8360_v46 = vld [vmem:[#allocation42_spill] sm:$0xff] }
 0x2f4   : > { %v4185_v23 = vadd.f32 %v7926_v38, %v6591_v2  ;;  %5009 = vst [vmem:[%s7980_s9 + $0x70] sm:$0xff] %v4541_v28  ;;  %v6593_v45 = vadd.f32 %v6322_v7, %v8359_v39  ;;  %v4544_v6 = vadd.f32 %v6354_v8, %v7975_v14  ;;  %v3912_v42 = vpop.f32.mrb[127].mxu0  ;;  %v4535_v48 = vpop.f32.mrb[143].mxu1 }
 0x2f5   : > { %v4183_v58 = vadd.f32 %v7926_v38, %v6592_v56  ;;  %5007 = vst [vmem:[%s7980_s9 + $0x60] sm:$0xff] %v4533_v40  ;;  %v6594_v31 = vadd.f32 %v3912_v42, %v8360_v46  ;;  %v4536_v57 = vadd.f32 %v7975_v14, %v4535_v48  ;;  %6459 = vmatprep.mubr.bf16.mxu1 %v4375_v16 }
 0x2f6   : > { %v4186_v47 = vadd.f32 %v7926_v38, %v6593_v45  ;;  %5010 = vst [vmem:[%s7980_s9 + $0x78] sm:$0xff] %v4544_v6  ;;  %6460 = vmatmul.mubr.bf16.gmra.mrb[248].mxu1 %v4376_v0  ;;  %v4313_v62 = vmax.f32 %v4185_v23, 0.0 }
 0x2f7   : > { %v4184_v25 = vadd.f32 %v7926_v38, %v6594_v31  ;;  %5008 = vst [vmem:[%s7980_s9 + $0x68] sm:$0xff] %v4536_v57  ;;  %v4311_v43 = vmax.f32 %v4183_v58, 0.0 }
 0x2f8   : > { %v4314_v53 = vmax.f32 %v4186_v47, 0.0 }
 0x2f9   : > { %v4312_v52 = vmax.f32 %v4184_v25, 0.0  ;;  %v6357_v26 = vpop.f32.mrb[144].mxu1 }
 0x2fa   : > { %v4557_v18 = vadd.f32 %v6357_v26, %v7975_v14  ;;  %v4548_v60 = vpop.f32.mrb[145].mxu1  ;;  %v4378_v35 = vpack.c.bf16 %v4314_v53, %v4313_v62 }
 0x2fb   : > { %v4549_v21 = vadd.f32 %v7975_v14, %v4548_v60  ;;  %v6358_v17 = vpop.f32.mrb[146].mxu1  ;;  %v4377_v13 = vpack.c.bf16 %v4312_v52, %v4311_v43 }
 0x2fc   : > { %5013 = vst [vmem:[%s7980_s9 + $0x90] sm:$0xff] %v4557_v18  ;;  %v4560_v38 = vadd.f32 %v6358_v17, %v7975_v14  ;;  %v4551_v11 = vpop.f32.mrb[147].mxu1 }
 0x2fd   : > { %5011 = vst [vmem:[%s7980_s9 + $0x80] sm:$0xff] %v4549_v21  ;;  %v4552_v50 = vadd.f32 %v7975_v14, %v4551_v11  ;;  %6463 = vmatprep.mubr.bf16.mxu1 %v4377_v13 }
 0x2fe   : > { %5014 = vst [vmem:[%s7980_s9 + $0x98] sm:$0xff] %v4560_v38  ;;  %6464 = vmatmul.mubr.bf16.gmra.mrb[252].mxu1 %v4378_v35 }
 0x2ff   : > { %5012 = vst [vmem:[%s7980_s9 + $0x88] sm:$0xff] %v4552_v50 }
 0x301   : > { %v6361_v9 = vpop.f32.mrb[148].mxu1 }
 0x302   : > { %v4573_v4 = vadd.f32 %v6361_v9, %v7975_v14  ;;  %v4564_v22 = vpop.f32.mrb[149].mxu1 }
 0x303   : > { %v4565_v41 = vadd.f32 %v7975_v14, %v4564_v22  ;;  %v6362_v10 = vpop.f32.mrb[150].mxu1 }
 0x304   : > { %5017 = vst [vmem:[%s7980_s9 + $0xb0] sm:$0xff] %v4573_v4  ;;  %v4576_v24 = vadd.f32 %v6362_v10, %v7975_v14  ;;  %v4567_v32 = vpop.f32.mrb[151].mxu1 }
 0x305   : > { %5015 = vst [vmem:[%s7980_s9 + $0xa0] sm:$0xff] %v4565_v41  ;;  %v4568_v29 = vadd.f32 %v7975_v14, %v4567_v32 }
 0x306   : > { %5018 = vst [vmem:[%s7980_s9 + $0xb8] sm:$0xff] %v4576_v24 }
 0x307   : > { %5016 = vst [vmem:[%s7980_s9 + $0xa8] sm:$0xff] %v4568_v29 }
 0x309   : > { %v6365_v61 = vpop.f32.mrb[152].mxu1 }
 0x30a   : > { %v4589_v44 = vadd.f32 %v6365_v61, %v7975_v14  ;;  %v4580_v63 = vpop.f32.mrb[153].mxu1 }
 0x30b   : > { %v4581_v30 = vadd.f32 %v7975_v14, %v4580_v63  ;;  %v6366_v33 = vpop.f32.mrb[154].mxu1 }
 0x30c   : > { %5021 = vst [vmem:[%s7980_s9 + $0xd0] sm:$0xff] %v4589_v44  ;;  %v4592_v59 = vadd.f32 %v6366_v33, %v7975_v14  ;;  %v4583_v49 = vpop.f32.mrb[155].mxu1 }
 0x30d   : > { %5019 = vst [vmem:[%s7980_s9 + $0xc0] sm:$0xff] %v4581_v30  ;;  %v4584_v37 = vadd.f32 %v7975_v14, %v4583_v49 }
 0x30e   : > { %5022 = vst [vmem:[%s7980_s9 + $0xd8] sm:$0xff] %v4592_v59 }
 0x30f   : > { %5020 = vst [vmem:[%s7980_s9 + $0xc8] sm:$0xff] %v4584_v37 }
 0x311   : > { %v6369_v54 = vpop.f32.mrb[156].mxu1 }
 0x312   : > { %v4605_v36 = vadd.f32 %v6369_v54, %v7975_v14  ;;  %v4596_v19 = vpop.f32.mrb[157].mxu1 }
 0x313   : > { %v4597_v51 = vadd.f32 %v7975_v14, %v4596_v19  ;;  %v6370_v1 = vpop.f32.mrb[158].mxu1 }
 0x314   : > { %5025 = vst [vmem:[%s7980_s9 + $0xf0] sm:$0xff] %v4605_v36  ;;  %v4608_v27 = vadd.f32 %v6370_v1, %v7975_v14  ;;  %v4599_v34 = vpop.f32.mrb[159].mxu1 }
 0x315   : > { %5023 = vst [vmem:[%s7980_s9 + $0xe0] sm:$0xff] %v4597_v51  ;;  %v4600_v12 = vadd.f32 %v7975_v14, %v4599_v34 }
 0x316   : > { %5026 = vst [vmem:[%s7980_s9 + $0xf8] sm:$0xff] %v4608_v27 }
 0x317   : > { %5024 = vst [vmem:[%s7980_s9 + $0xe8] sm:$0xff] %v4600_v12 }
 0x319   : > { %v6373_v20 = vpop.f32.mrb[160].mxu1 }
 0x31a   : > { %v4621_v55 = vadd.f32 %v6373_v20, %v7975_v14  ;;  %v4612_v3 = vpop.f32.mrb[161].mxu1 }
 0x31b   : > { %v4613_v2 = vadd.f32 %v7975_v14, %v4612_v3  ;;  %v6374_v28 = vpop.f32.mrb[162].mxu1 }
 0x31c   : > { %5029 = vst [vmem:[%s7980_s9 + $0x110] sm:$0xff] %v4621_v55  ;;  %v4624_v15 = vadd.f32 %v6374_v28, %v7975_v14  ;;  %v4615_v5 = vpop.f32.mrb[163].mxu1 }
 0x31d   : > { %5027 = vst [vmem:[%s7980_s9 + $0x100] sm:$0xff] %v4613_v2  ;;  %v4616_v0 = vadd.f32 %v7975_v14, %v4615_v5 }
 0x31e   : > { %5030 = vst [vmem:[%s7980_s9 + $0x118] sm:$0xff] %v4624_v15 }
 0x31f   : > { %5028 = vst [vmem:[%s7980_s9 + $0x108] sm:$0xff] %v4616_v0 }
 0x321   : > { %v6377_v56 = vpop.f32.mrb[164].mxu1 }
 0x322   : > { %v4637_v40 = vadd.f32 %v6377_v56, %v7975_v14  ;;  %v4628_v7 = vpop.f32.mrb[165].mxu1 }
 0x323   : > { %v4629_v8 = vadd.f32 %v7975_v14, %v4628_v7  ;;  %v6378_v16 = vpop.f32.mrb[166].mxu1 }
 0x324   : > { %5033 = vst [vmem:[%s7980_s9 + $0x130] sm:$0xff] %v4637_v40  ;;  %v4640_v23 = vadd.f32 %v6378_v16, %v7975_v14  ;;  %v4631_v39 = vpop.f32.mrb[167].mxu1 }
 0x325   : > { %5031 = vst [vmem:[%s7980_s9 + $0x120] sm:$0xff] %v4629_v8  ;;  %v4632_v45 = vadd.f32 %v7975_v14, %v4631_v39 }
 0x326   : > { %5034 = vst [vmem:[%s7980_s9 + $0x138] sm:$0xff] %v4640_v23 }
 0x327   : > { %5032 = vst [vmem:[%s7980_s9 + $0x128] sm:$0xff] %v4632_v45 }
 0x329   : > { %v6381_v6 = vpop.f32.mrb[168].mxu1 }
 0x32a   : > { %v4653_v42 = vadd.f32 %v6381_v6, %v7975_v14  ;;  %v4644_v48 = vpop.f32.mrb[169].mxu1 }
 0x32b   : > { %v4645_v58 = vadd.f32 %v7975_v14, %v4644_v48  ;;  %v6382_v46 = vpop.f32.mrb[170].mxu1 }
 0x32c   : > { %5037 = vst [vmem:[%s7980_s9 + $0x150] sm:$0xff] %v4653_v42  ;;  %v4656_v31 = vadd.f32 %v6382_v46, %v7975_v14  ;;  %v4647_v57 = vpop.f32.mrb[171].mxu1 }
 0x32d   : > { %5035 = vst [vmem:[%s7980_s9 + $0x140] sm:$0xff] %v4645_v58  ;;  %v4648_v47 = vadd.f32 %v7975_v14, %v4647_v57 }
 0x32e   : > { %5038 = vst [vmem:[%s7980_s9 + $0x158] sm:$0xff] %v4656_v31 }
 0x32f   : > { %5036 = vst [vmem:[%s7980_s9 + $0x148] sm:$0xff] %v4648_v47 }
 0x331   : > { %v6385_v25 = vpop.f32.mrb[172].mxu1 }
 0x332   : > { %v4669_v62 = vadd.f32 %v6385_v25, %v7975_v14  ;;  %v4660_v53 = vpop.f32.mrb[173].mxu1 }
 0x333   : > { %v4661_v43 = vadd.f32 %v7975_v14, %v4660_v53  ;;  %v6386_v52 = vpop.f32.mrb[174].mxu1 }
 0x334   : > { %5041 = vst [vmem:[%s7980_s9 + $0x170] sm:$0xff] %v4669_v62  ;;  %v4672_v26 = vadd.f32 %v6386_v52, %v7975_v14  ;;  %v4663_v18 = vpop.f32.mrb[175].mxu1 }
 0x335   : > { %5039 = vst [vmem:[%s7980_s9 + $0x160] sm:$0xff] %v4661_v43  ;;  %v4664_v60 = vadd.f32 %v7975_v14, %v4663_v18 }
 0x336   : > { %5042 = vst [vmem:[%s7980_s9 + $0x178] sm:$0xff] %v4672_v26 }
 0x337   : > { %5040 = vst [vmem:[%s7980_s9 + $0x168] sm:$0xff] %v4664_v60 }
 0x339   : > { %v6389_v35 = vpop.f32.mrb[176].mxu1 }
 0x33a   : > { %v4685_v21 = vadd.f32 %v6389_v35, %v7975_v14  ;;  %v4676_v17 = vpop.f32.mrb[177].mxu1 }
 0x33b   : > { %v4677_v13 = vadd.f32 %v7975_v14, %v4676_v17  ;;  %v6390_v38 = vpop.f32.mrb[178].mxu1 }
 0x33c   : > { %5045 = vst [vmem:[%s7980_s9 + $0x190] sm:$0xff] %v4685_v21  ;;  %v4688_v11 = vadd.f32 %v6390_v38, %v7975_v14  ;;  %v4679_v50 = vpop.f32.mrb[179].mxu1 }
 0x33d   : > { %5043 = vst [vmem:[%s7980_s9 + $0x180] sm:$0xff] %v4677_v13  ;;  %v4680_v9 = vadd.f32 %v7975_v14, %v4679_v50 }
 0x33e   : > { %5046 = vst [vmem:[%s7980_s9 + $0x198] sm:$0xff] %v4688_v11 }
 0x33f   : > { %5044 = vst [vmem:[%s7980_s9 + $0x188] sm:$0xff] %v4680_v9 }
 0x341   : > { %v6393_v4 = vpop.f32.mrb[180].mxu1 }
 0x342   : > { %v4701_v22 = vadd.f32 %v6393_v4, %v7975_v14  ;;  %v4692_v41 = vpop.f32.mrb[181].mxu1 }
 0x343   : > { %v4693_v10 = vadd.f32 %v7975_v14, %v4692_v41  ;;  %v6394_v24 = vpop.f32.mrb[182].mxu1 }
 0x344   : > { %5049 = vst [vmem:[%s7980_s9 + $0x1b0] sm:$0xff] %v4701_v22  ;;  %v4704_v32 = vadd.f32 %v6394_v24, %v7975_v14  ;;  %v4695_v29 = vpop.f32.mrb[183].mxu1 }
 0x345   : > { %5047 = vst [vmem:[%s7980_s9 + $0x1a0] sm:$0xff] %v4693_v10  ;;  %v4696_v61 = vadd.f32 %v7975_v14, %v4695_v29 }
 0x346   : > { %5050 = vst [vmem:[%s7980_s9 + $0x1b8] sm:$0xff] %v4704_v32 }
 0x347   : > { %5048 = vst [vmem:[%s7980_s9 + $0x1a8] sm:$0xff] %v4696_v61 }
 0x349   : > { %v6397_v44 = vpop.f32.mrb[184].mxu1 }
 0x34a   : > { %v4717_v63 = vadd.f32 %v6397_v44, %v7975_v14  ;;  %v4708_v30 = vpop.f32.mrb[185].mxu1 }
 0x34b   : > { %v4709_v33 = vadd.f32 %v7975_v14, %v4708_v30  ;;  %v6398_v59 = vpop.f32.mrb[186].mxu1 }
 0x34c   : > { %5053 = vst [vmem:[%s7980_s9 + $0x1d0] sm:$0xff] %v4717_v63  ;;  %v4720_v49 = vadd.f32 %v6398_v59, %v7975_v14  ;;  %v4711_v37 = vpop.f32.mrb[187].mxu1 }
 0x34d   : > { %5051 = vst [vmem:[%s7980_s9 + $0x1c0] sm:$0xff] %v4709_v33  ;;  %v4712_v54 = vadd.f32 %v7975_v14, %v4711_v37 }
 0x34e   : > { %5054 = vst [vmem:[%s7980_s9 + $0x1d8] sm:$0xff] %v4720_v49 }
 0x34f   : > { %5052 = vst [vmem:[%s7980_s9 + $0x1c8] sm:$0xff] %v4712_v54 }
 0x351   : > { %v6401_v36 = vpop.f32.mrb[188].mxu1 }
 0x352   : > { %v4733_v19 = vadd.f32 %v6401_v36, %v7975_v14  ;;  %v4724_v51 = vpop.f32.mrb[189].mxu1 }
 0x353   : > { %v4725_v1 = vadd.f32 %v7975_v14, %v4724_v51  ;;  %v6402_v27 = vpop.f32.mrb[190].mxu1 }
 0x354   : > { %5057 = vst [vmem:[%s7980_s9 + $0x1f0] sm:$0xff] %v4733_v19  ;;  %v4736_v34 = vadd.f32 %v6402_v27, %v7975_v14  ;;  %v4727_v12 = vpop.f32.mrb[191].mxu1 }
 0x355   : > { %5055 = vst [vmem:[%s7980_s9 + $0x1e0] sm:$0xff] %v4725_v1  ;;  %v4728_v20 = vadd.f32 %v7975_v14, %v4727_v12 }
 0x356   : > { %5058 = vst [vmem:[%s7980_s9 + $0x1f8] sm:$0xff] %v4736_v34 }
 0x357   : > { %5056 = vst [vmem:[%s7980_s9 + $0x1e8] sm:$0xff] %v4728_v20 }
 0x359   : > { %v6405_v55 = vpop.f32.mrb[192].mxu1 }
 0x35a   : > { %v4749_v3 = vadd.f32 %v6405_v55, %v7975_v14  ;;  %v4740_v2 = vpop.f32.mrb[193].mxu1 }
 0x35b   : > { %v4741_v28 = vadd.f32 %v7975_v14, %v4740_v2  ;;  %v6406_v15 = vpop.f32.mrb[194].mxu1 }
 0x35c   : > { %5061 = vst [vmem:[%s7980_s9 + $0x210] sm:$0xff] %v4749_v3  ;;  %v4752_v5 = vadd.f32 %v6406_v15, %v7975_v14  ;;  %v4743_v0 = vpop.f32.mrb[195].mxu1 }
 0x35d   : > { %5059 = vst [vmem:[%s7980_s9 + $0x200] sm:$0xff] %v4741_v28  ;;  %v4744_v56 = vadd.f32 %v7975_v14, %v4743_v0 }
 0x35e   : > { %5062 = vst [vmem:[%s7980_s9 + $0x218] sm:$0xff] %v4752_v5 }
 0x35f   : > { %5060 = vst [vmem:[%s7980_s9 + $0x208] sm:$0xff] %v4744_v56 }
 0x361   : > { %v6409_v40 = vpop.f32.mrb[196].mxu1 }
 0x362   : > { %v4765_v7 = vadd.f32 %v6409_v40, %v7975_v14  ;;  %v4756_v8 = vpop.f32.mrb[197].mxu1 }
 0x363   : > { %v4757_v16 = vadd.f32 %v7975_v14, %v4756_v8  ;;  %v6410_v23 = vpop.f32.mrb[198].mxu1 }
 0x364   : > { %5065 = vst [vmem:[%s7980_s9 + $0x230] sm:$0xff] %v4765_v7  ;;  %v4768_v39 = vadd.f32 %v6410_v23, %v7975_v14  ;;  %v4759_v45 = vpop.f32.mrb[199].mxu1 }
 0x365   : > { %5063 = vst [vmem:[%s7980_s9 + $0x220] sm:$0xff] %v4757_v16  ;;  %v4760_v6 = vadd.f32 %v7975_v14, %v4759_v45 }
 0x366   : > { %5066 = vst [vmem:[%s7980_s9 + $0x238] sm:$0xff] %v4768_v39 }
 0x367   : > { %5064 = vst [vmem:[%s7980_s9 + $0x228] sm:$0xff] %v4760_v6 }
 0x369   : > { %v6413_v42 = vpop.f32.mrb[200].mxu1 }
 0x36a   : > { %v4781_v48 = vadd.f32 %v6413_v42, %v7975_v14  ;;  %v4772_v58 = vpop.f32.mrb[201].mxu1 }
 0x36b   : > { %v4773_v46 = vadd.f32 %v7975_v14, %v4772_v58  ;;  %v6414_v31 = vpop.f32.mrb[202].mxu1 }
 0x36c   : > { %5069 = vst [vmem:[%s7980_s9 + $0x250] sm:$0xff] %v4781_v48  ;;  %v4784_v57 = vadd.f32 %v6414_v31, %v7975_v14  ;;  %v4775_v47 = vpop.f32.mrb[203].mxu1 }
 0x36d   : > { %5067 = vst [vmem:[%s7980_s9 + $0x240] sm:$0xff] %v4773_v46  ;;  %v4776_v25 = vadd.f32 %v7975_v14, %v4775_v47 }
 0x36e   : > { %5070 = vst [vmem:[%s7980_s9 + $0x258] sm:$0xff] %v4784_v57 }
 0x36f   : > { %5068 = vst [vmem:[%s7980_s9 + $0x248] sm:$0xff] %v4776_v25 }
 0x371   : > { %v6417_v62 = vpop.f32.mrb[204].mxu1 }
 0x372   : > { %v4797_v53 = vadd.f32 %v6417_v62, %v7975_v14  ;;  %v4788_v43 = vpop.f32.mrb[205].mxu1 }
 0x373   : > { %v4789_v52 = vadd.f32 %v7975_v14, %v4788_v43  ;;  %v6418_v26 = vpop.f32.mrb[206].mxu1 }
 0x374   : > { %5073 = vst [vmem:[%s7980_s9 + $0x270] sm:$0xff] %v4797_v53  ;;  %v4800_v18 = vadd.f32 %v6418_v26, %v7975_v14  ;;  %v4791_v60 = vpop.f32.mrb[207].mxu1 }
 0x375   : > { %5071 = vst [vmem:[%s7980_s9 + $0x260] sm:$0xff] %v4789_v52  ;;  %v4792_v35 = vadd.f32 %v7975_v14, %v4791_v60 }
 0x376   : > { %5074 = vst [vmem:[%s7980_s9 + $0x278] sm:$0xff] %v4800_v18 }
 0x377   : > { %5072 = vst [vmem:[%s7980_s9 + $0x268] sm:$0xff] %v4792_v35 }
 0x379   : > { %v6421_v21 = vpop.f32.mrb[208].mxu1 }
 0x37a   : > { %v4813_v17 = vadd.f32 %v6421_v21, %v7975_v14  ;;  %v4804_v13 = vpop.f32.mrb[209].mxu1 }
 0x37b   : > { %v4805_v38 = vadd.f32 %v7975_v14, %v4804_v13  ;;  %v6422_v11 = vpop.f32.mrb[210].mxu1 }
 0x37c   : > { %5077 = vst [vmem:[%s7980_s9 + $0x290] sm:$0xff] %v4813_v17  ;;  %v4816_v50 = vadd.f32 %v6422_v11, %v7975_v14  ;;  %v4807_v9 = vpop.f32.mrb[211].mxu1 }
 0x37d   : > { %5075 = vst [vmem:[%s7980_s9 + $0x280] sm:$0xff] %v4805_v38  ;;  %v4808_v4 = vadd.f32 %v7975_v14, %v4807_v9 }
 0x37e   : > { %5078 = vst [vmem:[%s7980_s9 + $0x298] sm:$0xff] %v4816_v50 }
 0x37f   : > { %5076 = vst [vmem:[%s7980_s9 + $0x288] sm:$0xff] %v4808_v4 }
 0x381   : > { %v6425_v22 = vpop.f32.mrb[212].mxu1 }
 0x382   : > { %v4829_v41 = vadd.f32 %v6425_v22, %v7975_v14  ;;  %v4820_v10 = vpop.f32.mrb[213].mxu1 }
 0x383   : > { %v4821_v24 = vadd.f32 %v7975_v14, %v4820_v10  ;;  %v6426_v32 = vpop.f32.mrb[214].mxu1 }
 0x384   : > { %5081 = vst [vmem:[%s7980_s9 + $0x2b0] sm:$0xff] %v4829_v41  ;;  %v4832_v29 = vadd.f32 %v6426_v32, %v7975_v14  ;;  %v4823_v61 = vpop.f32.mrb[215].mxu1 }
 0x385   : > { %5079 = vst [vmem:[%s7980_s9 + $0x2a0] sm:$0xff] %v4821_v24  ;;  %v4824_v44 = vadd.f32 %v7975_v14, %v4823_v61 }
 0x386   : > { %5082 = vst [vmem:[%s7980_s9 + $0x2b8] sm:$0xff] %v4832_v29 }
 0x387   : > { %5080 = vst [vmem:[%s7980_s9 + $0x2a8] sm:$0xff] %v4824_v44 }
 0x389   : > { %v6429_v63 = vpop.f32.mrb[216].mxu1 }
 0x38a   : > { %v4845_v30 = vadd.f32 %v6429_v63, %v7975_v14  ;;  %v4836_v33 = vpop.f32.mrb[217].mxu1 }
 0x38b   : > { %v4837_v59 = vadd.f32 %v7975_v14, %v4836_v33  ;;  %v6430_v49 = vpop.f32.mrb[218].mxu1 }
 0x38c   : > { %5085 = vst [vmem:[%s7980_s9 + $0x2d0] sm:$0xff] %v4845_v30  ;;  %v4848_v37 = vadd.f32 %v6430_v49, %v7975_v14  ;;  %v4839_v54 = vpop.f32.mrb[219].mxu1 }
 0x38d   : > { %5083 = vst [vmem:[%s7980_s9 + $0x2c0] sm:$0xff] %v4837_v59  ;;  %v4840_v36 = vadd.f32 %v7975_v14, %v4839_v54 }
 0x38e   : > { %5086 = vst [vmem:[%s7980_s9 + $0x2d8] sm:$0xff] %v4848_v37 }
 0x38f   : > { %5084 = vst [vmem:[%s7980_s9 + $0x2c8] sm:$0xff] %v4840_v36 }
 0x391   : > { %v6433_v19 = vpop.f32.mrb[220].mxu1 }
 0x392   : > { %v4861_v51 = vadd.f32 %v6433_v19, %v7975_v14  ;;  %v4852_v1 = vpop.f32.mrb[221].mxu1 }
 0x393   : > { %v4853_v27 = vadd.f32 %v7975_v14, %v4852_v1  ;;  %v6434_v34 = vpop.f32.mrb[222].mxu1 }
 0x394   : > { %5089 = vst [vmem:[%s7980_s9 + $0x2f0] sm:$0xff] %v4861_v51  ;;  %v4864_v12 = vadd.f32 %v6434_v34, %v7975_v14  ;;  %v4855_v20 = vpop.f32.mrb[223].mxu1 }
 0x395   : > { %5087 = vst [vmem:[%s7980_s9 + $0x2e0] sm:$0xff] %v4853_v27  ;;  %v4856_v55 = vadd.f32 %v7975_v14, %v4855_v20 }
 0x396   : > { %5090 = vst [vmem:[%s7980_s9 + $0x2f8] sm:$0xff] %v4864_v12 }
 0x397   : > { %5088 = vst [vmem:[%s7980_s9 + $0x2e8] sm:$0xff] %v4856_v55 }
 0x399   : > { %v6437_v3 = vpop.f32.mrb[224].mxu1 }
 0x39a   : > { %v4877_v2 = vadd.f32 %v6437_v3, %v7975_v14  ;;  %v4868_v28 = vpop.f32.mrb[225].mxu1 }
 0x39b   : > { %v4869_v15 = vadd.f32 %v7975_v14, %v4868_v28  ;;  %v6438_v5 = vpop.f32.mrb[226].mxu1 }
 0x39c   : > { %5093 = vst [vmem:[%s7980_s9 + $0x310] sm:$0xff] %v4877_v2  ;;  %v4880_v0 = vadd.f32 %v6438_v5, %v7975_v14  ;;  %v4871_v56 = vpop.f32.mrb[227].mxu1 }
 0x39d   : > { %5091 = vst [vmem:[%s7980_s9 + $0x300] sm:$0xff] %v4869_v15  ;;  %v4872_v40 = vadd.f32 %v7975_v14, %v4871_v56 }
 0x39e   : > { %5094 = vst [vmem:[%s7980_s9 + $0x318] sm:$0xff] %v4880_v0 }
 0x39f   : > { %5092 = vst [vmem:[%s7980_s9 + $0x308] sm:$0xff] %v4872_v40 }
 0x3a1   : > { %v6441_v7 = vpop.f32.mrb[228].mxu1 }
 0x3a2   : > { %v4893_v8 = vadd.f32 %v6441_v7, %v7975_v14  ;;  %v4884_v16 = vpop.f32.mrb[229].mxu1 }
 0x3a3   : > { %v4885_v23 = vadd.f32 %v7975_v14, %v4884_v16  ;;  %v6442_v39 = vpop.f32.mrb[230].mxu1 }
 0x3a4   : > { %5097 = vst [vmem:[%s7980_s9 + $0x330] sm:$0xff] %v4893_v8  ;;  %v4896_v45 = vadd.f32 %v6442_v39, %v7975_v14  ;;  %v4887_v6 = vpop.f32.mrb[231].mxu1 }
 0x3a5   : > { %5095 = vst [vmem:[%s7980_s9 + $0x320] sm:$0xff] %v4885_v23  ;;  %v4888_v42 = vadd.f32 %v7975_v14, %v4887_v6 }
 0x3a6   : > { %5098 = vst [vmem:[%s7980_s9 + $0x338] sm:$0xff] %v4896_v45 }
 0x3a7   : > { %5096 = vst [vmem:[%s7980_s9 + $0x328] sm:$0xff] %v4888_v42 }
 0x3a9   : > { %v6445_v48 = vpop.f32.mrb[232].mxu1 }
 0x3aa   : > { %v4909_v58 = vadd.f32 %v6445_v48, %v7975_v14  ;;  %v4900_v46 = vpop.f32.mrb[233].mxu1 }
 0x3ab   : > { %v4901_v31 = vadd.f32 %v7975_v14, %v4900_v46  ;;  %v6446_v57 = vpop.f32.mrb[234].mxu1 }
 0x3ac   : > { %5101 = vst [vmem:[%s7980_s9 + $0x350] sm:$0xff] %v4909_v58  ;;  %v4912_v47 = vadd.f32 %v6446_v57, %v7975_v14  ;;  %v4903_v25 = vpop.f32.mrb[235].mxu1 }
 0x3ad   : > { %5099 = vst [vmem:[%s7980_s9 + $0x340] sm:$0xff] %v4901_v31  ;;  %v4904_v62 = vadd.f32 %v7975_v14, %v4903_v25 }
 0x3ae   : > { %5102 = vst [vmem:[%s7980_s9 + $0x358] sm:$0xff] %v4912_v47 }
 0x3af   : > { %5100 = vst [vmem:[%s7980_s9 + $0x348] sm:$0xff] %v4904_v62 }
 0x3b1   : > { %v6449_v53 = vpop.f32.mrb[236].mxu1 }
 0x3b2   : > { %v4925_v43 = vadd.f32 %v6449_v53, %v7975_v14  ;;  %v4916_v52 = vpop.f32.mrb[237].mxu1 }
 0x3b3   : > { %v4917_v26 = vadd.f32 %v7975_v14, %v4916_v52  ;;  %v6450_v18 = vpop.f32.mrb[238].mxu1 }
 0x3b4   : > { %5105 = vst [vmem:[%s7980_s9 + $0x370] sm:$0xff] %v4925_v43  ;;  %v4928_v60 = vadd.f32 %v6450_v18, %v7975_v14  ;;  %v4919_v35 = vpop.f32.mrb[239].mxu1 }
 0x3b5   : > { %5103 = vst [vmem:[%s7980_s9 + $0x360] sm:$0xff] %v4917_v26  ;;  %v4920_v21 = vadd.f32 %v7975_v14, %v4919_v35 }
 0x3b6   : > { %5106 = vst [vmem:[%s7980_s9 + $0x378] sm:$0xff] %v4928_v60 }
 0x3b7   : > { %5104 = vst [vmem:[%s7980_s9 + $0x368] sm:$0xff] %v4920_v21 }
 0x3b9   : > { %v6453_v17 = vpop.f32.mrb[240].mxu1 }
 0x3ba   : > { %v4941_v13 = vadd.f32 %v6453_v17, %v7975_v14  ;;  %v4932_v38 = vpop.f32.mrb[241].mxu1 }
 0x3bb   : > { %v4933_v11 = vadd.f32 %v7975_v14, %v4932_v38  ;;  %v6454_v50 = vpop.f32.mrb[242].mxu1 }
 0x3bc   : > { %5109 = vst [vmem:[%s7980_s9 + $0x390] sm:$0xff] %v4941_v13  ;;  %v4944_v9 = vadd.f32 %v6454_v50, %v7975_v14  ;;  %v4935_v4 = vpop.f32.mrb[243].mxu1 }
 0x3bd   : > { %5107 = vst [vmem:[%s7980_s9 + $0x380] sm:$0xff] %v4933_v11  ;;  %v4936_v22 = vadd.f32 %v7975_v14, %v4935_v4 }
 0x3be   : > { %5110 = vst [vmem:[%s7980_s9 + $0x398] sm:$0xff] %v4944_v9 }
 0x3bf   : > { %5108 = vst [vmem:[%s7980_s9 + $0x388] sm:$0xff] %v4936_v22 }
 0x3c1   : > { %v6457_v41 = vpop.f32.mrb[244].mxu1 }
 0x3c2   : > { %v4957_v10 = vadd.f32 %v6457_v41, %v7975_v14  ;;  %v4948_v24 = vpop.f32.mrb[245].mxu1 }
 0x3c3   : > { %v4949_v32 = vadd.f32 %v7975_v14, %v4948_v24  ;;  %v6458_v29 = vpop.f32.mrb[246].mxu1 }
 0x3c4   : > { %5113 = vst [vmem:[%s7980_s9 + $0x3b0] sm:$0xff] %v4957_v10  ;;  %v4960_v61 = vadd.f32 %v6458_v29, %v7975_v14  ;;  %v4951_v44 = vpop.f32.mrb[247].mxu1 }
 0x3c5   : > { %5111 = vst [vmem:[%s7980_s9 + $0x3a0] sm:$0xff] %v4949_v32  ;;  %v4952_v63 = vadd.f32 %v7975_v14, %v4951_v44 }
 0x3c6   : > { %5114 = vst [vmem:[%s7980_s9 + $0x3b8] sm:$0xff] %v4960_v61 }
 0x3c7   : > { %5112 = vst [vmem:[%s7980_s9 + $0x3a8] sm:$0xff] %v4952_v63 }
 0x3c9   : > { %v6461_v30 = vpop.f32.mrb[248].mxu1 }
 0x3ca   : > { %v4973_v33 = vadd.f32 %v6461_v30, %v7975_v14  ;;  %v4964_v59 = vpop.f32.mrb[249].mxu1 }
 0x3cb   : > { %v4965_v49 = vadd.f32 %v7975_v14, %v4964_v59  ;;  %v6462_v37 = vpop.f32.mrb[250].mxu1 }
 0x3cc   : > { %5117 = vst [vmem:[%s7980_s9 + $0x3d0] sm:$0xff] %v4973_v33  ;;  %v4976_v54 = vadd.f32 %v6462_v37, %v7975_v14  ;;  %v4967_v36 = vpop.f32.mrb[251].mxu1 }
 0x3cd   : > { %5115 = vst [vmem:[%s7980_s9 + $0x3c0] sm:$0xff] %v4965_v49  ;;  %v4968_v19 = vadd.f32 %v7975_v14, %v4967_v36 }
 0x3ce   : > { %5118 = vst [vmem:[%s7980_s9 + $0x3d8] sm:$0xff] %v4976_v54 }
 0x3cf   : > { %5116 = vst [vmem:[%s7980_s9 + $0x3c8] sm:$0xff] %v4968_v19 }
 0x3d1   : > { %v6465_v51 = vpop.f32.mrb[252].mxu1 }
 0x3d2   : > { %v4989_v1 = vadd.f32 %v6465_v51, %v7975_v14  ;;  %v4980_v27 = vpop.f32.mrb[253].mxu1 }
 0x3d3   : > { %v4981_v34 = vadd.f32 %v7975_v14, %v4980_v27  ;;  %v6466_v12 = vpop.f32.mrb[254].mxu1 }
 0x3d4   : > { %5121 = vst [vmem:[%s7980_s9 + $0x3f0] sm:$0xff] %v4989_v1  ;;  %v4992_v20 = vadd.f32 %v6466_v12, %v7975_v14  ;;  %v4983_v55 = vpop.f32.mrb[255].mxu1 }
 0x3d5   : > { %5119 = vst [vmem:[%s7980_s9 + $0x3e0] sm:$0xff] %v4981_v34  ;;  %v4984_v3 = vadd.f32 %v7975_v14, %v4983_v55 }
 0x3d6   : > { %5122 = vst [vmem:[%s7980_s9 + $0x3f8] sm:$0xff] %v4992_v20 }
 0x3d7   : > { %5120 = vst [vmem:[%s7980_s9 + $0x3e8] sm:$0xff] %v4984_v3 }
 0x3d8 PF: > { %s15_s18 = sadd.s32 1, %s6956_s18  }
 0x3d9   : > { %p12_p4 = scmp.ge.s32.totalorder %s15_s18, 5  }
 0x3db   :  { %14 = sbr.rel (!%p12_p4) target bundleno = 1 (0x1), region = 72 }

</bundles_post_ra>
